<compile_context>
chip_gen: v7x
topology: tpu7x:2x2x1
jax: 0.10.0
libtpu: 0.0.40
codegen_flags: <defaults>
</compile_context>

<pallas_src>
import functools
import math

import jax
import jax.numpy as jnp
from jax.experimental import pallas as pl
from jax.experimental.pallas import tpu as pltpu


def _round_up(x, m):
    return ((x + m - 1) // m) * m


def _freq_bands(n_freqs, logscale=True):
    if logscale:
        return tuple(float(2.0 ** k) for k in range(n_freqs))
    step = (2.0 ** (n_freqs - 1) - 1.0) / max(n_freqs - 1, 1)
    return tuple(1.0 + k * step for k in range(n_freqs))


# ---------------------------------------------------------------------------
# 1. Standalone Embedding.forward  (COLD PATH -- the fused kernel below builds the
#    embedding directly in VMEM and never materializes it in HBM).
# ---------------------------------------------------------------------------
def _embedding_kernel(x_ref, o_ref, *, freq_bands, C):
    """o = [x, sin(f0 x), cos(f0 x), sin(f1 x), cos(f1 x), ...] (torch column order)."""
    x = x_ref[...]
    dt = o_ref.dtype
    o_ref[:, 0:C] = x.astype(dt)
    for k, f in enumerate(freq_bands):          # compile-time constants
        fx = f * x
        o_ref[:, (2 * k + 1) * C:(2 * k + 2) * C] = jnp.sin(fx).astype(dt)
        o_ref[:, (2 * k + 2) * C:(2 * k + 3) * C] = jnp.cos(fx).astype(dt)


def embedding_forward(x, N_freqs=4, logscale=True, block_b=512, out_dtype=None):
    """Pallas TPU implementation of Embedding.forward; kept for standalone parity."""
    B, C = x.shape
    out_channels = C * (2 * N_freqs + 1)
    out_dtype = out_dtype or x.dtype
    freq_bands = _freq_bands(N_freqs, logscale)
    # sublane multiple: 8 for 4-byte dtypes, 16 for 2-byte (bf16) outputs.
    sub = max(32 // jnp.dtype(x.dtype).itemsize,
              32 // jnp.dtype(out_dtype).itemsize, 8)
    block_b = _round_up(max(sub, min(block_b, _round_up(B, sub))), sub)
    B_pad = _round_up(B, block_b)
    if B_pad != B:
        x = jnp.pad(x, ((0, B_pad - B), (0, 0)))
    grid = (B_pad // block_b,)

    kernel = functools.partial(_embedding_kernel, freq_bands=freq_bands, C=C)
    out = pl.pallas_call(
        kernel,
        out_shape=jax.ShapeDtypeStruct((B_pad, out_channels), out_dtype),
        grid=grid,
        in_specs=[pl.BlockSpec((block_b, C), lambda i: (i, 0))],
        out_specs=pl.BlockSpec((block_b, out_channels), lambda i: (i, 0)),
        compiler_params=pltpu.CompilerParams(dimension_semantics=("parallel",)),
    )(x)
    return out[:B] if B_pad != B else out


# ---------------------------------------------------------------------------
# 2. Fully fused Deformation.forward_dynamic (no_grid=True, no_pe=False path)
# ---------------------------------------------------------------------------
def _packed_perm(Np, Nt, Cp=3, Ct=1):
    """Row permutation taking the torch embedding column order
    [pts, sin(b0 pts), cos(b0 pts), ..., t, sin(tb0 t), cos(tb0 t), ...]
    to the packed in-kernel order [pts, t, sin(all phases), cos(all phases)]."""
    pos_out = Cp * (2 * Np + 1)
    perm = list(range(Cp))                                    # x, y, z
    perm += [pos_out]                                         # t
    for k in range(Np):                                       # sin(b_k * pts)
        perm += [Cp + 2 * k * Cp + c for c in range(Cp)]
    for k in range(Nt):                                       # sin(tb_k * t)
        perm += [pos_out + Ct + 2 * k * Ct + c for c in range(Ct)]
    for k in range(Np):                                       # cos(b_k * pts)
        perm += [Cp + (2 * k + 1) * Cp + c for c in range(Cp)]
    for k in range(Nt):                                       # cos(tb_k * t)
        perm += [pos_out + Ct + (2 * k + 1) * Ct + c for c in range(Ct)]
    return perm


def _make_deform_kernel(D, K, W, Np, Nt, pos_bands, time_bands, compute_dtype):
    Cp, Ct = 3, 1
    n_phase = Cp * Np + Ct * Nt
    base = Cp + Ct
    cdt = compute_dtype

    def kernel(*refs):
        x_ref = refs[0]
        idx = 1
        fo = [(refs[idx + 2 * i], refs[idx + 2 * i + 1]) for i in range(D)]
        idx += 2 * D
        head_w1, head_b1, head_w2, head_b2 = refs[idx:idx + 4]
        idx += 4
        (co_w0, co_b0, cw1, cb1, ow1, ob1, cw2, cb2, ow2, ob2) = refs[idx:idx + 10]
        idx += 10
        out_ref = refs[idx]
        idx += 1
        emb1_sc, phase1_sc, emb2_sc, phase2_sc = refs[idx:idx + 4]

        x = x_ref[...]                                    # (block_b, 12) f32
        pts, t = x[:, 0:3], x[:, 3:4]
        scales_in, rot_in, opa_in = x[:, 4:7], x[:, 7:11], x[:, 11:12]

        def build_embedding(p3, t1, emb_sc, phase_sc):
            # Packed layout [p3, t1, sin(phases), cos(phases)]; the wrapper permutes
            # the rows of every K-dim weight to match, so sin/cos are each issued
            # ONCE on a full-width phase tile, with a handful of wide slice stores.
            emb_sc[:, 0:Cp] = p3.astype(cdt)
            emb_sc[:, Cp:base] = t1.astype(cdt)
            for k, f in enumerate(pos_bands):
                phase_sc[:, Cp * k:Cp * (k + 1)] = f * p3
            for k, f in enumerate(time_bands):
                phase_sc[:, Cp * Np + k:Cp * Np + k + 1] = f * t1
            ph = phase_sc[...]
            emb_sc[:, base:base + n_phase] = jnp.sin(ph).astype(cdt)
            emb_sc[:, base + n_phase:base + 2 * n_phase] = jnp.cos(ph).astype(cdt)
            return emb_sc[...]

        def dense(h, w_ref, b_ref):
            # bf16 (or f32) MXU inputs, f32 accumulation, f32 bias add.
            return jnp.dot(h.astype(cdt), w_ref[...].astype(cdt),
                           preferred_element_type=jnp.float32) + b_ref[...]

        relu = lambda v: jnp.maximum(v, 0.0)

        # ---- feature_out: Linear, then (D-1) x (ReLU -> Linear) -------------
        emb1 = build_embedding(pts, t, emb1_sc, phase1_sc)
        h = dense(emb1, *fo[0])
        for i in range(1, D):
            h = dense(relu(h), *fo[i])
        hidden = h                                        # (block_b, W) f32

        # ---- pos / scales / rotations deform heads (first layers fused into a
        #      single (W, 3W) matmul, final layers into one block-diag matmul) --
        g = relu(dense(relu(hidden), head_w1, head_b1))   # (block_b, 3W)
        delta = dense(g, head_w2, head_b2)                # (block_b, 10) = dx|ds|dr
        pts_out = pts + delta[:, 0:3]
        scales_out = scales_in + delta[:, 3:6]
        rot_out = rot_in + delta[:, 6:10]

        # ---- time_mlp (color + opacity) on the DEFORMED points ---------------
        emb2 = build_embedding(pts_out, t, emb2_sc, phase2_sc)
        hco = relu(dense(emb2, co_w0, co_b0))             # (block_b, 2W)
        c1 = relu(dense(hco[:, 0:W], cw1, cb1))
        o1 = relu(dense(hco[:, W:2 * W], ow1, ob1))
        rgb = jax.nn.sigmoid(dense(c1, cw2, cb2))         # (block_b, 3)
        opa = jax.nn.sigmoid(dense(o1, ow2, ob2)) + opa_in  # (block_b, 1)

        # Packed output [pts, scales, rotations, opacity, rgb]; narrow stores are
        # fine here -- this kernel is MXU-bound, not store-bound.
        dt = out_ref.dtype
        out_ref[:, 0:3] = pts_out.astype(dt)
        out_ref[:, 3:6] = scales_out.astype(dt)
        out_ref[:, 6:10] = rot_out.astype(dt)
        out_ref[:, 10:11] = opa.astype(dt)
        out_ref[:, 11:14] = rgb.astype(dt)

    return kernel


def deform_network_forward_dynamic(point, scales, rotations, opacity, times_sel, params,
                                   *, pos_freqs=4, time_freqs=4, logscale=True,
                                   block_b=1024, compute_dtype=jnp.bfloat16,
                                   vmem_limit_bytes=64 * 1024 * 1024):
    """Fused Pallas implementation of deform_network.forward_dynamic.

    params (all weights stored (in_features, out_features) = torch weight.T):
      feature_out: list of D (w, b); w[0] is (K, W), the rest (W, W)
      pos_deform / scales_deform / rotations_deform: (w1, b1, w2, b2)
      color_mlp / opacity_mlp: (w0, b0, w1, b1, w2, b2)

    Returns (pts, scales, rotations, opacity, rgb).  Padded rows only ever produce
    garbage that is sliced off at the end (no in-kernel reduction over rows).
    """
    Cp, Ct = 3, 1
    B = point.shape[0]
    fo = params["feature_out"]
    D = len(fo)
    K, W = fo[0][0].shape
    assert K == Cp * (2 * pos_freqs + 1) + Ct * (2 * time_freqs + 1), (K, pos_freqs, time_freqs)

    pos_bands = _freq_bands(pos_freqs, logscale)
    time_bands = _freq_bands(time_freqs, logscale)
    n_phase = Cp * pos_freqs + Ct * time_freqs

    # -- offline weight prep (free): row permutation, head fusion, bf16 cast -----
    perm = jnp.asarray(_packed_perm(pos_freqs, time_freqs), dtype=jnp.int32)
    w_cast = lambda w: w.astype(compute_dtype)
    b_row = lambda b: b.reshape(1, -1).astype(jnp.float32)

    weight_inputs = []
    for i, (w, b) in enumerate(fo):
        if i == 0:
            w = jnp.take(w, perm, axis=0)
        weight_inputs += [w_cast(w), b_row(b)]

    pdw1, pdb1, pdw2, pdb2 = params["pos_deform"]
    sdw1, sdb1, sdw2, sdb2 = params["scales_deform"]
    rdw1, rdb1, rdw2, rdb2 = params["rotations_deform"]
    head_w1 = jnp.concatenate([pdw1, sdw1, rdw1], axis=1)             # (W, 3W)
    head_b1 = jnp.concatenate([pdb1, sdb1, rdb1], axis=0)             # (3W,)
    head_w2 = jnp.zeros((3 * W, 10), jnp.float32)
    head_w2 = head_w2.at[0:W, 0:3].set(pdw2)
    head_w2 = head_w2.at[W:2 * W, 3:6].set(sdw2)
    head_w2 = head_w2.at[2 * W:3 * W, 6:10].set(rdw2)
    head_b2 = jnp.concatenate([pdb2, sdb2, rdb2], axis=0)             # (10,)
    weight_inputs += [w_cast(head_w1), b_row(head_b1), w_cast(head_w2), b_row(head_b2)]

    cw0, cb0, cw1, cb1, cw2, cb2 = params["color_mlp"]
    ow0, ob0, ow1, ob1, ow2, ob2 = params["opacity_mlp"]
    co_w0 = jnp.concatenate([jnp.take(cw0, perm, axis=0),
                             jnp.take(ow0, perm, axis=0)], axis=1)    # (K, 2W)
    co_b0 = jnp.concatenate([cb0, ob0], axis=0)                       # (2W,)
    weight_inputs += [w_cast(co_w0), b_row(co_b0),
                      w_cast(cw1), b_row(cb1), w_cast(ow1), b_row(ob1),
                      w_cast(cw2), b_row(cb2), w_cast(ow2), b_row(ob2)]

    # -- pack the per-ray inputs into one (B, 12) array (one DMA stream) --------
    x = jnp.concatenate([point[:, :3], times_sel[:, :1], scales[:, :3],
                         rotations[:, :4], opacity[:, :1]], axis=1).astype(jnp.float32)

    sub = 16
    block_b = _round_up(max(sub, min(block_b, _round_up(B, sub))), sub)
    if _round_up(B, sub) <= block_b and B > sub:
        # keep >= 2 grid steps so v7x's second TensorCore gets work.
        block_b = _round_up((B + 1) // 2, sub)
    B_pad = _round_up(B, block_b)
    if B_pad != B:
        x = jnp.pad(x, ((0, B_pad - B), (0, 0)))
    grid = (B_pad // block_b,)

    kernel = _make_deform_kernel(D, K, W, pos_freqs, time_freqs,
                                 pos_bands, time_bands, compute_dtype)

    in_specs = [pl.BlockSpec((block_b, x.shape[1]), lambda i: (i, 0))]
    in_specs += [pl.BlockSpec(wgt.shape, lambda i: (0, 0)) for wgt in weight_inputs]

    flops = 2 * B_pad * (K * W + (D - 1) * W * W + W * 3 * W + 3 * W * 10
                         + K * 2 * W + 2 * W * W + 4 * W)
    transcendentals = B_pad * (4 * n_phase + 2)
    weight_bytes = sum(int(wgt.size) * wgt.dtype.itemsize for wgt in weight_inputs)
    bytes_accessed = 4 * B_pad * (x.shape[1] + 14) + weight_bytes

    out = pl.pallas_call(
        kernel,
        out_shape=jax.ShapeDtypeStruct((B_pad, 14), jnp.float32),
        grid=grid,
        in_specs=in_specs,
        out_specs=pl.BlockSpec((block_b, 14), lambda i: (i, 0)),
        scratch_shapes=[pltpu.VMEM((block_b, K), compute_dtype),
                        pltpu.VMEM((block_b, n_phase), jnp.float32),
                        pltpu.VMEM((block_b, K), compute_dtype),
                        pltpu.VMEM((block_b, n_phase), jnp.float32)],
        compiler_params=pltpu.CompilerParams(
            dimension_semantics=("parallel",),
            vmem_limit_bytes=vmem_limit_bytes),
        cost_estimate=pl.CostEstimate(flops=int(flops),
                                      transcendentals=int(transcendentals),
                                      bytes_accessed=int(bytes_accessed)),
    )(x, *weight_inputs)

    out = out[:B]
    return (out[:, 0:3], out[:, 3:6], out[:, 6:10], out[:, 10:11], out[:, 11:14])


# ---------------------------------------------------------------------------
# Pure-JAX references (match the PyTorch forward exactly)
# ---------------------------------------------------------------------------
def embedding_reference(x, N_freqs=4, logscale=True):
    out = [x]
    for f in _freq_bands(N_freqs, logscale):
        out.append(jnp.sin(f * x))
        out.append(jnp.cos(f * x))
    return jnp.concatenate(out, axis=-1)


def deform_network_reference(point, scales, rotations, opacity, times_sel, params,
                             pos_freqs=4, time_freqs=4, logscale=True):
    mm = functools.partial(jnp.dot, precision=jax.lax.Precision.HIGHEST)
    relu = jax.nn.relu

    def embed(p, tt):
        return jnp.concatenate([embedding_reference(p, pos_freqs, logscale),
                                embedding_reference(tt, time_freqs, logscale)], -1)

    emb1 = embed(point[:, :3], times_sel[:, :1])
    w0, b0 = params["feature_out"][0]
    h = mm(emb1, w0) + b0
    for w, b in params["feature_out"][1:]:
        h = mm(relu(h), w) + b
    hidden = h

    def head(p):
        w1, b1, w2, b2 = p
        return mm(relu(mm(relu(hidden), w1) + b1), w2) + b2

    pts = point[:, :3] + head(params["pos_deform"])
    scales_out = scales[:, :3] + head(params["scales_deform"])
    rot_out = rotations[:, :4] + head(params["rotations_deform"])

    emb2 = embed(pts, times_sel[:, :1])

    def mlp3(p, xin):
        w0_, b0_, w1_, b1_, w2_, b2_ = p
        y = relu(mm(xin, w0_) + b0_)
        y = relu(mm(y, w1_) + b1_)
        return jax.nn.sigmoid(mm(y, w2_) + b2_)

    rgb = mlp3(params["color_mlp"], emb2)
    opa = mlp3(params["opacity_mlp"], emb2) + opacity[:, :1]
    return pts, scales_out, rot_out, opa, rgb


def _build_params(key, D, W, K):
    n_linear = D + 6 + 6
    keys = list(jax.random.split(key, 2 * n_linear))
    it = iter(keys)

    def lin(fan_in, fan_out):
        kw, kb = next(it), next(it)
        lim = math.sqrt(6.0 / (fan_in + fan_out))
        w = jax.random.uniform(kw, (fan_in, fan_out), jnp.float32, -lim, lim)
        b = jax.random.uniform(kb, (fan_out,), jnp.float32, -lim, lim)
        return w, b

    feature_out = [lin(K, W)] + [lin(W, W) for _ in range(D - 1)]

    def head(out_dim):
        w1, b1 = lin(W, W)
        w2, b2 = lin(W, out_dim)
        return (w1, b1, w2, b2)

    def mlp3(out_dim):
        w0, b0 = lin(K, W)
        w1, b1 = lin(W, W)
        w2, b2 = lin(W, out_dim)
        return (w0, b0, w1, b1, w2, b2)

    return {"feature_out": feature_out,
            "pos_deform": head(3),
            "scales_deform": head(3),
            "rotations_deform": head(4),
            "color_mlp": mlp3(3),
            "opacity_mlp": mlp3(1)}


if __name__ == "__main__":
    key = jax.random.PRNGKey(0)
    k_in, k_par = jax.random.split(key)
    k1, k2, k3, k4, k5 = jax.random.split(k_in, 5)

    # Small-but-representative shapes: K = 3*(2*4+1) + 1*(2*4+1) = 36 matches the
    # module defaults (input_ch=27, input_ch_time=9).  B is deliberately ragged.
    B, W, D, Np, Nt = 300, 128, 3, 4, 4
    K = 3 * (2 * Np + 1) + 1 * (2 * Nt + 1)

    point = 0.5 * jax.random.normal(k1, (B, 3), dtype=jnp.float32)
    scales = 0.1 * jax.random.normal(k2, (B, 3), dtype=jnp.float32)
    rotations = 0.1 * jax.random.normal(k3, (B, 4), dtype=jnp.float32)
    opacity = 0.1 * jax.random.normal(k4, (B, 1), dtype=jnp.float32)
    times_sel = jax.random.uniform(k5, (B, 1), dtype=jnp.float32)

    params = _build_params(k_par, D, W, K)

    # --- standalone Embedding.forward (cold path) ---
    emb_pos = embedding_forward(point, N_freqs=Np, block_b=64)
    emb_time = embedding_forward(times_sel, N_freqs=Nt, block_b=64)
    jax.block_until_ready((emb_pos, emb_time))
    assert emb_pos.shape == (B, 27) and emb_time.shape == (B, 9)
    assert jnp.allclose(emb_pos, embedding_reference(point, Np), atol=1e-5, rtol=1e-5)
    assert jnp.allclose(emb_time, embedding_reference(times_sel, Nt), atol=1e-5, rtol=1e-5)

    # --- fully fused deform_network.forward_dynamic ---
    ref = deform_network_reference(point, scales, rotations, opacity, times_sel,
                                   params, Np, Nt)
    expected_shapes = [(B, 3), (B, 3), (B, 4), (B, 1), (B, 3)]

    # f32 MXU inputs: kernel-logic check (tolerance covers multi-pass MXU f32 vs XLA).
    out_f32 = deform_network_forward_dynamic(
        point, scales, rotations, opacity, times_sel, params,
        pos_freqs=Np, time_freqs=Nt, block_b=128, compute_dtype=jnp.float32)
    jax.block_until_ready(out_f32)
    for a, r, s in zip(out_f32, ref, expected_shapes):
        assert a.shape == s, (a.shape, s)
        assert jnp.allclose(a, r, atol=3e-2, rtol=3e-2), "f32 fused mismatch"

    # bf16 MXU inputs (default fast path per perf review): looser tolerance.
    out_bf16 = deform_network_forward_dynamic(
        point, scales, rotations, opacity, times_sel, params,
        pos_freqs=Np, time_freqs=Nt, compute_dtype=jnp.bfloat16)
    jax.block_until_ready(out_bf16)
    for a, r, s in zip(out_bf16, ref, expected_shapes):
        assert a.shape == s, (a.shape, s)
        assert jnp.allclose(a, r, atol=1e-1, rtol=1e-1), "bf16 fused mismatch"

    print("KERNEL_OK")
</pallas_src>

<mosaic_0001>
module attributes {stable_mosaic.version = 11 : i64} {
  func.func @_embedding_kernel(%arg0: i32, %arg1: memref<64x3xf32, #tpu.memory_space<vmem>>, %arg2: memref<64x27xf32, #tpu.memory_space<vmem>>) attributes {dimension_semantics = [#tpu.dimension_semantics<parallel>], iteration_bounds = array<i64: 5>, scalar_prefetch = 0 : i64, scratch_operands = 0 : i64, tpu.core_type = #tpu.core_type<tc>, window_params = [{transform_indices = @transform_0, window_bounds = array<i64: 64, 3>}, {transform_indices = @transform_1, window_bounds = array<i64: 64, 27>}]} {
    %c0 = arith.constant 0 : index
    %c0_0 = arith.constant 0 : index
    %0 = vector.load %arg1[%c0, %c0_0] : memref<64x3xf32, #tpu.memory_space<vmem>>, vector<64x3xf32>
    %c0_1 = arith.constant 0 : index
    %c0_2 = arith.constant 0 : index
    %1 = vector.load %arg2[%c0_1, %c0_2] : memref<64x27xf32, #tpu.memory_space<vmem>>, vector<64x3xf32>
    tpu.vector_store %arg2[%c0_1, %c0_2], %0 {strides = array<i32>} : memref<64x27xf32, #tpu.memory_space<vmem>>, vector<64x3xf32>,
    %cst = arith.constant 1.000000e+00 : f32
    %2 = vector.broadcast %cst : f32 to vector<64x3xf32>
    %3 = arith.mulf %2, %0 : vector<64x3xf32>
    %4 = math.sin %3 : vector<64x3xf32>
    %c0_3 = arith.constant 0 : index
    %c3 = arith.constant 3 : index
    %5 = vector.load %arg2[%c0_3, %c3] : memref<64x27xf32, #tpu.memory_space<vmem>>, vector<64x3xf32>
    tpu.vector_store %arg2[%c0_3, %c3], %4 {strides = array<i32>} : memref<64x27xf32, #tpu.memory_space<vmem>>, vector<64x3xf32>,
    %6 = math.cos %3 : vector<64x3xf32>
    %c0_4 = arith.constant 0 : index
    %c6 = arith.constant 6 : index
    %7 = vector.load %arg2[%c0_4, %c6] : memref<64x27xf32, #tpu.memory_space<vmem>>, vector<64x3xf32>
    tpu.vector_store %arg2[%c0_4, %c6], %6 {strides = array<i32>} : memref<64x27xf32, #tpu.memory_space<vmem>>, vector<64x3xf32>,
    %cst_5 = arith.constant 2.000000e+00 : f32
    %8 = vector.broadcast %cst_5 : f32 to vector<64x3xf32>
    %9 = arith.mulf %8, %0 : vector<64x3xf32>
    %10 = math.sin %9 : vector<64x3xf32>
    %c0_6 = arith.constant 0 : index
    %c9 = arith.constant 9 : index
    %11 = vector.load %arg2[%c0_6, %c9] : memref<64x27xf32, #tpu.memory_space<vmem>>, vector<64x3xf32>
    tpu.vector_store %arg2[%c0_6, %c9], %10 {strides = array<i32>} : memref<64x27xf32, #tpu.memory_space<vmem>>, vector<64x3xf32>,
    %12 = math.cos %9 : vector<64x3xf32>
    %c0_7 = arith.constant 0 : index
    %c12 = arith.constant 12 : index
    %13 = vector.load %arg2[%c0_7, %c12] : memref<64x27xf32, #tpu.memory_space<vmem>>, vector<64x3xf32>
    tpu.vector_store %arg2[%c0_7, %c12], %12 {strides = array<i32>} : memref<64x27xf32, #tpu.memory_space<vmem>>, vector<64x3xf32>,
    %cst_8 = arith.constant 4.000000e+00 : f32
    %14 = vector.broadcast %cst_8 : f32 to vector<64x3xf32>
    %15 = arith.mulf %14, %0 : vector<64x3xf32>
    %16 = math.sin %15 : vector<64x3xf32>
    %c0_9 = arith.constant 0 : index
    %c15 = arith.constant 15 : index
    %17 = vector.load %arg2[%c0_9, %c15] : memref<64x27xf32, #tpu.memory_space<vmem>>, vector<64x3xf32>
    tpu.vector_store %arg2[%c0_9, %c15], %16 {strides = array<i32>} : memref<64x27xf32, #tpu.memory_space<vmem>>, vector<64x3xf32>,
    %18 = math.cos %15 : vector<64x3xf32>
    %c0_10 = arith.constant 0 : index
    %c18 = arith.constant 18 : index
    %19 = vector.load %arg2[%c0_10, %c18] : memref<64x27xf32, #tpu.memory_space<vmem>>, vector<64x3xf32>
    tpu.vector_store %arg2[%c0_10, %c18], %18 {strides = array<i32>} : memref<64x27xf32, #tpu.memory_space<vmem>>, vector<64x3xf32>,
    %cst_11 = arith.constant 8.000000e+00 : f32
    %20 = vector.broadcast %cst_11 : f32 to vector<64x3xf32>
    %21 = arith.mulf %20, %0 : vector<64x3xf32>
    %22 = math.sin %21 : vector<64x3xf32>
    %c0_12 = arith.constant 0 : index
    %c21 = arith.constant 21 : index
    %23 = vector.load %arg2[%c0_12, %c21] : memref<64x27xf32, #tpu.memory_space<vmem>>, vector<64x3xf32>
    tpu.vector_store %arg2[%c0_12, %c21], %22 {strides = array<i32>} : memref<64x27xf32, #tpu.memory_space<vmem>>, vector<64x3xf32>,
    %24 = math.cos %21 : vector<64x3xf32>
    %c0_13 = arith.constant 0 : index
    %c24 = arith.constant 24 : index
    %25 = vector.load %arg2[%c0_13, %c24] : memref<64x27xf32, #tpu.memory_space<vmem>>, vector<64x3xf32>
    tpu.vector_store %arg2[%c0_13, %c24], %24 {strides = array<i32>} : memref<64x27xf32, #tpu.memory_space<vmem>>, vector<64x3xf32>,
    return
  }
  func.func @transform_0(%arg0: i32) -> (i32, i32) {
    %c0_i32 = arith.constant 0 : i32
    %c0_i32_0 = arith.constant 0 : i32
    return %arg0, %c0_i32 : i32, i32
  }
  func.func @transform_1(%arg0: i32) -> (i32, i32) {
    %c0_i32 = arith.constant 0 : i32
    %c0_i32_0 = arith.constant 0 : i32
    return %arg0, %c0_i32 : i32, i32
  }
}

</mosaic_0001>

<bundles_post_ra>
// kernel: tpu_custom_call.1
= control target key start
LH: loop header
LB: loop body
LE: loop exit
PB: predicated region body
PF: predicated region fallthrough
CT: control target
= control target key end

     0   :  { %s7770_s6 = smov 0   ;;  %s11595_s0 = inlined_call_operand.vmem [shape: f32[320,3], index: 0, kind: input, shape index: {}]   ;;  %s11596_s1 = inlined_call_operand.vmem [shape: f32[320,27], index: 1, kind: output, shape index: {}]  }
   0x1 LB: > { %s7169_s7 = sadd.s32 4294967295, %s7744_s6   ;;  %p7173_p0 = scmp.ge.s32.totalorder %s7744_s6, 1  ;;  %s7744_s6 = sphi %s7770_s6, %s11_s6  }
   0x2   : > { %p88_p1 = scmp.lt.s32.totalorder %s7744_s6, 6 }
   0x4   : > { %p89_p2 = pnand %p7173_p0, %p88_p1 }
   0x6   : > { %92 = sbr.rel (%p89_p2) target bundleno = 1041 (0x411), region = 24 }
   0xd   : > { %s7174_s8 = sshll.u32 %s7169_s7, 3  ;;  %v11644_v31 = vmov 683565275   ;;  %v11617_v33 = vmov 2475754826   ;;  %s7752_s13 = smov 3  }
   0xe   : > { %p109_p3 = scmp.lt.s32.totalorder %s7174_s8, 39  ;;  %v11605_v35 = vmov 2131351028   ;;  %v11615_v37 = vmov 2102212464   ;;  %s7753_s14 = smov 6  }
   0xf   : > { %v11630_v39 = vmov 920167782   ;;  %v11632_v47 = vmov 1326507024   ;;  %s7754_s15 = smov 9   ;;  %s7755_s16 = smov 12  }
  0x10   : > { %s11844_s8 = smov (!%p109_p3, %s7174_s8), 39  ;;  %s7756_s17 = smov 15  }
  0x11   : > { %s7175_s9 = sshll.u32 %s11844_s8, 3  ;;  %s7757_s18 = smov 18  }
  0x12   : > { %s7786_s12 = scalar_lea.vmem %s11595_s0, %s7175_s9  ;;  %s7758_s19 = smov 21  }
  0x13   : > { %v7789_v0 = vld [vmem:[%s7786_s12 + $0x10] sm:$0xff]  ;;  %v7792_v1 = vld [vmem:[%s7786_s12] sm:$0xff]  ;;  %v7797_v4 = vld [vmem:[%s7786_s12 + $0x18] sm:$0xff]  ;;  %s11224_s22 = scalar_lea.vmem %s11596_s1, %s7175_s9  ;;  %s7759_s23 = smov 24  }
  0x14   : > { %v345_v2 = vand.u32 2147483647, %v7789_v0  ;;  %v348_v3 = vand.u32 2139095040, %v7789_v0  ;;  %v137_v5 = vand.u32 2147483647, %v7792_v1  ;;  %v140_v6 = vand.u32 2139095040, %v7792_v1 }
  0x15   : > { %v452_v11 = vand.u32 2139095040, %v7797_v4  ;;  %v449_v19 = vand.u32 2147483647, %v7797_v4  ;;  %vm347_vm12 = vcmp.lt.s32.totalorder %v7789_v0, 0 }
  0x16   : > { %v349_v7 = vshrl.u32 %v348_v3, 23  ;;  %v352_v8 = vand.u32 8388607, %v345_v2  ;;  %v141_v9 = vshrl.u32 %v140_v6, 23  ;;  %v144_v10 = vand.u32 8388607, %v137_v5 }
  0x17   : > { %v453_v14 = vshrl.u32 %v452_v11, 23  ;;  %v7813_v28 = vand.u32 8388607, %v449_v19  ;;  %vm7903_vm14 = vcmp.le.f32.partialorder %v345_v2, 0.7853982 }
  0x18   : > { %v7186_v12 = vadd.s32 4294967169, %v349_v7  ;;  %v7178_v13 = vadd.s32 4294967169, %v141_v9  ;;  %v353_v15 = vor.u32 8388608, %v352_v8  ;;  %v145_v17 = vor.u32 8388608, %v144_v10 }
  0x19   : > { %v7190_v20 = vadd.s32 4294967169, %v453_v14 }
  0x1a   : > { %v355_v16 = vadd.s32 1, %v7186_v12  ;;  %v147_v18 = vadd.s32 1, %v7178_v13  ;;  %v7807_v24 = vshll.u32 %v353_v15, 8  ;;  %v7809_v27 = vshll.u32 %v145_v17, 8 }
  0x1b   : > { %v7815_v29 = vadd.s32 1, %v7190_v20 }
  0x1c   : > { %vm356_vm0 = vcmp.gt.s32.totalorder %v355_v16, 0  ;;  %vm148_vm1 = vcmp.gt.s32.totalorder %v147_v18, 0 }
  0x1d   : > { %v357_v21 = vsel %vm356_vm0, %v355_v16, 0  ;;  %v149_v25 = vsel %vm148_vm1, %v147_v18, 0  ;;  %vm460_vm6 = vcmp.gt.s32.totalorder %v7815_v29, 0 }
  0x1e   : > { %v358_v22 = vshrl.u32 %v357_v21, 5  ;;  %v359_v23 = vand.u32 31, %v357_v21  ;;  %v151_v26 = vand.u32 31, %v149_v25  ;;  %v7822_v41 = vshrl.u32 %v149_v25, 5 }
  0x20   : > { %v360_v30 = vsub.s32 32, %v359_v23  ;;  %v362_v32 = vshll.u32 %v11644_v31, %v359_v23  ;;  %v365_v34 = vshll.u32 %v11617_v33, %v359_v23  ;;  %v368_v36 = vshll.u32 %v11605_v35, %v359_v23 }
  0x21   : > { %v371_v38 = vshll.u32 %v11615_v37, %v359_v23  ;;  %v374_v40 = vshll.u32 %v11630_v39, %v359_v23  ;;  %vm377_vm2 = vcmp.lt.s32.totalorder %v358_v22, 1  ;;  %vm378_vm3 = vcmp.lt.s32.totalorder %v358_v22, 2 }
  0x22   : > { %v361_v42 = vshrl.u32 %v11644_v31, %v360_v30  ;;  %v363_v43 = vshrl.u32 %v11617_v33, %v360_v30  ;;  %v366_v44 = vshrl.u32 %v11605_v35, %v360_v30  ;;  %v369_v45 = vshrl.u32 %v11615_v37, %v360_v30 }
  0x23   : > { %v372_v46 = vshrl.u32 %v11630_v39, %v360_v30  ;;  %v375_v48 = vshrl.u32 %v11632_v47, %v360_v30  ;;  %vm380_vm4 = vcmp.lt.s32.totalorder %v358_v22, 4  ;;  %v152_v52 = vsub.s32 32, %v151_v26 }
  0x24   : > { %v364_v49 = vor.u32 %v363_v43, %v362_v32  ;;  %v367_v50 = vor.u32 %v366_v44, %v365_v34  ;;  %v370_v51 = vor.u32 %v369_v45, %v368_v36  ;;  %vm379_vm5 = vcmp.lt.s32.totalorder %v358_v22, 3 }
  0x25   : > { %v373_v53 = vor.u32 %v372_v46, %v371_v38  ;;  %v376_v54 = vor.u32 %v375_v48, %v374_v40  ;;  %v154_v55 = vshll.u32 %v11644_v31, %v151_v26  ;;  %v157_v63 = vshll.u32 %v11617_v33, %v151_v26 }
  0x26   : > { %v381_v56 = vsel %vm377_vm2, %v361_v42, %v364_v49  ;;  %v382_v57 = vsel %vm380_vm4, %v370_v51, 2102212464  ;;  %v385_v58 = vsel %vm377_vm2, %v364_v49, %v367_v50  ;;  %v389_v59 = vsel %vm377_vm2, %v367_v50, %v370_v51 }
  0x27   : > { %v383_v60 = vsel %vm379_vm5, %v367_v50, %v382_v57  ;;  %v386_v61 = vsel %vm380_vm4, %v373_v53, 920167782  ;;  %v390_v62 = vsel %vm380_vm4, %v376_v54, 1326507024  ;;  %v153_v7 = vshrl.u32 %v11644_v31, %v152_v52 }
  0x28   : > { %v387_v3 = vsel %vm379_vm5, %v370_v51, %v386_v61  ;;  %v391_v6 = vsel %vm379_vm5, %v373_v53, %v390_v62  ;;  %v155_v8 = vshrl.u32 %v11617_v33, %v152_v52  ;;  %v384_v9 = vsel %vm378_vm3, %v381_v56, %v383_v60 }
  0x29   : > { %v388_v10 = vsel %vm378_vm3, %v385_v58, %v387_v3  ;;  %v392_v11 = vsel %vm378_vm3, %v389_v59, %v391_v6  ;;  %v158_v12 = vshrl.u32 %v11605_v35, %v152_v52  ;;  %v160_v20 = vshll.u32 %v11605_v35, %v151_v26  ;;  %v7881_v59 = vld [vmem:[%s7786_s12 + $0x8] sm:$0xff] }
  0x2a   : > { %v7843_v13 = vmul.u32.u64.low %v7807_v24, %v392_v11  ;;  %v7844_v14 = vmul.u32.u64.high %v7807_v24, %v392_v11, %v7843_v13  ;;  %v7847_v15 = vmul.u32.u64.low %v7807_v24, %v388_v10  ;;  %v7848_v16 = vmul.u32.u64.high %v7807_v24, %v388_v10, %v7847_v15 }
  0x2b   : > { %v156_v17 = vor.u32 %v155_v8, %v154_v55  ;;  %v159_v18 = vor.u32 %v158_v12, %v157_v63  ;;  %v161_v21 = vshrl.u32 %v11615_v37, %v152_v52  ;;  %v163_v22 = vshll.u32 %v11615_v37, %v151_v26 }
  0x2c   : > { %v164_v23 = vshrl.u32 %v11630_v39, %v152_v52  ;;  %v166_v25 = vshll.u32 %v11630_v39, %v151_v26  ;;  %v167_v30 = vshrl.u32 %v11632_v47, %v152_v52  ;;  %v400_v32 = vmul.u32 %v7807_v24, %v384_v9 }
  0x2d   : > { %v162_v34 = vor.u32 %v161_v21, %v160_v20  ;;  %vm169_vm7 = vcmp.lt.s32.totalorder %v7822_v41, 1  ;;  %vm170_vm8 = vcmp.lt.s32.totalorder %v7822_v41, 2  ;;  %vm402_vm9 = vc.u32 %v7844_v14, %v7847_v15 }
  0x2e   : > { %v403_v36 = vadd.s32 1, %v7848_v16  ;;  %v165_v38 = vor.u32 %v164_v23, %v163_v22  ;;  %vm171_vm10 = vcmp.lt.s32.totalorder %v7822_v41, 3  ;;  %v168_v40 = vor.u32 %v167_v30, %v166_v25 }
  0x2f   : > { %vm172_vm11 = vcmp.lt.s32.totalorder %v7822_v41, 4  ;;  %v173_v26 = vsel %vm169_vm7, %v153_v7, %v156_v17  ;;  %v177_v42 = vsel %vm169_vm7, %v156_v17, %v159_v18  ;;  %v181_v45 = vsel %vm169_vm7, %v159_v18, %v162_v34 }
  0x30   : > { %v404_v24 = vsel %vm402_vm9, %v403_v36, %v7848_v16  ;;  %v174_v43 = vsel %vm172_vm11, %v162_v34, 2102212464  ;;  %v178_v44 = vsel %vm172_vm11, %v165_v38, 920167782  ;;  %v182_v50 = vsel %vm172_vm11, %v168_v40, 1326507024 }
  0x31   : > { %v405_v46 = vadd.s32 %v404_v24, %v400_v32  ;;  %v175_v48 = vsel %vm171_vm10, %v159_v18, %v174_v43  ;;  %v179_v49 = vsel %vm171_vm10, %v162_v34, %v178_v44  ;;  %v183_v53 = vsel %vm171_vm10, %v165_v38, %v182_v50 }
  0x32   : > { %v176_v51 = vsel %vm170_vm8, %v173_v26, %v175_v48  ;;  %v180_v52 = vsel %vm170_vm8, %v177_v42, %v179_v49  ;;  %v461_v54 = vsel %vm460_vm6, %v7815_v29, 0  ;;  %v184_v56 = vsel %vm170_vm8, %v181_v45, %v183_v53 }
  0x33   : > { %v406_v55 = vadd.s32 536870912, %v405_v46  ;;  %v7876_v57 = vmul.u32.u64.low %v7809_v27, %v180_v52  ;;  %v7877_v58 = vmul.u32.u64.high %v7809_v27, %v180_v52, %v7876_v57  ;;  %v457_v62 = vor.u32 8388608, %v7813_v28 }
  0x34   : > { %v7884_v60 = vmul.u32.u64.low %v7809_v27, %v184_v56  ;;  %v7885_v61 = vmul.u32.u64.high %v7809_v27, %v184_v56, %v7884_v60  ;;  %v241_v63 = vand.u32 2147483647, %v7881_v59  ;;  %v463_v3 = vand.u32 31, %v461_v54 }
  0x35   : > { %v407_v29 = vshrl.u32 %v406_v55, 30  ;;  %v192_v41 = vmul.u32 %v7809_v27, %v176_v51  ;;  %v195_v7 = vadd.s32 1, %v7877_v58  ;;  %v7894_v9 = vshll.u32 %v457_v62, 8 }
  0x36   : > { %v464_v8 = vsub.s32 32, %v463_v3  ;;  %vm194_vm13 = vc.u32 %v7885_v61, %v7876_v57  ;;  %v244_v10 = vand.u32 2139095040, %v7881_v59  ;;  %v7899_v28 = vand.u32 8388607, %v241_v63 }
  0x37   : > { %v408_v6 = vshll.u32 %v407_v29, 30  ;;  %v431_v12 = vsub.s32 4, %v407_v29  ;;  %v196_v13 = vsel %vm194_vm13, %v195_v7, %v7877_v58  ;;  %v462_v16 = vshrl.u32 %v461_v54, 5 }
  0x38   : > { %v197_v17 = vadd.s32 %v196_v13, %v192_v41  ;;  %v466_v18 = vshll.u32 %v11644_v31, %v463_v3  ;;  %v467_v20 = vshrl.u32 %v11617_v33, %v464_v8  ;;  %v469_v21 = vshll.u32 %v11617_v33, %v463_v3 }
  0x39   : > { %v7907_v11 = vsub.s32 %v405_v46, %v408_v6  ;;  %v470_v2 = vshrl.u32 %v11605_v35, %v464_v8  ;;  %v472_v23 = vshll.u32 %v11605_v35, %v463_v3  ;;  %v473_v25 = vshrl.u32 %v11615_v37, %v464_v8 }
  0x3a   : > { %v401_v30 = vadd.s32 %v7847_v15, %v7844_v14  ;;  %v198_v32 = vadd.s32 536870912, %v197_v17  ;;  %v475_v34 = vshll.u32 %v11615_v37, %v463_v3  ;;  %v245_v36 = vshrl.u32 %v244_v10, 23 }
  0x3b   : > { %v411_v22 = vsub.s32 0, %v7907_v11  ;;  %v432_v40 = vsel %vm347_vm12, %v431_v12, %v407_v29  ;;  %v476_v26 = vshrl.u32 %v11630_v39, %v464_v8  ;;  %vm484_vm15 = vcmp.lt.s32.totalorder %v462_v16, 4 }
  0x3c   : > { %v7924_v42 = vshrl.u32 %v198_v32, 30  ;;  %v465_v24 = vshrl.u32 %v11644_v31, %v464_v8  ;;  %v478_v43 = vshll.u32 %v11630_v39, %v463_v3  ;;  %v479_v14 = vshrl.u32 %v11632_v47, %v464_v8 }
  0x3d   : > { %v7187_v38 = vmin.u32 %v411_v22, %v7907_v11  ;;  %v468_v44 = vor.u32 %v467_v20, %v466_v18  ;;  %v471_v45 = vor.u32 %v470_v2, %v469_v21  ;;  %v474_v46 = vor.u32 %v473_v25, %v472_v23 }
  0x3e   : > { %v200_v48 = vshll.u32 %v7924_v42, 30  ;;  %v477_v49 = vor.u32 %v476_v26, %v475_v34  ;;  %vm481_vm0 = vcmp.lt.s32.totalorder %v462_v16, 1  ;;  %vm483_vm1 = vcmp.lt.s32.totalorder %v462_v16, 3 }
  0x3f   : > { %v413_v15 = vclz %v7187_v38  ;;  %v480_v51 = vor.u32 %v479_v14, %v478_v43  ;;  %v486_v52 = vsel %vm484_vm15, %v474_v46, 2102212464  ;;  %v7182_v53 = vadd.s32 4294967169, %v245_v36 }
  0x40   : > { %v7933_v54 = vsel %vm7903_vm14, 0, %v432_v40  ;;  %v7935_v55 = vsub.s32 %v197_v17, %v200_v48  ;;  %vm482_vm2 = vcmp.lt.s32.totalorder %v462_v16, 2  ;;  %v490_v56 = vsel %vm484_vm15, %v477_v49, 920167782 }
  0x41   : > { %v7188_v50 = vadd.s32 4294967294, %v413_v15  ;;  %v485_v58 = vsel %vm481_vm0, %v465_v24, %v468_v44  ;;  %v489_v60 = vsel %vm481_vm0, %v468_v44, %v471_v45  ;;  %v491_v62 = vsel %vm483_vm1, %v474_v46, %v490_v56 }
  0x42   : > { %v203_v3 = vsub.s32 0, %v7935_v55  ;;  %v487_v41 = vsel %vm483_vm1, %v471_v45, %v486_v52  ;;  %v493_v6 = vsel %vm481_vm0, %v471_v45, %v474_v46  ;;  %v494_v12 = vsel %vm484_vm15, %v480_v51, 1326507024 }
  0x43   : > { %vm7189_vm3 = vcmp.lt.s32.totalorder %v7188_v50, 0  ;;  %vm139_vm4 = vcmp.lt.s32.totalorder %v7792_v1, 0  ;;  %v492_v17 = vsel %vm482_vm2, %v489_v60, %v491_v62  ;;  %v495_v18 = vsel %vm483_vm1, %v477_v49, %v494_v12 }
  0x44   : > { %v416_v29 = vsel %vm7189_vm3, 0, %v7188_v50  ;;  %v7179_v13 = vmin.u32 %v203_v3, %v7935_v55  ;;  %v496_v22 = vsel %vm482_vm2, %v493_v6, %v495_v18  ;;  %v251_v2 = vadd.s32 1, %v7182_v53 }
  0x45   : > { %v417_v7 = vsub.s32 32, %v416_v29  ;;  %v418_v8 = vshll.u32 %v7907_v11, %v416_v29  ;;  %v421_v10 = vsub.s32 4294967266, %v416_v29  ;;  %v438_v23 = vadd.s32 3, %v7933_v54 }
  0x46   : > { %v205_v25 = vclz %v7179_v13  ;;  %v488_v11 = vsel %vm482_vm2, %v485_v58, %v487_v41  ;;  %v249_v32 = vor.u32 8388608, %v7899_v28  ;;  %vm252_vm5 = vcmp.gt.s32.totalorder %v251_v2, 0 }
  0x47   : > { %v419_v20 = vshrl.u32 %v401_v30, %v417_v7  ;;  %v422_v21 = vadd.s32 127, %v421_v10  ;;  %v7955_v38 = vmul.u32.u64.low %v7894_v9, %v496_v22  ;;  %v7956_v40 = vmul.u32.u64.high %v7894_v9, %v496_v22, %v7955_v38 }
  0x48   : > { %v7180_v26 = vadd.s32 4294967294, %v205_v25  ;;  %v7959_v30 = vmul.u32.u64.low %v7894_v9, %v492_v17  ;;  %v7960_v24 = vmul.u32.u64.high %v7894_v9, %v492_v17, %v7959_v30  ;;  %v223_v16 = vsub.s32 4, %v7924_v42 }
  0x49   : > { %v420_v34 = vor.u32 %v419_v20, %v418_v8  ;;  %v423_v36 = vshll.u32 %v422_v21, 23  ;;  %v253_v15 = vsel %vm252_vm5, %v251_v2, 0  ;;  %v7964_v44 = vand.u32 3, %v438_v23 }
  0x4a   : > { %v193_v45 = vadd.s32 %v7876_v57, %v7885_v61  ;;  %vm7181_vm6 = vcmp.lt.s32.totalorder %v7180_v26, 0  ;;  %v255_v46 = vand.u32 31, %v253_v15  ;;  %v504_v50 = vmul.u32 %v7894_v9, %v488_v11 }
  0x4b   : > { %v424_v43 = vor.u32 4788187, %v423_v36  ;;  %v427_v14 = vcvt.s32.f32 %v420_v34  ;;  %v208_v49 = vsel %vm7181_vm6, 0, %v7180_v26  ;;  %vm506_vm7 = vc.u32 %v7956_v40, %v7959_v30 }
  0x4c   : > { %vm7973_vm8 = vcmp.le.f32.partialorder %v137_v5, 0.7853982  ;;  %v209_v52 = vsub.s32 32, %v208_v49  ;;  %v210_v53 = vshll.u32 %v7935_v55, %v208_v49  ;;  %v213_v56 = vsub.s32 4294967266, %v208_v49 }
  0x4d   : > { %v425_v48 = vand.u32 2147483647, %v424_v43  ;;  %v507_v57 = vadd.s32 1, %v7960_v24  ;;  %v224_v9 = vsel %vm139_vm4, %v223_v16, %v7924_v42  ;;  %v7982_v58 = vshrl.u32 %v253_v15, 5 }
  0x4e   : > { %v256_v60 = vsub.s32 32, %v255_v46  ;;  %v211_v62 = vshrl.u32 %v193_v45, %v209_v52  ;;  %v214_v29 = vadd.s32 127, %v213_v56  ;;  %v258_v3 = vshll.u32 %v11644_v31, %v255_v46 }
  0x4f   : > { %v428_v61 = vmul.f32 %v427_v14, %v425_v48  ;;  %v508_v5 = vsel %vm506_vm7, %v507_v57, %v7960_v24  ;;  %v261_v7 = vshll.u32 %v11617_v33, %v255_v46  ;;  %v264_v42 = vshll.u32 %v11605_v35, %v255_v46 }
  0x50   : > { %v509_v6 = vadd.s32 %v508_v5, %v504_v50  ;;  %v259_v55 = vshrl.u32 %v11617_v33, %v256_v60  ;;  %v212_v8 = vor.u32 %v211_v62, %v210_v53  ;;  %v215_v10 = vshll.u32 %v214_v29, 23 }
  0x51   : > { %v429_v41 = vxor.u32 2147483648, %v428_v61  ;;  %v262_v12 = vshrl.u32 %v11605_v35, %v256_v60  ;;  %v265_v18 = vshrl.u32 %v11615_v37, %v256_v60  ;;  %v267_v20 = vshll.u32 %v11615_v37, %v255_v46 }
  0x52   : > { %v510_v17 = vadd.s32 536870912, %v509_v6  ;;  %v216_v22 = vor.u32 4788187, %v215_v10  ;;  %v219_v2 = vcvt.s32.f32 %v212_v8  ;;  %v260_v23 = vor.u32 %v259_v55, %v258_v3 }
  0x53   : > { %v430_v13 = vsel %vm347_vm12, %v429_v41, %v428_v61  ;;  %v263_v11 = vor.u32 %v262_v12, %v261_v7  ;;  %v268_v34 = vshrl.u32 %v11630_v39, %v256_v60  ;;  %v270_v38 = vshll.u32 %v11630_v39, %v255_v46 }
  0x54   : > { %v433_v21 = vsel %vm7903_vm14, %v7789_v0, %v430_v13  ;;  %v7997_v25 = vshrl.u32 %v510_v17, 30  ;;  %v217_v36 = vand.u32 2147483647, %v216_v22  ;;  %v271_v26 = vshrl.u32 %v11632_v47, %v256_v60  ;;  %v8076_v22 = vld [vmem:[%s7786_s12 + $0x28] sm:$0xff] }
  0x55   : > { %7586 = vcosq.f32 %v433_v21  ;;  %v8004_v24 = vsel %vm7973_vm8, 0, %v224_v9  ;;  %v269_v43 = vor.u32 %v268_v34, %v267_v20  ;;  %vm273_vm9 = vcmp.lt.s32.totalorder %v7982_v58, 1 }
  0x56   : > { %7588 = vsinq.f32 %v433_v21  ;;  %v512_v27 = vshll.u32 %v7997_v25, 30  ;;  %v220_v14 = vmul.f32 %v219_v2, %v217_v36  ;;  %v257_v16 = vshrl.u32 %v11644_v31, %v256_v60 }
  0x57   : > { %v266_v15 = vor.u32 %v265_v18, %v264_v42  ;;  %v8011_v45 = vshll.u32 %v249_v32, 8  ;;  %vm440_vm10 = vcmp.lt.s32.totalorder %v7964_v44, 2  ;;  %v272_v48 = vor.u32 %v271_v26, %v270_v38 }
  0x58   : > { %v8014_v46 = vsub.s32 %v509_v6, %v512_v27  ;;  %vm275_vm11 = vcmp.lt.s32.totalorder %v7982_v58, 3  ;;  %vm276_vm12 = vcmp.lt.s32.totalorder %v7982_v58, 4  ;;  %vm11608_vm13 = vweird.f32 %v7789_v0 }
  0x59   : > { %v221_v49 = vxor.u32 2147483648, %v220_v14  ;;  %vm451_vm14 = vcmp.lt.s32.totalorder %v7797_v4, 0  ;;  %vm274_vm15 = vcmp.lt.s32.totalorder %v7982_v58, 2  ;;  %v278_v28 = vsel %vm276_vm12, %v266_v15, 2102212464 }
  0x5a   : > { %v281_v32 = vsel %vm273_vm9, %v260_v23, %v263_v11  ;;  %vm441_vm0 = vcmp.eq.s32.totalorder %v7964_v44, 0  ;;  %v230_v50 = vadd.s32 3, %v8004_v24  ;;  %v515_v52 = vsub.s32 0, %v8014_v46 }
  0x5b   : > { %v282_v53 = vsel %vm276_vm12, %v269_v43, 920167782  ;;  %v222_v56 = vsel %vm139_vm4, %v221_v49, %v220_v14  ;;  %v277_v57 = vsel %vm273_vm9, %v257_v16, %v260_v23  ;;  %v279_v61 = vsel %vm275_vm11, %v263_v11, %v278_v28 }
  0x5c   : > { %v283_v9 = vsel %vm275_vm11, %v266_v15, %v282_v53  ;;  %v225_v60 = vsel %vm7973_vm8, %v7792_v1, %v222_v56  ;;  %vm8043_vm1 = vcmp.le.f32.partialorder %v449_v19, 0.7853982  ;;  %v7191_v29 = vmin.u32 %v515_v52, %v8014_v46  ;;  %v8116_v52 = vld [vmem:[%s7786_s12 + $0x20] sm:$0xff] }
  0x5d   : > { %v284_v5 = vsel %vm274_vm15, %v281_v32, %v283_v9  ;;  %v285_v3 = vsel %vm273_vm9, %v263_v11, %v266_v15  ;;  %7590 = vcosq.f32 %v225_v60  ;;  %v286_v41 = vsel %vm276_vm12, %v272_v48, 1326507024 }
  0x5e   : > { %v8055_v51 = vmul.u32.u64.low %v8011_v45, %v284_v5  ;;  %v8056_v6 = vmul.u32.u64.high %v8011_v45, %v284_v5, %v8055_v51  ;;  %vm444_vm2 = vcmp.eq.s32.totalorder %v7964_v44, 2  ;;  %7592 = vsinq.f32 %v225_v60 }
  0x5f   : > { %v8059_v19 = vpop.eup %7586  ;;  %v517_v55 = vclz %v7191_v29  ;;  %v535_v7 = vsub.s32 4, %v7997_v25  ;;  %v231_v12 = vand.u32 3, %v230_v50  ;;  %v505_v42 = vadd.s32 %v7959_v30, %v7956_v40 }
  0x60   : > { %v8063_v8 = vpop.eup %7588  ;;  %v11597_v10 = vxor.u32 2147483648, %v8059_v19  ;;  %v287_v13 = vsel %vm275_vm11, %v269_v43, %v286_v41  ;;  %v280_v20 = vsel %vm274_vm15, %v277_v57, %v279_v61  ;;  %v657_v23 = vand.u32 2147483647, %v8076_v22 }
  0x61   : > { %v11598_v17 = vxor.u32 2147483648, %v8063_v8  ;;  %v7192_v18 = vadd.s32 4294967294, %v517_v55  ;;  %v288_v21 = vsel %vm274_vm15, %v285_v3, %v287_v13  ;;  %vm229_vm3 = vweird.f32 %v7792_v1 }
  0x62   : > { %v446_v2 = vsel %vm444_vm2, %v11597_v10, %v8063_v8  ;;  %v8082_v40 = vmul.u32.u64.low %v8011_v45, %v288_v21  ;;  %v8083_v30 = vmul.u32.u64.high %v8011_v45, %v288_v21, %v8082_v40  ;;  %v536_v58 = vsel %vm451_vm14, %v535_v7, %v7997_v25 }
  0x63   : > { %v443_v11 = vsel %vm441_vm0, %v8059_v19, %v11598_v17  ;;  %vm7193_vm4 = vcmp.lt.s32.totalorder %v7192_v18, 0  ;;  %v299_v34 = vadd.s32 1, %v8056_v6  ;;  %v296_v26 = vmul.u32 %v8011_v45, %v280_v20 }
  0x64   : > { %v447_v36 = vsel %vm440_vm10, %v443_v11, %v446_v2  ;;  %v520_v38 = vsel %vm7193_vm4, 0, %v7192_v18  ;;  %v660_v27 = vand.u32 2139095040, %v8076_v22  ;;  %v8106_v44 = vsel %vm8043_vm1, 0, %v536_v58 }
  0x65   : > { %v448_v43 = vsel %vm11608_vm13, nan, %v447_v36  ;;  %v521_v14 = vsub.s32 32, %v520_v38  ;;  %v522_v16 = vshll.u32 %v8014_v46, %v520_v38  ;;  %v525_v15 = vsub.s32 4294967266, %v520_v38 }
  0x66   : > { %981 = vrot.lane.b32.xlu1 %v448_v43, %s7752_s13  ;;  %vm298_vm5 = vc.u32 %v8083_v30, %v8055_v51  ;;  %v661_v25 = vshrl.u32 %v660_v27, 23  ;;  %v664_v45 = vand.u32 8388607, %v657_v23  ;;  %vm232_vm6 = vcmp.lt.s32.totalorder %v231_v12, 2 }
  0x67   : > { %v523_v48 = vshrl.u32 %v505_v42, %v521_v14  ;;  %v526_v49 = vadd.s32 127, %v525_v15  ;;  %v300_v46 = vsel %vm298_vm5, %v299_v34, %v8056_v6  ;;  %v8113_v28 = vpop.eup %7590  ;;  %vm233_vm7 = vcmp.eq.s32.totalorder %v231_v12, 0 }
  0x68   : > { %vm236_vm8 = vcmp.eq.s32.totalorder %v231_v12, 2  ;;  %v301_v32 = vadd.s32 %v300_v46, %v296_v26  ;;  %v7198_v50 = vadd.s32 4294967169, %v661_v25  ;;  %v8118_v53 = vpop.eup %7592  ;;  %v11601_v56 = vxor.u32 2147483648, %v8113_v28 }
  0x69   : > { %v524_v57 = vor.u32 %v523_v48, %v522_v16  ;;  %v527_v61 = vshll.u32 %v526_v49, 23  ;;  %v542_v9 = vadd.s32 3, %v8106_v44  ;;  %v11602_v60 = vxor.u32 2147483648, %v8118_v53 }
  0x6a   : > { %v302_v29 = vadd.s32 536870912, %v301_v32  ;;  %v665_v5 = vor.u32 8388608, %v664_v45  ;;  %v667_v3 = vadd.s32 1, %v7198_v50  ;;  %v238_v41 = vsel %vm236_vm8, %v11601_v56, %v8118_v53 }
  0x6b   : > { %v528_v6 = vor.u32 4788187, %v527_v61  ;;  %v531_v55 = vcvt.s32.f32 %v524_v57  ;;  %v556_v7 = vand.u32 2139095040, %v8116_v52  ;;  %v235_v42 = vsel %vm233_vm7, %v8113_v28, %v11602_v60 }
  0x6c   : > { %v303_v13 = vshrl.u32 %v302_v29, 30  ;;  %vm668_vm9 = vcmp.gt.s32.totalorder %v667_v3, 0  ;;  %v553_v18 = vand.u32 2147483647, %v8116_v52  ;;  %v239_v20 = vsel %vm232_vm6, %v235_v42, %v238_v41 }
  0x6d   : > { %v529_v21 = vand.u32 2147483647, %v528_v6  ;;  %v669_v2 = vsel %vm668_vm9, %v667_v3, 0  ;;  %v240_v40 = vsel %vm229_vm3, nan, %v239_v20  ;;  %v557_v58 = vshrl.u32 %v556_v7, 23 }
  0x6e   : > { %v304_v11 = vshll.u32 %v303_v13, 30  ;;  %977 = vrot.lane.b32.xlu0 %v240_v40, %s7752_s13  ;;  %v8136_v36 = vand.u32 3, %v542_v9  ;;  %vm243_vm10 = vcmp.lt.s32.totalorder %v7881_v59, 0  ;;  %v671_v38 = vand.u32 31, %v669_v2 }
  0x6f   : > { %v532_v34 = vmul.f32 %v531_v55, %v529_v21  ;;  %v297_v26 = vadd.s32 %v8055_v51, %v8083_v30  ;;  %v8143_v27 = vshll.u32 %v665_v5, 8  ;;  %v8147_v43 = vand.u32 8388607, %v553_v18 }
  0x70   : > { %v8141_v12 = vsub.s32 %v301_v32, %v304_v11  ;;  %v327_v16 = vsub.s32 4, %v303_v13  ;;  %v8149_v15 = vshrl.u32 %v669_v2, 5  ;;  %v672_v25 = vsub.s32 32, %v671_v38 }
  0x71   : > { %v533_v14 = vxor.u32 2147483648, %v532_v34  ;;  %v674_v48 = vshll.u32 %v11644_v31, %v671_v38  ;;  %v677_v49 = vshll.u32 %v11617_v33, %v671_v38  ;;  %v7194_v51 = vadd.s32 4294967169, %v557_v58 }
  0x72   : > { %v307_v45 = vsub.s32 0, %v8141_v12  ;;  %v675_v46 = vshrl.u32 %v11617_v33, %v672_v25  ;;  %v678_v32 = vshrl.u32 %v11605_v35, %v672_v25  ;;  %v680_v50 = vshll.u32 %v11605_v35, %v671_v38 }
  0x73   : > { %v534_v30 = vsel %vm451_vm14, %v533_v14, %v532_v34  ;;  %v681_v9 = vshrl.u32 %v11615_v37, %v672_v25  ;;  %v561_v29 = vor.u32 8388608, %v8147_v43  ;;  %v328_v5 = vsel %vm243_vm10, %v327_v16, %v303_v13 }
  0x74   : > { %v537_v57 = vsel %vm8043_vm1, %v7797_v4, %v534_v30  ;;  %v7183_v61 = vmin.u32 %v307_v45, %v8141_v12  ;;  %v673_v3 = vshrl.u32 %v11644_v31, %v672_v25  ;;  %v683_v41 = vshll.u32 %v11615_v37, %v671_v38 }
  0x75   : > { %7594 = vcosq.f32 %v537_v57  ;;  %vm8171_vm11 = vcmp.le.f32.partialorder %v241_v63, 0.7853982  ;;  %v676_v55 = vor.u32 %v675_v46, %v674_v48  ;;  %v679_v7 = vor.u32 %v678_v32, %v677_v49 }
  0x76   : > { %7596 = vsinq.f32 %v537_v57  ;;  %v309_v6 = vclz %v7183_v61  ;;  %vm548_vm12 = vcmp.eq.s32.totalorder %v8136_v36, 2  ;;  %v682_v42 = vor.u32 %v681_v9, %v680_v50 }
  0x77   : > { %v684_v20 = vshrl.u32 %v11630_v39, %v672_v25  ;;  %v686_v13 = vshll.u32 %v11630_v39, %v671_v38  ;;  %vm689_vm14 = vcmp.lt.s32.totalorder %v8149_v15, 1  ;;  %vm545_vm15 = vcmp.eq.s32.totalorder %v8136_v36, 0 }
  0x78   : > { %v7184_v21 = vadd.s32 4294967294, %v309_v6  ;;  %v687_v63 = vshrl.u32 %v11632_v47, %v672_v25  ;;  %vm690_vm0 = vcmp.lt.s32.totalorder %v8149_v15, 2  ;;  %vm692_vm1 = vcmp.lt.s32.totalorder %v8149_v15, 4 }
  0x79   : > { %vm544_vm2 = vcmp.lt.s32.totalorder %v8136_v36, 2  ;;  %v685_v2 = vor.u32 %v684_v20, %v683_v41  ;;  %vm691_vm4 = vcmp.lt.s32.totalorder %v8149_v15, 3  ;;  %v693_v40 = vsel %vm689_vm14, %v673_v3, %v676_v55 }
  0x7a   : > { %v694_v11 = vsel %vm692_vm1, %v682_v42, 2102212464  ;;  %vm541_vm5 = vweird.f32 %v7797_v4  ;;  %vm7185_vm6 = vcmp.lt.s32.totalorder %v7184_v21, 0  ;;  %v688_v58 = vor.u32 %v687_v63, %v686_v13 }
  0x7b   : > { %v695_v34 = vsel %vm691_vm4, %v679_v7, %v694_v11  ;;  %v697_v38 = vsel %vm689_vm14, %v676_v55, %v679_v7  ;;  %v312_v14 = vsel %vm7185_vm6, 0, %v7184_v21  ;;  %v698_v16 = vsel %vm692_vm1, %v685_v2, 920167782 }
  0x7c   : > { %v701_v25 = vsel %vm689_vm14, %v679_v7, %v682_v42  ;;  %v563_v45 = vadd.s32 1, %v7194_v51  ;;  %v313_v48 = vsub.s32 32, %v312_v14  ;;  %v314_v49 = vshll.u32 %v8141_v12, %v312_v14 }
  0x7d   : > { %v317_v30 = vsub.s32 4294967266, %v312_v14  ;;  %v699_v46 = vsel %vm691_vm4, %v682_v42, %v698_v16  ;;  %v696_v32 = vsel %vm690_vm0, %v693_v40, %v695_v34  ;;  %v702_v57 = vsel %vm692_vm1, %v688_v58, 1326507024 }
  0x7e   : > { %v700_v50 = vsel %vm690_vm0, %v697_v38, %v699_v46  ;;  %vm564_vm7 = vcmp.gt.s32.totalorder %v563_v45, 0  ;;  %v315_v61 = vshrl.u32 %v297_v26, %v313_v48  ;;  %v703_v51 = vsel %vm691_vm4, %v685_v2, %v702_v57 }
  0x7f   : > { %v318_v9 = vadd.s32 127, %v317_v30  ;;  %v565_v12 = vsel %vm564_vm7, %v563_v45, 0  ;;  %v8209_v3 = vpop.eup %7594  ;;  %v8213_v41 = vsel %vm8171_vm11, 0, %v328_v5  ;;  %v704_v6 = vsel %vm690_vm0, %v701_v25, %v703_v51 }
  0x80   : > { %v8218_v55 = vmul.u32.u64.low %v8143_v27, %v700_v50  ;;  %v8219_v7 = vmul.u32.u64.high %v8143_v27, %v700_v50, %v8218_v55  ;;  %v8222_v26 = vpop.eup %7596  ;;  %v11599_v42 = vxor.u32 2147483648, %v8209_v3  ;;  %v316_v20 = vor.u32 %v315_v61, %v314_v49 }
  0x81   : > { %v319_v13 = vshll.u32 %v318_v9, 23  ;;  %v567_v21 = vand.u32 31, %v565_v12  ;;  %v11600_v63 = vxor.u32 2147483648, %v8222_v26  ;;  %v712_v15 = vmul.u32 %v8143_v27, %v696_v32 }
  0x82   : > { %v8227_v5 = vmul.u32.u64.low %v8143_v27, %v704_v6  ;;  %v8228_v2 = vmul.u32.u64.high %v8143_v27, %v704_v6, %v8227_v5  ;;  %v550_v40 = vsel %vm548_vm12, %v11599_v42, %v8222_v26  ;;  %v323_v58 = vcvt.s32.f32 %v316_v20 }
  0x83   : > { %v320_v11 = vor.u32 4788187, %v319_v13  ;;  %v568_v34 = vsub.s32 32, %v567_v21  ;;  %v547_v38 = vsel %vm545_vm15, %v8209_v3, %v11600_v63  ;;  %v715_v14 = vadd.s32 1, %v8219_v7 }
  0x84   : > { %v570_v16 = vshll.u32 %v11644_v31, %v567_v21  ;;  %v573_v27 = vshll.u32 %v11617_v33, %v567_v21  ;;  %v551_v25 = vsel %vm544_vm2, %v547_v38, %v550_v40  ;;  %v334_v48 = vadd.s32 3, %v8213_v41 }
  0x85   : > { %v321_v45 = vand.u32 2147483647, %v320_v11  ;;  %v571_v49 = vshrl.u32 %v11617_v33, %v568_v34  ;;  %v552_v30 = vsel %vm541_vm5, nan, %v551_v25  ;;  %vm714_vm8 = vc.u32 %v8228_v2, %v8218_v55 }
  0x86   : > { %v566_v46 = vshrl.u32 %v565_v12, 5  ;;  %v574_v32 = vshrl.u32 %v11605_v35, %v568_v34  ;;  %983 = vrot.lane.b32.xlu1 %v552_v30, %s7752_s13  ;;  %v716_v36 = vsel %vm714_vm8, %v715_v14, %v8219_v7  ;;  %v576_v61 = vshll.u32 %v11605_v35, %v567_v21 }
  0x87   : > { %v324_v50 = vmul.f32 %v323_v58, %v321_v45  ;;  %v572_v57 = vor.u32 %v571_v49, %v570_v16  ;;  %v717_v9 = vadd.s32 %v716_v36, %v712_v15  ;;  %v577_v6 = vshrl.u32 %v11615_v37, %v568_v34 }
  0x88   : > { %v575_v51 = vor.u32 %v574_v32, %v573_v27  ;;  %v579_v20 = vshll.u32 %v11615_v37, %v567_v21  ;;  %v580_v5 = vshrl.u32 %v11630_v39, %v568_v34  ;;  %v582_v12 = vshll.u32 %v11630_v39, %v567_v21 }
  0x89   : > { %v325_v13 = vxor.u32 2147483648, %v324_v50  ;;  %v583_v40 = vshrl.u32 %v11632_v47, %v568_v34  ;;  %v718_v11 = vadd.s32 536870912, %v717_v9  ;;  %v569_v58 = vshrl.u32 %v11644_v31, %v568_v34 }
  0x8a   : > { %v578_v7 = vor.u32 %v577_v6, %v576_v61  ;;  %vm585_vm9 = vcmp.lt.s32.totalorder %v566_v46, 1  ;;  %v581_v38 = vor.u32 %v580_v5, %v579_v20  ;;  %vm588_vm12 = vcmp.lt.s32.totalorder %v566_v46, 4 }
  0x8b   : > { %v326_v15 = vsel %vm243_vm10, %v325_v13, %v324_v50  ;;  %v584_v14 = vor.u32 %v583_v40, %v582_v12  ;;  %v719_v27 = vshrl.u32 %v718_v11, 30  ;;  %vm587_vm14 = vcmp.lt.s32.totalorder %v566_v46, 3  ;;  %v8283_v11 = vld [vmem:[%s7786_s12 + $0x38] sm:$0xff] }
  0x8c   : > { %v329_v16 = vsel %vm8171_vm11, %v7881_v59, %v326_v15  ;;  %v590_v21 = vsel %vm588_vm12, %v578_v7, 2102212464  ;;  %vm586_vm15 = vcmp.lt.s32.totalorder %v566_v46, 2  ;;  %v593_v25 = vsel %vm585_vm9, %v572_v57, %v575_v51 }
  0x8d   : > { %7598 = vcosq.f32 %v329_v16  ;;  %v594_v34 = vsel %vm588_vm12, %v581_v38, 920167782  ;;  %v720_v45 = vshll.u32 %v719_v27, 30  ;;  %v589_v49 = vsel %vm585_vm9, %v569_v58, %v572_v57 }
  0x8e   : > { %7600 = vsinq.f32 %v329_v16  ;;  %v591_v30 = vsel %vm587_vm14, %v575_v51, %v590_v21  ;;  %v595_v32 = vsel %vm587_vm14, %v578_v7, %v594_v34  ;;  %v597_v62 = vsel %vm585_vm9, %v575_v51, %v578_v7 }
  0x8f   : > { %v598_v50 = vsel %vm588_vm12, %v584_v14, 1326507024  ;;  %v601_v36 = vshll.u32 %v561_v29, 8  ;;  %v8274_v61 = vsub.s32 %v717_v9, %v720_v45  ;;  %v743_v6 = vsub.s32 4, %v719_v27 }
  0x90   : > { %v596_v20 = vsel %vm586_vm15, %v593_v25, %v595_v32  ;;  %v599_v13 = vsel %vm587_vm14, %v581_v38, %v598_v50  ;;  %v335_v5 = vand.u32 3, %v334_v48  ;;  %v592_v43 = vsel %vm586_vm15, %v589_v49, %v591_v30 }
  0x91   : > { %v600_v57 = vsel %vm586_vm15, %v597_v62, %v599_v13  ;;  %v8279_v12 = vmul.u32.u64.low %v601_v36, %v596_v20  ;;  %v8280_v40 = vmul.u32.u64.high %v601_v36, %v596_v20, %v8279_v12  ;;  %v723_v51 = vsub.s32 0, %v8274_v61 }
  0x92   : > { %v8287_v29 = vmul.u32.u64.low %v601_v36, %v600_v57  ;;  %v8288_v9 = vmul.u32.u64.high %v601_v36, %v600_v57, %v8287_v29  ;;  %vm659_vm10 = vcmp.lt.s32.totalorder %v8076_v22, 0  ;;  %v868_v7 = vand.u32 2139095040, %v8283_v11 }
  0x93   : > { %v7199_v58 = vmin.u32 %v723_v51, %v8274_v61  ;;  %v744_v48 = vsel %vm659_vm10, %v743_v6, %v719_v27  ;;  %v608_v15 = vmul.u32 %v601_v36, %v592_v43  ;;  %v611_v38 = vadd.s32 1, %v8280_v40  ;;  %v8328_v43 = vld [vmem:[%s7786_s12 + $0x30] sm:$0xff] }
  0x94   : > { %v11604_v14 = vand.u32 2147483647, %v8283_v11  ;;  %vm333_vm11 = vweird.f32 %v7881_v59  ;;  %vm336_vm0 = vcmp.lt.s32.totalorder %v335_v5, 2  ;;  %vm8300_vm1 = vcmp.le.f32.partialorder %v657_v23, 0.7853982 }
  0x95   : > { %v725_v16 = vclz %v7199_v58  ;;  %vm340_vm2 = vcmp.eq.s32.totalorder %v335_v5, 2  ;;  %v8308_v27 = vsel %vm8300_vm1, 0, %v744_v48  ;;  %vm610_vm4 = vc.u32 %v8288_v9, %v8279_v12 }
  0x96   : > { %v869_v25 = vshrl.u32 %v868_v7, 23  ;;  %vm337_vm6 = vcmp.eq.s32.totalorder %v335_v5, 0  ;;  %v612_v49 = vsel %vm610_vm4, %v611_v38, %v8280_v40  ;;  %v872_v50 = vand.u32 8388607, %v11604_v14 }
  0x97   : > { %v8304_v21 = vpop.eup %7598  ;;  %v7200_v45 = vadd.s32 4294967294, %v725_v16  ;;  %v613_v32 = vadd.s32 %v612_v49, %v608_v15  ;;  %v713_v6 = vadd.s32 %v8218_v55, %v8228_v2  ;;  %v750_v20 = vadd.s32 3, %v8308_v27 }
  0x98   : > { %v8311_v34 = vpop.eup %7600  ;;  %v11603_v23 = vxor.u32 2147483648, %v8304_v21  ;;  %v7206_v62 = vadd.s32 4294967169, %v869_v25  ;;  %v873_v15 = vor.u32 8388608, %v872_v50  ;;  %vm555_vm9 = vcmp.lt.s32.totalorder %v8116_v52, 0 }
  0x99   : > { %v338_v30 = vxor.u32 2147483648, %v8311_v34  ;;  %vm7201_vm7 = vcmp.lt.s32.totalorder %v7200_v45, 0  ;;  %v614_v40 = vadd.s32 536870912, %v613_v32 }
  0x9a   : > { %v342_v36 = vsel %vm340_vm2, %v11603_v23, %v8311_v34  ;;  %v728_v57 = vsel %vm7201_vm7, 0, %v7200_v45  ;;  %v875_v51 = vadd.s32 1, %v7206_v62  ;;  %v764_v45 = vand.u32 2139095040, %v8328_v43 }
  0x9b   : > { %v339_v13 = vsel %vm337_vm6, %v8304_v21, %v338_v30  ;;  %v729_v58 = vsub.s32 32, %v728_v57  ;;  %v730_v48 = vshll.u32 %v8274_v61, %v728_v57  ;;  %v733_v7 = vsub.s32 4294967266, %v728_v57 }
  0x9c   : > { %v343_v29 = vsel %vm336_vm0, %v339_v13, %v342_v36  ;;  %v8334_v2 = vshrl.u32 %v614_v40, 30  ;;  %vm876_vm8 = vcmp.gt.s32.totalorder %v875_v51, 0  ;;  %v8339_v36 = vand.u32 3, %v750_v20 }
  0x9d   : > { %v344_v55 = vsel %vm333_vm11, nan, %v343_v29  ;;  %v731_v38 = vshrl.u32 %v713_v6, %v729_v58  ;;  %v734_v16 = vadd.s32 127, %v733_v7  ;;  %v877_v25 = vsel %vm876_vm8, %v875_v51, 0 }
  0x9e   : > { %979 = vrot.lane.b32.xlu0 %v344_v55, %s7752_s13  ;;  %v616_v5 = vshll.u32 %v8334_v2, 30  ;;  %v879_v49 = vand.u32 31, %v877_v25  ;;  %v609_v13 = vadd.s32 %v8279_v12, %v8288_v9  ;;  %v761_v40 = vand.u32 2147483647, %v8328_v43 }
  0x9f   : > { %v732_v62 = vor.u32 %v731_v38, %v730_v48  ;;  %v735_v61 = vshll.u32 %v734_v16, 23  ;;  %v8345_v58 = vshll.u32 %v873_v15, 8  ;;  %v765_v51 = vshrl.u32 %v764_v45, 23 }
  0xa0   : > { %v8342_v57 = vsub.s32 %v613_v32, %v616_v5  ;;  %v880_v50 = vsub.s32 32, %v879_v49  ;;  %v882_v55 = vshll.u32 %v11644_v31, %v879_v49  ;;  %v885_v20 = vshll.u32 %v11617_v33, %v879_v49 }
  0xa1   : > { %v736_v29 = vor.u32 4788187, %v735_v61  ;;  %v739_v6 = vcvt.s32.f32 %v732_v62  ;;  %v888_v9 = vshll.u32 %v11605_v35, %v879_v49  ;;  %v639_v16 = vsub.s32 4, %v8334_v2 }
  0xa2   : > { %v619_v7 = vsub.s32 0, %v8342_v57  ;;  %v883_v48 = vshrl.u32 %v11617_v33, %v880_v50  ;;  %v886_v12 = vshrl.u32 %v11605_v35, %v880_v50  ;;  %v889_v32 = vshrl.u32 %v11615_v37, %v880_v50 }
  0xa3   : > { %v737_v38 = vand.u32 2147483647, %v736_v29  ;;  %v878_v45 = vshrl.u32 %v877_v25, 5  ;;  %v891_v5 = vshll.u32 %v11615_v37, %v879_v49  ;;  %v881_v61 = vshrl.u32 %v11644_v31, %v880_v50 }
  0xa4   : > { %v7195_v15 = vmin.u32 %v619_v7, %v8342_v57  ;;  %v892_v29 = vshrl.u32 %v11630_v39, %v880_v50  ;;  %v7202_v10 = vadd.s32 4294967169, %v765_v51  ;;  %v884_v42 = vor.u32 %v883_v48, %v882_v55 }
  0xa5   : > { %v740_v62 = vmul.f32 %v739_v6, %v737_v38  ;;  %v887_v63 = vor.u32 %v886_v12, %v885_v20  ;;  %v890_v56 = vor.u32 %v889_v32, %v888_v9  ;;  %v894_v14 = vshll.u32 %v11630_v39, %v879_v49 }
  0xa6   : > { %v621_v17 = vclz %v7195_v15  ;;  %v893_v23 = vor.u32 %v892_v29, %v891_v5  ;;  %v895_v7 = vshrl.u32 %v11632_v47, %v880_v50  ;;  %vm897_vm12 = vcmp.lt.s32.totalorder %v878_v45, 1 }
  0xa7   : > { %v741_v60 = vxor.u32 2147483648, %v740_v62  ;;  %vm898_vm14 = vcmp.lt.s32.totalorder %v878_v45, 2  ;;  %vm899_vm15 = vcmp.lt.s32.totalorder %v878_v45, 3  ;;  %vm900_vm0 = vcmp.lt.s32.totalorder %v878_v45, 4 }
  0xa8   : > { %v7196_v35 = vadd.s32 4294967294, %v621_v17  ;;  %v896_v6 = vor.u32 %v895_v7, %v894_v14  ;;  %v901_v51 = vsel %vm897_vm12, %v881_v61, %v884_v42  ;;  %vm8370_vm2 = vcmp.le.f32.partialorder %v553_v18, 0.7853982 }
  0xa9   : > { %v742_v25 = vsel %vm659_vm10, %v741_v60, %v740_v62  ;;  %v902_v17 = vsel %vm900_vm0, %v890_v56, 2102212464  ;;  %v905_v50 = vsel %vm897_vm12, %v884_v42, %v887_v63  ;;  %v906_v48 = vsel %vm900_vm0, %v893_v23, 920167782 }
  0xaa   : > { %v745_v55 = vsel %vm8300_vm1, %v8076_v22, %v742_v25  ;;  %vm7197_vm4 = vcmp.lt.s32.totalorder %v7196_v35, 0  ;;  %v903_v14 = vsel %vm899_vm15, %v887_v63, %v902_v17  ;;  %v640_v18 = vsel %vm555_vm9, %v639_v16, %v8334_v2 }
  0xab   : > { %7602 = vcosq.f32 %v745_v55  ;;  %v624_v60 = vsel %vm7197_vm4, 0, %v7196_v35  ;;  %v907_v12 = vsel %vm899_vm15, %v890_v56, %v906_v48  ;;  %v909_v9 = vsel %vm897_vm12, %v887_v63, %v890_v56 }
  0xac   : > { %7604 = vsinq.f32 %v745_v55  ;;  %v625_v46 = vsub.s32 32, %v624_v60  ;;  %v626_v20 = vshll.u32 %v8342_v57, %v624_v60  ;;  %v629_v38 = vsub.s32 4294967266, %v624_v60 }
  0xad   : > { %v910_v42 = vsel %vm900_vm0, %v896_v6, 1326507024  ;;  %v908_v15 = vsel %vm898_vm14, %v905_v50, %v907_v12  ;;  %v904_v62 = vsel %vm898_vm14, %v901_v51, %v903_v14  ;;  %vm11607_vm10 = vweird.f32 %v8076_v22 }
  0xae   : > { %v627_v35 = vshrl.u32 %v609_v13, %v625_v46  ;;  %v630_v32 = vadd.s32 127, %v629_v38  ;;  %v911_v5 = vsel %vm899_vm15, %v893_v23, %v910_v42  ;;  %vm752_vm1 = vcmp.lt.s32.totalorder %v8339_v36, 2 }
  0xaf   : > { %v912_v57 = vsel %vm898_vm14, %v909_v9, %v911_v5  ;;  %v8390_v61 = vmul.u32.u64.low %v8345_v58, %v908_v15  ;;  %v8391_v29 = vmul.u32.u64.high %v8345_v58, %v908_v15, %v8390_v61  ;;  %v8402_v23 = vand.u32 8388607, %v761_v40 }
  0xb0   : > { %v628_v56 = vor.u32 %v627_v35, %v626_v20  ;;  %v631_v63 = vshll.u32 %v630_v32, 23  ;;  %v8396_v2 = vmul.u32.u64.low %v8345_v58, %v912_v57  ;;  %v8397_v13 = vmul.u32.u64.high %v8345_v58, %v912_v57, %v8396_v2 }
  0xb1   : > { %v771_v16 = vadd.s32 1, %v7202_v10  ;;  %v8405_v45 = vand.u32 3, %v8213_v41  ;;  %vm753_vm6 = vcmp.eq.s32.totalorder %v8339_v36, 0  ;;  %v920_v6 = vmul.u32 %v8345_v58, %v904_v62 }
  0xb2   : > { %v632_v7 = vor.u32 4788187, %v631_v63  ;;  %v635_v25 = vcvt.s32.f32 %v628_v56  ;;  %v8411_v51 = vsel %vm8370_vm2, 0, %v640_v18  ;;  %v923_v55 = vadd.s32 1, %v8391_v29 }
  0xb3   : > { %vm772_vm7 = vcmp.gt.s32.totalorder %v771_v16, 0  ;;  %vm1208_vm8 = vcmp.eq.s32.totalorder %v8405_v45, 0  ;;  %vm756_vm12 = vcmp.eq.s32.totalorder %v8339_v36, 2  ;;  %vm922_vm14 = vc.u32 %v8397_v13, %v8390_v61 }
  0xb4   : > { %v633_v10 = vand.u32 2147483647, %v632_v7  ;;  %v773_v41 = vsel %vm772_vm7, %v771_v16, 0  ;;  %v924_v58 = vsel %vm922_vm14, %v923_v55, %v8391_v29  ;;  %v769_v50 = vor.u32 8388608, %v8402_v23 }
  0xb5   : > { %v8418_v17 = vpop.eup %7602  ;;  %v775_v60 = vand.u32 31, %v773_v41  ;;  %v8425_v14 = vsel %vm1208_vm8, %v8304_v21, %v338_v30  ;;  %v646_v38 = vadd.s32 3, %v8411_v51  ;;  %v925_v18 = vadd.s32 %v924_v58, %v920_v6 }
  0xb6   : > { %v8427_v48 = vpop.eup %7604  ;;  %v757_v46 = vxor.u32 2147483648, %v8418_v17  ;;  %v636_v20 = vmul.f32 %v635_v25, %v633_v10  ;;  %v8432_v9 = vshrl.u32 %v773_v41, 5  ;;  %v11682_v29 = vmov 2131351028  }
  0xb7   : > { %v754_v12 = vxor.u32 2147483648, %v8427_v48  ;;  %v776_v42 = vsub.s32 32, %v775_v60  ;;  %v778_v35 = vshll.u32 %v11644_v31, %v775_v60  ;;  %v926_v15 = vadd.s32 536870912, %v925_v18 }
  0xb8   : > { %v758_v30 = vsel %vm756_vm12, %v757_v46, %v8427_v48  ;;  %v637_v32 = vxor.u32 2147483648, %v636_v20  ;;  %v781_v5 = vshll.u32 %v11617_v33, %v775_v60  ;;  %v784_v63 = vshll.u32 %v11682_v29, %v775_v60 }
  0xb9   : > { %v755_v62 = vsel %vm753_vm6, %v8418_v17, %v754_v12  ;;  %v779_v57 = vshrl.u32 %v11617_v33, %v776_v42  ;;  %v782_v56 = vshrl.u32 %v11682_v29, %v776_v42  ;;  %v927_v16 = vshrl.u32 %v926_v15, 30 }
  0xba   : > { %v759_v2 = vsel %vm752_vm1, %v755_v62, %v758_v30  ;;  %v638_v23 = vsel %vm555_vm9, %v637_v32, %v636_v20  ;;  %v785_v7 = vshrl.u32 %v11615_v37, %v776_v42  ;;  %v8459_v55 = vand.u32 3, %v646_v38 }
  0xbb   : > { %v760_v25 = vsel %vm11607_vm10, nan, %v759_v2  ;;  %v641_v6 = vsel %vm8370_vm2, %v8116_v52, %v638_v23  ;;  %v777_v10 = vshrl.u32 %v11644_v31, %v776_v42  ;;  %v928_v36 = vshll.u32 %v927_v16, 30 }
  0xbc   : > { %987 = vrot.lane.b32.xlu1 %v760_v25, %s7752_s13  ;;  %7606 = vcosq.f32 %v641_v6  ;;  %v780_v41 = vor.u32 %v779_v57, %v778_v35  ;;  %v783_v58 = vor.u32 %v782_v56, %v781_v5  ;;  %v787_v20 = vshll.u32 %v11615_v37, %v775_v60 }
  0xbd   : > { %7608 = vsinq.f32 %v641_v6  ;;  %v788_v30 = vshrl.u32 %v11630_v39, %v776_v42  ;;  %v790_v32 = vshll.u32 %v11630_v39, %v775_v60  ;;  %v8466_v15 = vsub.s32 %v925_v18, %v928_v36 }
  0xbe   : > { %v786_v49 = vor.u32 %v785_v7, %v784_v63  ;;  %v791_v38 = vshrl.u32 %v11632_v47, %v776_v42  ;;  %vm793_vm9 = vcmp.lt.s32.totalorder %v8432_v9, 1  ;;  %vm649_vm15 = vcmp.eq.s32.totalorder %v8459_v55, 0 }
  0xbf   : > { %vm867_vm0 = vcmp.lt.s32.totalorder %v8283_v11, 0  ;;  %v789_v35 = vor.u32 %v788_v30, %v787_v20  ;;  %vm795_vm2 = vcmp.lt.s32.totalorder %v8432_v9, 3  ;;  %vm648_vm4 = vcmp.lt.s32.totalorder %v8459_v55, 2 }
  0xc0   : > { %v931_v5 = vsub.s32 0, %v8466_v15  ;;  %v792_v62 = vor.u32 %v791_v38, %v790_v32  ;;  %vm794_vm1 = vcmp.lt.s32.totalorder %v8432_v9, 2  ;;  %vm796_vm6 = vcmp.lt.s32.totalorder %v8432_v9, 4 }
  0xc1   : > { %vm645_vm7 = vweird.f32 %v8116_v52  ;;  %v798_v60 = vsel %vm796_vm6, %v786_v49, 2102212464  ;;  %v801_v18 = vsel %vm793_vm9, %v780_v41, %v783_v58  ;;  %v802_v42 = vsel %vm796_vm6, %v789_v35, 920167782 }
  0xc2   : > { %v809_v57 = vshll.u32 %v769_v50, 8  ;;  %v11683_v56 = vand.u32 2147483647, %v8283_v11  ;;  %v7207_v2 = vmin.u32 %v931_v5, %v8466_v15  ;;  %v797_v23 = vsel %vm793_vm9, %v777_v10, %v780_v41 }
  0xc3   : > { %v803_v7 = vsel %vm795_vm2, %v786_v49, %v802_v42  ;;  %vm1211_vm12 = vcmp.eq.s32.totalorder %v8405_v45, 2  ;;  %v799_v25 = vsel %vm795_vm2, %v783_v58, %v798_v60  ;;  %v805_v6 = vsel %vm793_vm9, %v783_v58, %v786_v49 }
  0xc4   : > { %vm8482_vm8 = vcmp.le.f32.partialorder %v11683_v56, 0.7853982  ;;  %v804_v50 = vsel %vm794_vm1, %v801_v18, %v803_v7  ;;  %v806_v36 = vsel %vm796_vm6, %v792_v62, 1326507024  ;;  %vm652_vm14 = vcmp.eq.s32.totalorder %v8459_v55, 2 }
  0xc5   : > { %v933_v20 = vclz %v7207_v2  ;;  %v951_v30 = vsub.s32 4, %v927_v16  ;;  %vm1207_vm10 = vcmp.lt.s32.totalorder %v8405_v45, 2  ;;  %v921_v10 = vadd.s32 %v8390_v61, %v8397_v13 }
  0xc6   : > { %v807_v41 = vsel %vm795_vm2, %v789_v35, %v806_v36  ;;  %v8504_v32 = vmul.u32.u64.low %v809_v57, %v804_v50  ;;  %v8505_v38 = vmul.u32.u64.high %v809_v57, %v804_v50, %v8504_v32  ;;  %v8508_v5 = vpop.eup %7606  ;;  %v800_v49 = vsel %vm794_vm1, %v797_v23, %v799_v25 }
  0xc7   : > { %v7208_v58 = vadd.s32 4294967294, %v933_v20  ;;  %v808_v62 = vsel %vm794_vm1, %v805_v6, %v807_v41  ;;  %v11686_v60 = vxor.u32 2147483648, %v8304_v21  ;;  %v8519_v13 = vpop.eup %7608  ;;  %v653_v35 = vxor.u32 2147483648, %v8508_v5 }
  0xc8   : > { %v8522_v18 = vmul.u32.u64.low %v809_v57, %v808_v62  ;;  %v8523_v42 = vmul.u32.u64.high %v809_v57, %v808_v62, %v8522_v18  ;;  %v650_v2 = vxor.u32 2147483648, %v8519_v13  ;;  %v952_v9 = vsel %vm867_vm0, %v951_v30, %v927_v16 }
  0xc9   : > { %v1213_v61 = vsel %vm1211_vm12, %v11686_v60, %v8311_v34  ;;  %vm7209_vm9 = vcmp.lt.s32.totalorder %v7208_v58, 0  ;;  %v654_v34 = vsel %vm652_vm14, %v653_v35, %v8519_v13  ;;  %v816_v23 = vmul.u32 %v809_v57, %v800_v49 }
  0xca   : > { %v1214_v56 = vsel %vm1207_vm10, %v8425_v14, %v1213_v61  ;;  %v936_v45 = vsel %vm7209_vm9, 0, %v7208_v58  ;;  %v819_v14 = vadd.s32 1, %v8505_v38  ;;  %v651_v16 = vsel %vm649_vm15, %v8508_v5, %v650_v2 }
  0xcb   : > { %v8531_v21 = vsel %vm333_vm11, nan, %v1214_v56  ;;  %v937_v7 = vsub.s32 32, %v936_v45  ;;  %v938_v59 = vshll.u32 %v8466_v15, %v936_v45  ;;  %v941_v25 = vsub.s32 4294967266, %v936_v45 }
  0xcc   : > { %v655_v50 = vsel %vm648_vm4, %v651_v16, %v654_v34  ;;  %v8549_v6 = vsel %vm8482_vm8, 0, %v952_v9  ;;  %vm818_vm11 = vc.u32 %v8523_v42, %v8504_v32  ;;  %v8558_v58 = vand.u32 3, %v8004_v24 }
  0xcd   : > { %v656_v57 = vsel %vm645_vm7, nan, %v655_v50  ;;  %v939_v36 = vshrl.u32 %v921_v10, %v937_v7  ;;  %v942_v20 = vadd.s32 127, %v941_v25  ;;  %v820_v30 = vsel %vm818_vm11, %v819_v14, %v8505_v38 }
  0xce   : > { %985 = vrot.lane.b32.xlu0 %v656_v57, %s7752_s13  ;;  %v821_v15 = vadd.s32 %v820_v30, %v816_v23  ;;  %v958_v49 = vadd.s32 3, %v8549_v6  ;;  %v1618_v18 = vand.u32 3, %v8308_v27  ;;  %vm763_vm10 = vcmp.lt.s32.totalorder %v8328_v43, 0 }
  0xcf   : > { %v940_v41 = vor.u32 %v939_v36, %v938_v59  ;;  %v943_v55 = vshll.u32 %v942_v20, 23  ;;  %vm1105_vm15 = vcmp.eq.s32.totalorder %v8558_v58, 0  ;;  %vm1108_vm2 = vcmp.eq.s32.totalorder %v8558_v58, 2 }
  0xd0   : > { %v822_v62 = vadd.s32 536870912, %v821_v15  ;;  %v1412_v38 = vand.u32 3, %v8106_v44  ;;  %v8566_v9 = vand.u32 3, %v958_v49  ;;  %vm1104_vm4 = vcmp.lt.s32.totalorder %v8558_v58, 2 }
  0xd1   : > { %v944_v60 = vor.u32 4788187, %v943_v55  ;;  %v947_v61 = vcvt.s32.f32 %v940_v41  ;;  %v1309_v34 = vand.u32 3, %v7933_v54  ;;  %vm8572_vm1 = vcmp.le.f32.partialorder %v761_v40, 0.7853982 }
  0xd2   : > { %v823_v10 = vshrl.u32 %v822_v62, 30  ;;  %vm1619_vm6 = vcmp.lt.s32.totalorder %v1618_v18, 2  ;;  %vm1620_vm12 = vcmp.eq.s32.totalorder %v1618_v18, 0  ;;  %vm1623_vm14 = vcmp.eq.s32.totalorder %v1618_v18, 2 }
  0xd3   : > { %v945_v56 = vand.u32 2147483647, %v944_v60  ;;  %v11689_v44 = vxor.u32 2147483648, %v8118_v53  ;;  %v11690_v16 = vxor.u32 2147483648, %v8113_v28  ;;  %v1622_v40 = vsel %vm1620_vm12, %v8418_v17, %v754_v12  ;;  %v7714_v60 = vld [vmem:[%s7786_s12 + $0x8] sm:$0xff] }
  0xd4   : > { %v824_v24 = vshll.u32 %v823_v10, 30  ;;  %v847_v59 = vsub.s32 4, %v823_v10  ;;  %v1625_v25 = vsel %vm1623_vm14, %v757_v46, %v8427_v48  ;;  %v1515_v50 = vand.u32 3, %v8411_v51 }
  0xd5   : > { %v948_v45 = vmul.f32 %v947_v61, %v945_v56  ;;  %v1107_v14 = vsel %vm1105_vm15, %v8113_v28, %v11689_v44  ;;  %v1110_v54 = vsel %vm1108_vm2, %v11690_v16, %v8118_v53  ;;  %vm1413_vm9 = vcmp.lt.s32.totalorder %v1412_v38, 2 }
  0xd6   : > { %v8576_v23 = vsub.s32 %v821_v15, %v824_v24  ;;  %vm1414_vm11 = vcmp.eq.s32.totalorder %v1412_v38, 0  ;;  %v1626_v36 = vsel %vm1619_vm6, %v1622_v40, %v1625_v25  ;;  %vm1417_vm15 = vcmp.eq.s32.totalorder %v1412_v38, 2 }
  0xd7   : > { %v949_v7 = vxor.u32 2147483648, %v948_v45  ;;  %vm1311_vm2 = vcmp.eq.s32.totalorder %v1309_v34, 0  ;;  %vm1517_vm13 = vcmp.eq.s32.totalorder %v1515_v50, 0  ;;  %vm1314_vm12 = vcmp.eq.s32.totalorder %v1309_v34, 2 }
  0xd8   : > { %v827_v57 = vsub.s32 0, %v8576_v23  ;;  %v1519_v51 = vsel %vm1517_vm13, %v8508_v5, %v650_v2  ;;  %v848_v48 = vsel %vm763_vm10, %v847_v59, %v823_v10  ;;  %vm1520_vm6 = vcmp.eq.s32.totalorder %v1515_v50, 2 }
  0xd9   : > { %v950_v28 = vsel %vm867_vm0, %v949_v7, %v948_v45  ;;  %vm1516_vm0 = vcmp.lt.s32.totalorder %v1515_v50, 2  ;;  %v11691_v12 = vxor.u32 2147483648, %v8222_v26  ;;  %v11692_v20 = vxor.u32 2147483648, %v8209_v3 }
  0xda   : > { %v953_v53 = vsel %vm8482_vm8, %v8283_v11, %v950_v28  ;;  %v7203_v17 = vmin.u32 %v827_v57, %v8576_v23  ;;  %vm1310_vm13 = vcmp.lt.s32.totalorder %v1309_v34, 2  ;;  %v11693_v2 = vxor.u32 2147483648, %v8063_v8 }
  0xdb   : > { %7610 = vcosq.f32 %v953_v53  ;;  %v1416_v63 = vsel %vm1414_vm11, %v8209_v3, %v11691_v12  ;;  %v1419_v30 = vsel %vm1417_vm15, %v11692_v20, %v8222_v26  ;;  %v11694_v41 = vxor.u32 2147483648, %v8059_v19 }
  0xdc   : > { %7612 = vsinq.f32 %v953_v53  ;;  %v829_v46 = vclz %v7203_v17  ;;  %v1313_v15 = vsel %vm1311_vm2, %v8059_v19, %v11693_v2  ;;  %v1522_v49 = vsel %vm1520_vm6, %v653_v35, %v8519_v13  ;;  %v7715_v13 = vld [vmem:[%s7786_s12] sm:$0xff] }
  0xdd   : > { %v1316_v55 = vsel %vm1314_vm12, %v11694_v41, %v8063_v8  ;;  %vm961_vm8 = vcmp.eq.s32.totalorder %v8566_v9, 0  ;;  %v8622_v3 = vsel %vm8572_vm1, 0, %v848_v48  ;;  %v1523_v26 = vsel %vm1516_vm0, %v1519_v51, %v1522_v49 }
  0xde   : > { %v7204_v62 = vadd.s32 4294967294, %v829_v46  ;;  %v8625_v61 = vmul.f32 2.0, %v7714_v60  ;;  %vm960_vm14 = vcmp.lt.s32.totalorder %v8566_v9, 2  ;;  %v817_v19 = vadd.s32 %v8504_v32, %v8523_v42 }
  0xdf   : > { %v1111_v8 = vsel %vm1104_vm4, %v1107_v14, %v1110_v54  ;;  %v8634_v5 = vsel %vm645_vm7, nan, %v1523_v26  ;;  %v8637_v35 = vmul.f32 2.0, %v7715_v13  ;;  %vm957_vm11 = vweird.f32 %v8283_v11 }
  0xe0   : > { %vm7205_vm15 = vcmp.lt.s32.totalorder %v7204_v62, 0  ;;  %v1420_v18 = vsel %vm1413_vm9, %v1416_v63, %v1419_v30  ;;  %v1987_v10 = vand.u32 2147483647, %v8625_v61  ;;  %v1990_v56 = vand.u32 2139095040, %v8625_v61 }
  0xe1   : > { %vm964_vm2 = vcmp.eq.s32.totalorder %v8566_v9, 2  ;;  %v832_v32 = vsel %vm7205_vm15, 0, %v7204_v62  ;;  %v854_v42 = vadd.s32 3, %v8622_v3  ;;  %v1317_v52 = vsel %vm1310_vm13, %v1313_v15, %v1316_v55 }
  0xe2   : > { %v833_v58 = vsub.s32 32, %v832_v32  ;;  %v834_v24 = vshll.u32 %v8576_v23, %v832_v32  ;;  %v837_v45 = vsub.s32 4294967266, %v832_v32  ;;  %v8649_v44 = vsel %vm229_vm3, nan, %v1111_v8 }
  0xe3   : > { %v8653_v38 = vsel %vm541_vm5, nan, %v1420_v18  ;;  %v1991_v14 = vshrl.u32 %v1990_v56, 23  ;;  %v1994_v16 = vand.u32 8388607, %v1987_v10  ;;  %v1886_v54 = vand.u32 2139095040, %v8637_v35 }
  0xe4   : > { %v835_v34 = vshrl.u32 %v817_v19, %v833_v58  ;;  %v838_v40 = vadd.s32 127, %v837_v45  ;;  %vm11695_vm7 = vweird.f32 %v7789_v0  ;;  %v8663_v1 = vand.u32 3, %v8549_v6 }
  0xe5   : > { %v8660_v23 = vsel %vm11695_vm7, nan, %v1317_v52  ;;  %v7611_v7 = vpop.eup %7610  ;;  %v8665_v59 = vand.u32 3, %v854_v42  ;;  %vm11696_vm3 = vweird.f32 %v8076_v22  ;;  %v7246_v25 = vadd.s32 4294967169, %v1991_v14 }
  0xe6   : > { %v8669_v4 = vsel %vm11696_vm3, nan, %v1626_v36  ;;  %v1887_v50 = vshrl.u32 %v1886_v54, 23  ;;  %v7613_v57 = vpop.eup %7612  ;;  %v965_v28 = vxor.u32 2147483648, %v7611_v7  ;;  %v836_v53 = vor.u32 %v835_v34, %v834_v24 }
  0xe7   : > { %v839_v17 = vshll.u32 %v838_v40, 23  ;;  %v1883_v0 = vand.u32 2147483647, %v8637_v35  ;;  %v962_v51 = vxor.u32 2147483648, %v7613_v57  ;;  %v1995_v48 = vor.u32 8388608, %v1994_v16 }
  0xe8   : > { %v1997_v46 = vadd.s32 1, %v7246_v25  ;;  %v7242_v6 = vadd.s32 4294967169, %v1887_v50  ;;  %v966_v12 = vsel %vm964_vm2, %v965_v28, %v7613_v57  ;;  %v843_v20 = vcvt.s32.f32 %v836_v53 }
  0xe9   : > { %v840_v63 = vor.u32 4788187, %v839_v17  ;;  %vm1826_vm5 = vcmp.eq.s32.totalorder %v8663_v1, 0  ;;  %v963_v22 = vsel %vm961_vm8, %v7611_v7, %v962_v51  ;;  %vm1829_vm4 = vcmp.eq.s32.totalorder %v8663_v1, 2 }
  0xea   : > { %vm1998_vm9 = vcmp.gt.s32.totalorder %v1997_v46, 0  ;;  %v1893_v36 = vadd.s32 1, %v7242_v6  ;;  %v967_v30 = vsel %vm960_vm14, %v963_v22, %v966_v12  ;;  %v8682_v41 = vand.u32 8388607, %v1883_v0 }
  0xeb   : > { %v841_v2 = vand.u32 2147483647, %v840_v63  ;;  %v1999_v15 = vsel %vm1998_vm9, %v1997_v46, 0  ;;  %v968_v55 = vsel %vm957_vm11, nan, %v967_v30  ;;  %vm1825_vm12 = vcmp.lt.s32.totalorder %v8663_v1, 2 }
  0xec   : > { %v2000_v49 = vshrl.u32 %v1999_v15, 5  ;;  %v2001_v62 = vand.u32 31, %v1999_v15  ;;  %v8687_v26 = vshll.u32 %v1995_v48, 8  ;;  %991 = vrot.lane.b32.xlu1 %v968_v55, %s7752_s13  ;;  %v1828_v9 = vsel %vm1826_vm5, %v7611_v7, %v962_v51 }
  0xed   : > { %v844_v60 = vmul.f32 %v843_v20, %v841_v2  ;;  %v1831_v19 = vsel %vm1829_vm4, %v965_v28, %v7613_v57  ;;  %vm1894_vm0 = vcmp.gt.s32.totalorder %v1893_v36, 0  ;;  %vm856_vm14 = vcmp.lt.s32.totalorder %v8665_v59, 2 }
  0xee   : > { %v2002_v8 = vsub.s32 32, %v2001_v62  ;;  %v2004_v13 = vshll.u32 %v11644_v31, %v2001_v62  ;;  %v2007_v18 = vshll.u32 %v11617_v33, %v2001_v62  ;;  %v2010_v56 = vshll.u32 %v11682_v29, %v2001_v62 }
  0xef   : > { %v845_v32 = vxor.u32 2147483648, %v844_v60  ;;  %v2013_v42 = vshll.u32 %v11615_v37, %v2001_v62  ;;  %v2016_v52 = vshll.u32 %v11630_v39, %v2001_v62  ;;  %vm2019_vm6 = vcmp.lt.s32.totalorder %v2000_v49, 1 }
  0xf0   : > { %v2003_v58 = vshrl.u32 %v11644_v31, %v2002_v8  ;;  %v2005_v24 = vshrl.u32 %v11617_v33, %v2002_v8  ;;  %v2008_v45 = vshrl.u32 %v11682_v29, %v2002_v8  ;;  %v2011_v14 = vshrl.u32 %v11615_v37, %v2002_v8  ;;  %1844 = vrot.lane.b32.xlu1 %v8531_v21, %s7753_s14 }
  0xf1   : > { %v846_v16 = vsel %vm763_vm10, %v845_v32, %v844_v60  ;;  %v2014_v54 = vshrl.u32 %v11630_v39, %v2002_v8  ;;  %v2017_v34 = vshrl.u32 %v11632_v47, %v2002_v8  ;;  %vm2020_vm13 = vcmp.lt.s32.totalorder %v2000_v49, 2 }
  0xf2   : > { %v849_v40 = vsel %vm8572_vm1, %v8328_v43, %v846_v16  ;;  %v2006_v7 = vor.u32 %v2005_v24, %v2004_v13  ;;  %v2009_v25 = vor.u32 %v2008_v45, %v2007_v18  ;;  %v2012_v50 = vor.u32 %v2011_v14, %v2010_v56 }
  0xf3   : > { %7614 = vcosq.f32 %v849_v40  ;;  %v2015_v57 = vor.u32 %v2014_v54, %v2013_v42  ;;  %v2018_v28 = vor.u32 %v2017_v34, %v2016_v52  ;;  %vm2021_vm10 = vcmp.lt.s32.totalorder %v2000_v49, 3 }
  0xf4   : > { %7616 = vsinq.f32 %v849_v40  ;;  %vm2022_vm8 = vcmp.lt.s32.totalorder %v2000_v49, 4  ;;  %v2023_v21 = vsel %vm2019_vm6, %v2003_v58, %v2006_v7  ;;  %v2027_v53 = vsel %vm2019_vm6, %v2006_v7, %v2009_v25  ;;  %1848 = vrot.lane.b32.xlu1 %v8653_v38, %s7753_s14 }
  0xf5   : > { %v2024_v17 = vsel %vm2022_vm8, %v2012_v50, 2102212464  ;;  %v2028_v51 = vsel %vm2022_vm8, %v2015_v57, 920167782  ;;  %v2031_v27 = vsel %vm2019_vm6, %v2009_v25, %v2012_v50  ;;  %v2032_v48 = vsel %vm2022_vm8, %v2018_v28, 1326507024 }
  0xf6   : > { %v2025_v46 = vsel %vm2021_vm10, %v2009_v25, %v2024_v17  ;;  %v2029_v6 = vsel %vm2021_vm10, %v2012_v50, %v2028_v51  ;;  %v2033_v12 = vsel %vm2021_vm10, %v2015_v57, %v2032_v48  ;;  %v1895_v63 = vsel %vm1894_vm0, %v1893_v36, 0  ;;  %v7716_v51 = vld [vmem:[%s7786_s12 + $0x18] sm:$0xff] }
  0xf7   : > { %v1832_v20 = vsel %vm1825_vm12, %v1828_v9, %v1831_v19  ;;  %v2026_v22 = vsel %vm2020_vm13, %v2023_v21, %v2025_v46  ;;  %v2030_v30 = vsel %vm2020_vm13, %v2027_v53, %v2029_v6  ;;  %v2034_v2 = vsel %vm2020_vm13, %v2031_v27, %v2033_v12 }
  0xf8   : > { %vm853_vm1 = vweird.f32 %v8328_v43  ;;  %v8723_v38 = vmul.u32.u64.low %v8687_v26, %v2034_v2  ;;  %v8724_v15 = vmul.u32.u64.high %v8687_v26, %v2034_v2, %v8723_v38  ;;  %vm857_vm15 = vcmp.eq.s32.totalorder %v8665_v59, 0  ;;  %1852 = vrot.lane.b32.xlu1 %v8669_v4, %s7753_s14 }
  0xf9   : > { %v8727_v55 = vmul.u32.u64.low %v8687_v26, %v2030_v30  ;;  %v8728_v62 = vmul.u32.u64.high %v8687_v26, %v2030_v30, %v8727_v55  ;;  %v8735_v1 = vshrl.u32 %v1895_v63, 5  ;;  %v1897_v36 = vand.u32 31, %v1895_v63 }
  0xfa   : > { %vm860_vm2 = vcmp.eq.s32.totalorder %v8665_v59, 2  ;;  %v1833_v49 = vsel %vm957_vm11, nan, %v1832_v20  ;;  %v8741_v60 = vand.u32 3, %v8622_v3  ;;  %v1891_v9 = vor.u32 8388608, %v8682_v41 }
  0xfb   : > { %v2042_v19 = vmul.u32 %v8687_v26, %v2026_v22  ;;  %v1898_v8 = vsub.s32 32, %v1897_v36  ;;  %v1900_v13 = vshll.u32 %v11644_v31, %v1897_v36  ;;  %v1903_v4 = vshll.u32 %v11617_v33, %v1897_v36 }
  0xfc   : > { %vm2044_vm7 = vc.u32 %v8724_v15, %v8727_v55  ;;  %v2045_v18 = vadd.s32 1, %v8728_v62  ;;  %v1906_v11 = vshll.u32 %v11682_v29, %v1897_v36  ;;  %v1909_v56 = vshll.u32 %v11615_v37, %v1897_v36  ;;  %1856 = vrot.lane.b32.xlu1 %v1833_v49, %s7753_s14 }
  0xfd   : > { %v8752_v3 = vpop.eup %7614  ;;  %v1901_v41 = vshrl.u32 %v11617_v33, %v1898_v8  ;;  %v1904_v26 = vshrl.u32 %v11682_v29, %v1898_v8  ;;  %v1907_v32 = vshrl.u32 %v11615_v37, %v1898_v8  ;;  %vm1915_vm11 = vcmp.lt.s32.totalorder %v8735_v1, 1 }
  0xfe   : > { %v7617_v42 = vpop.eup %7616  ;;  %v861_v52 = vxor.u32 2147483648, %v8752_v3  ;;  %v2046_v58 = vsel %vm2044_vm7, %v2045_v18, %v8728_v62  ;;  %v1899_v24 = vshrl.u32 %v11644_v31, %v1898_v8  ;;  %v1910_v45 = vshrl.u32 %v11630_v39, %v1898_v8 }
  0xff   : > { %v858_v14 = vxor.u32 2147483648, %v7617_v42  ;;  %v2047_v16 = vadd.s32 %v2046_v58, %v2042_v19  ;;  %v1902_v54 = vor.u32 %v1901_v41, %v1900_v13  ;;  %v1912_v34 = vshll.u32 %v11630_v39, %v1897_v36 }
 0x100   : > { %v862_v40 = vsel %vm860_vm2, %v861_v52, %v7617_v42  ;;  %vm1723_vm3 = vcmp.eq.s32.totalorder %v8741_v60, 0  ;;  %v1905_v7 = vor.u32 %v1904_v26, %v1903_v4  ;;  %v1908_v25 = vor.u32 %v1907_v32, %v1906_v11 }
 0x101   : > { %v1911_v50 = vor.u32 %v1910_v45, %v1909_v56  ;;  %v859_v57 = vsel %vm857_vm15, %v8752_v3, %v858_v14  ;;  %v2048_v28 = vadd.s32 536870912, %v2047_v16  ;;  %v1913_v21 = vshrl.u32 %v11632_v47, %v1898_v8 }
 0x102   : > { %vm1918_vm5 = vcmp.lt.s32.totalorder %v8735_v1, 4  ;;  %v863_v53 = vsel %vm856_vm14, %v859_v57, %v862_v40  ;;  %vm1917_vm4 = vcmp.lt.s32.totalorder %v8735_v1, 3  ;;  %v8778_v27 = vmul.f32 2.0, %v7716_v51 }
 0x103   : > { %v1920_v17 = vsel %vm1918_vm5, %v1908_v25, 2102212464  ;;  %v864_v48 = vsel %vm853_vm1, nan, %v863_v53  ;;  %v2049_v46 = vshrl.u32 %v2048_v28, 30  ;;  %v1914_v6 = vor.u32 %v1913_v21, %v1912_v34  ;;  %v7717_v53 = vld [vmem:[%s7786_s12 + $0x10] sm:$0xff] }
 0x104   : > { %vm1916_vm9 = vcmp.lt.s32.totalorder %v8735_v1, 2  ;;  %989 = vrot.lane.b32.xlu0 %v864_v48, %s7752_s13  ;;  %v1919_v59 = vsel %vm1915_vm11, %v1899_v24, %v1902_v54  ;;  %v1923_v12 = vsel %vm1915_vm11, %v1902_v54, %v1905_v7  ;;  %v1924_v63 = vsel %vm1918_vm5, %v1911_v50, 920167782 }
 0x105   : > { %v1931_v20 = vshll.u32 %v1891_v9, 8  ;;  %v2050_v22 = vshll.u32 %v2049_v46, 30  ;;  %v1921_v30 = vsel %vm1917_vm4, %v1905_v7, %v1920_v17  ;;  %v1925_v2 = vsel %vm1917_vm4, %v1908_v25, %v1924_v63 }
 0x106   : > { %v1927_v38 = vsel %vm1915_vm11, %v1905_v7, %v1908_v25  ;;  %v2073_v62 = vsub.s32 4, %v2049_v46  ;;  %v1926_v36 = vsel %vm1916_vm9, %v1923_v12, %v1925_v2  ;;  %v1928_v49 = vsel %vm1918_vm5, %v1914_v6, 1326507024 }
 0x107   : > { %v2198_v19 = vand.u32 2139095040, %v8778_v27  ;;  %vm1726_vm12 = vcmp.eq.s32.totalorder %v8741_v60, 2  ;;  %vm1989_vm0 = vcmp.lt.s32.totalorder %v8625_v61, 0  ;;  %v2051_v9 = vsub.s32 %v2047_v16, %v2050_v22 }
 0x108   : > { %v1929_v8 = vsel %vm1917_vm4, %v1911_v50, %v1928_v49  ;;  %1842 = vrot.lane.b32.xlu0 %v8649_v44, %s7753_s14  ;;  %v8809_v4 = vmul.u32.u64.low %v1931_v20, %v1926_v36  ;;  %v8810_v18 = vmul.u32.u64.high %v1931_v20, %v1926_v36, %v8809_v4  ;;  %v2195_v11 = vand.u32 2147483647, %v8778_v27 }
 0x109   : > { %v1930_v13 = vsel %vm1916_vm9, %v1927_v38, %v1929_v8  ;;  %v2053_v56 = vsub.s32 0, %v2051_v9  ;;  %v1922_v41 = vsel %vm1916_vm9, %v1919_v59, %v1921_v30  ;;  %vm1722_vm6 = vcmp.lt.s32.totalorder %v8741_v60, 2 }
 0x10a   : > { %v8816_v26 = vmul.u32.u64.low %v1931_v20, %v1930_v13  ;;  %v8817_v32 = vmul.u32.u64.high %v1931_v20, %v1930_v13, %v8816_v26  ;;  %v2074_v44 = vsel %vm1989_vm0, %v2073_v62, %v2049_v46  ;;  %v2199_v58 = vshrl.u32 %v2198_v19, 23 }
 0x10b   : > { %v1725_v24 = vsel %vm1723_vm3, %v8752_v3, %v858_v14  ;;  %v1728_v45 = vsel %vm1726_vm12, %v861_v52, %v7617_v42  ;;  %vm8829_vm13 = vcmp.le.f32.partialorder %v1987_v10, 0.7853982  ;;  %v7247_v16 = vmin.u32 %v2053_v56, %v2051_v9 }
 0x10c   : > { %1846 = vrot.lane.b32.xlu0 %v8660_v23, %s7753_s14  ;;  %v1938_v54 = vmul.u32 %v1931_v20, %v1922_v41  ;;  %v1941_v34 = vadd.s32 1, %v8810_v18  ;;  %v7254_v40 = vadd.s32 4294967169, %v2199_v58  ;;  %v2202_v3 = vand.u32 8388607, %v2195_v11 }
 0x10d   : > { %v2055_v14 = vclz %v7247_v16  ;;  %v8840_v42 = vsel %vm8829_vm13, 0, %v2074_v44  ;;  %v1729_v10 = vsel %vm1722_vm6, %v1725_v24, %v1728_v45  ;;  %vm1940_vm10 = vc.u32 %v8817_v32, %v8809_v4 }
 0x10e   : > { %v2205_v23 = vadd.s32 1, %v7254_v40  ;;  %v2043_v52 = vadd.s32 %v8727_v55, %v8724_v15  ;;  %v1942_v25 = vsel %vm1940_vm10, %v1941_v34, %v8810_v18  ;;  %v2080_v50 = vadd.s32 3, %v8840_v42 }
 0x10f   : > { %v7248_v7 = vadd.s32 4294967294, %v2055_v14  ;;  %v1943_v57 = vadd.s32 %v1942_v25, %v1938_v54  ;;  %v2203_v28 = vor.u32 8388608, %v2202_v3  ;;  %v1730_v60 = vsel %vm853_vm1, nan, %v1729_v10 }
 0x110   : > { %1850 = vrot.lane.b32.xlu0 %v8634_v5, %s7753_s14  ;;  %vm2206_vm8 = vcmp.gt.s32.totalorder %v2205_v23, 0  ;;  %v8855_v17 = vmul.f32 2.0, %v7717_v53  ;;  %v8858_v5 = vand.u32 3, %v2080_v50  ;;  %vm1885_vm1 = vcmp.lt.s32.totalorder %v8637_v35, 0 }
 0x111   : > { %vm7249_vm14 = vcmp.lt.s32.totalorder %v7248_v7, 0  ;;  %v2207_v21 = vsel %vm2206_vm8, %v2205_v23, 0  ;;  %v1944_v55 = vadd.s32 536870912, %v1943_v57  ;;  %v8860_v63 = vshll.u32 %v2203_v28, 8 }
 0x112   : > { %v2058_v15 = vsel %vm7249_vm14, 0, %v7248_v7  ;;  %v2209_v51 = vand.u32 31, %v2207_v21  ;;  %v2208_v22 = vshrl.u32 %v2207_v21, 5  ;;  %v2094_v30 = vand.u32 2139095040, %v8855_v17 }
 0x113   : > { %v2059_v48 = vsub.s32 32, %v2058_v15  ;;  %v2060_v46 = vshll.u32 %v2051_v9, %v2058_v15  ;;  %v2063_v6 = vsub.s32 4294967266, %v2058_v15  ;;  %v1945_v59 = vshrl.u32 %v1944_v55, 30 }
 0x114   : > { %1854 = vrot.lane.b32.xlu0 %v1730_v60, %s7753_s14  ;;  %v2210_v12 = vsub.s32 32, %v2209_v51  ;;  %v2212_v38 = vshll.u32 %v11644_v31, %v2209_v51  ;;  %v2215_v36 = vshll.u32 %v11617_v33, %v2209_v51  ;;  %v2221_v8 = vshll.u32 %v11615_v37, %v2209_v51 }
 0x115   : > { %v2061_v43 = vshrl.u32 %v2043_v52, %v2059_v48  ;;  %v2064_v20 = vadd.s32 127, %v2063_v6  ;;  %v1946_v2 = vshll.u32 %v1945_v59, 30  ;;  %v2218_v18 = vshll.u32 %v11682_v29, %v2209_v51 }
 0x116   : > { %v2213_v62 = vshrl.u32 %v11617_v33, %v2210_v12  ;;  %v2216_v9 = vshrl.u32 %v11682_v29, %v2210_v12  ;;  %v2219_v56 = vshrl.u32 %v11615_v37, %v2210_v12  ;;  %v2222_v41 = vshrl.u32 %v11630_v39, %v2210_v12 }
 0x117   : > { %v2062_v49 = vor.u32 %v2061_v43, %v2060_v46  ;;  %v2065_v19 = vshll.u32 %v2064_v20, 23  ;;  %v8869_v13 = vsub.s32 %v1943_v57, %v1946_v2  ;;  %v2091_v58 = vand.u32 2147483647, %v8855_v17 }
 0x118   : > { %v2095_v24 = vshrl.u32 %v2094_v30, 23  ;;  %v2211_v16 = vshrl.u32 %v11644_v31, %v2210_v12  ;;  %v2214_v54 = vor.u32 %v2213_v62, %v2212_v38  ;;  %v2217_v34 = vor.u32 %v2216_v9, %v2215_v36 }
 0x119   : > { %v2066_v26 = vor.u32 4788187, %v2065_v19  ;;  %v2069_v44 = vcvt.s32.f32 %v2062_v49  ;;  %v1949_v45 = vsub.s32 0, %v8869_v13  ;;  %v2223_v3 = vor.u32 %v2222_v41, %v2221_v8 }
 0x11a   : > { %v2224_v14 = vshll.u32 %v11630_v39, %v2209_v51  ;;  %v2225_v10 = vshrl.u32 %v11632_v47, %v2210_v12  ;;  %v1969_v52 = vsub.s32 4, %v1945_v59  ;;  %v2220_v7 = vor.u32 %v2219_v56, %v2218_v18 }
 0x11b   : > { %v2067_v40 = vand.u32 2147483647, %v2066_v26  ;;  %v7243_v23 = vmin.u32 %v1949_v45, %v8869_v13  ;;  %vm2227_vm15 = vcmp.lt.s32.totalorder %v2208_v22, 1  ;;  %vm2229_vm2 = vcmp.lt.s32.totalorder %v2208_v22, 3 }
 0x11c   : > { %v2226_v50 = vor.u32 %v2225_v10, %v2224_v14  ;;  %vm2230_vm7 = vcmp.lt.s32.totalorder %v2208_v22, 4  ;;  %v1939_v57 = vadd.s32 %v8809_v4, %v8817_v32  ;;  %vm2228_vm11 = vcmp.lt.s32.totalorder %v2208_v22, 2 }
 0x11d   : > { %v2070_v25 = vmul.f32 %v2069_v44, %v2067_v40  ;;  %v1951_v28 = vclz %v7243_v23  ;;  %v2231_v60 = vsel %vm2227_vm15, %v2211_v16, %v2214_v54  ;;  %v2232_v53 = vsel %vm2230_vm7, %v2220_v7, 2102212464 }
 0x11e   : > { %v2235_v15 = vsel %vm2227_vm15, %v2214_v54, %v2217_v34  ;;  %v2236_v55 = vsel %vm2230_vm7, %v2223_v3, 920167782  ;;  %v2233_v48 = vsel %vm2229_vm2, %v2217_v34, %v2232_v53  ;;  %v2239_v6 = vsel %vm2227_vm15, %v2217_v34, %v2220_v7 }
 0x11f   : > { %v2071_v21 = vxor.u32 2147483648, %v2070_v25  ;;  %v7244_v51 = vadd.s32 4294967294, %v1951_v28  ;;  %v2237_v46 = vsel %vm2229_vm2, %v2220_v7, %v2236_v55  ;;  %v1970_v4 = vsel %vm1885_vm1, %v1969_v52, %v1945_v59 }
 0x120   : > { %v2240_v32 = vsel %vm2230_vm7, %v2226_v50, 1326507024  ;;  %v7250_v43 = vadd.s32 4294967169, %v2095_v24  ;;  %v2238_v30 = vsel %vm2228_vm11, %v2235_v15, %v2237_v46  ;;  %v2234_v62 = vsel %vm2228_vm11, %v2231_v60, %v2233_v48  ;;  %v7718_v24 = vld [vmem:[%s7786_s12 + $0x28] sm:$0xff] }
 0x121   : > { %v2072_v12 = vsel %vm1989_vm0, %v2071_v21, %v2070_v25  ;;  %vm7245_vm3 = vcmp.lt.s32.totalorder %v7244_v51, 0  ;;  %v2241_v2 = vsel %vm2229_vm2, %v2223_v3, %v2240_v32  ;;  %vm8910_vm5 = vcmp.le.f32.partialorder %v1883_v0, 0.7853982 }
 0x122   : > { %v2075_v20 = vsel %vm8829_vm13, %v8625_v61, %v2072_v12  ;;  %v1954_v38 = vsel %vm7245_vm3, 0, %v7244_v51  ;;  %v2242_v36 = vsel %vm2228_vm11, %v2239_v6, %v2241_v2  ;;  %v2101_v26 = vadd.s32 1, %v7250_v43 }
 0x123   : > { %7618 = vcosq.f32 %v2075_v20  ;;  %v1955_v59 = vsub.s32 32, %v1954_v38  ;;  %v1956_v49 = vshll.u32 %v8869_v13, %v1954_v38  ;;  %v1959_v19 = vsub.s32 4294967266, %v1954_v38 }
 0x124   : > { %7620 = vsinq.f32 %v2075_v20  ;;  %v8900_v1 = vmul.u32.u64.low %v8860_v63, %v2242_v36  ;;  %v8901_v9 = vmul.u32.u64.high %v8860_v63, %v2242_v36, %v8900_v1  ;;  %v8916_v13 = vsel %vm8910_vm5, 0, %v1970_v4 }
 0x125   : > { %v8904_v8 = vmul.u32.u64.low %v8860_v63, %v2238_v30  ;;  %v8905_v18 = vmul.u32.u64.high %v8860_v63, %v2238_v30, %v8904_v8  ;;  %v1957_v22 = vshrl.u32 %v1939_v57, %v1955_v59  ;;  %v1960_v41 = vadd.s32 127, %v1959_v19 }
 0x126   : > { %v8920_v44 = vand.u32 8388607, %v2091_v58  ;;  %v8923_v45 = vmul.f32 2.0, %v7718_v24  ;;  %vm2079_vm4 = vweird.f32 %v8625_v61  ;;  %v2250_v54 = vmul.u32 %v8860_v63, %v2234_v62 }
 0x127   : > { %v1958_v0 = vor.u32 %v1957_v22, %v1956_v49  ;;  %v1961_v16 = vshll.u32 %v1960_v41, 23  ;;  %vm2102_vm9 = vcmp.gt.s32.totalorder %v2101_v26, 0  ;;  %vm2082_vm12 = vcmp.lt.s32.totalorder %v8858_v5, 2 }
 0x128   : > { %vm2252_vm0 = vc.u32 %v8901_v9, %v8904_v8  ;;  %v2253_v34 = vadd.s32 1, %v8905_v18  ;;  %v2103_v40 = vsel %vm2102_vm9, %v2101_v26, 0  ;;  %vm2083_vm6 = vcmp.eq.s32.totalorder %v8858_v5, 0 }
 0x129   : > { %v1962_v3 = vor.u32 4788187, %v1961_v16  ;;  %v1965_v14 = vcvt.s32.f32 %v1958_v0  ;;  %v2105_v10 = vand.u32 31, %v2103_v40  ;;  %vm2086_vm13 = vcmp.eq.s32.totalorder %v8858_v5, 2 }
 0x12a   : > { %v1976_v23 = vadd.s32 3, %v8916_v13  ;;  %v2254_v63 = vsel %vm2252_vm0, %v2253_v34, %v8905_v18  ;;  %v2099_v52 = vor.u32 8388608, %v8920_v44  ;;  %v2406_v57 = vand.u32 2139095040, %v8923_v45 }
 0x12b   : > { %v1963_v7 = vand.u32 2147483647, %v1962_v3  ;;  %v2255_v25 = vadd.s32 %v2254_v63, %v2250_v54  ;;  %v2106_v50 = vsub.s32 32, %v2105_v10  ;;  %v8939_v60 = vshrl.u32 %v2103_v40, 5 }
 0x12c   : > { %v2108_v21 = vshll.u32 %v11644_v31, %v2105_v10  ;;  %v2111_v53 = vshll.u32 %v11617_v33, %v2105_v10  ;;  %v2114_v15 = vshll.u32 %v11682_v29, %v2105_v10  ;;  %v2117_v6 = vshll.u32 %v11615_v37, %v2105_v10 }
 0x12d   : > { %v8937_v28 = vpop.eup %7618  ;;  %v1966_v48 = vmul.f32 %v1965_v14, %v1963_v7  ;;  %v2256_v46 = vadd.s32 536870912, %v2255_v25  ;;  %v2109_v4 = vshrl.u32 %v11617_v33, %v2106_v50  ;;  %v2112_v32 = vshrl.u32 %v11682_v29, %v2106_v50 }
 0x12e   : > { %v8944_v55 = vpop.eup %7620  ;;  %v2087_v51 = vxor.u32 2147483648, %v8937_v28  ;;  %v2115_v43 = vshrl.u32 %v11615_v37, %v2106_v50  ;;  %v2118_v38 = vshrl.u32 %v11630_v39, %v2106_v50  ;;  %v2107_v36 = vshrl.u32 %v11644_v31, %v2106_v50 }
 0x12f   : > { %v2084_v12 = vxor.u32 2147483648, %v8944_v55  ;;  %v1967_v30 = vxor.u32 2147483648, %v1966_v48  ;;  %v8957_v2 = vshrl.u32 %v2256_v46, 30  ;;  %v2110_v59 = vor.u32 %v2109_v4, %v2108_v21  ;;  %v7719_v46 = vld [vmem:[%s7786_s12 + $0x20] sm:$0xff] }
 0x130   : > { %v2088_v20 = vsel %vm2086_vm13, %v2087_v51, %v8944_v55  ;;  %v2120_v49 = vshll.u32 %v11630_v39, %v2105_v10  ;;  %v2113_v22 = vor.u32 %v2112_v32, %v2111_v53  ;;  %v2119_v44 = vor.u32 %v2118_v38, %v2117_v6 }
 0x131   : > { %v2085_v62 = vsel %vm2083_vm6, %v8937_v28, %v2084_v12  ;;  %v1968_v1 = vsel %vm1885_vm1, %v1967_v30, %v1966_v48  ;;  %v2258_v18 = vshll.u32 %v8957_v2, 30  ;;  %v2121_v24 = vshrl.u32 %v11632_v47, %v2106_v50 }
 0x132   : > { %v2089_v19 = vsel %vm2082_vm12, %v2085_v62, %v2088_v20  ;;  %v1971_v26 = vsel %vm8910_vm5, %v8637_v35, %v1968_v1  ;;  %v2116_v0 = vor.u32 %v2115_v43, %v2114_v15  ;;  %vm2123_vm10 = vcmp.lt.s32.totalorder %v8939_v60, 1 }
 0x133   : > { %v2090_v41 = vsel %vm2079_vm4, nan, %v2089_v19  ;;  %7622 = vcosq.f32 %v1971_v26  ;;  %v8979_v5 = vsub.s32 %v2255_v25, %v2258_v18  ;;  %v8982_v16 = vand.u32 3, %v1976_v23 }
 0x134   : > { %2725 = vrot.lane.b32.xlu1 %v2090_v41, %s7754_s15  ;;  %7624 = vsinq.f32 %v1971_v26  ;;  %vm2197_vm8 = vcmp.lt.s32.totalorder %v8778_v27, 0  ;;  %v2122_v54 = vor.u32 %v2121_v24, %v2120_v49  ;;  %v2403_v56 = vand.u32 2147483647, %v8923_v45 }
 0x135   : > { %v2261_v34 = vsub.s32 0, %v8979_v5  ;;  %vm2124_vm14 = vcmp.lt.s32.totalorder %v8939_v60, 2  ;;  %vm2125_vm1 = vcmp.lt.s32.totalorder %v8939_v60, 3  ;;  %vm2126_vm15 = vcmp.lt.s32.totalorder %v8939_v60, 4 }
 0x136   : > { %v2128_v40 = vsel %vm2126_vm15, %v2116_v0, 2102212464  ;;  %v2131_v3 = vsel %vm2123_vm10, %v2110_v59, %v2113_v22  ;;  %v2132_v14 = vsel %vm2126_vm15, %v2119_v44, 920167782  ;;  %v2139_v10 = vshll.u32 %v2099_v52, 8 }
 0x137   : > { %vm8994_vm2 = vcmp.le.f32.partialorder %v2195_v11, 0.7853982  ;;  %v7255_v63 = vmin.u32 %v2261_v34, %v8979_v5  ;;  %v2127_v7 = vsel %vm2123_vm10, %v2107_v36, %v2110_v59  ;;  %v2133_v25 = vsel %vm2125_vm1, %v2116_v0, %v2132_v14 }
 0x138   : > { %v2407_v50 = vshrl.u32 %v2406_v57, 23  ;;  %vm11620_vm7 = vweird.f32 %v8637_v35  ;;  %v2129_v52 = vsel %vm2125_vm1, %v2113_v22, %v2128_v40  ;;  %v2134_v11 = vsel %vm2124_vm14, %v2131_v3, %v2133_v25 }
 0x139   : > { %v2135_v21 = vsel %vm2123_vm10, %v2113_v22, %v2116_v0  ;;  %v2136_v53 = vsel %vm2126_vm15, %v2122_v54, 1326507024  ;;  %vm1978_vm11 = vcmp.lt.s32.totalorder %v8982_v16, 2  ;;  %v2263_v15 = vclz %v7255_v63 }
 0x13a   : > { %v2281_v48 = vsub.s32 4, %v8957_v2  ;;  %v9013_v6 = vmul.f32 2.0, %v7719_v46  ;;  %vm1979_vm3 = vcmp.eq.s32.totalorder %v8982_v16, 0  ;;  %v2137_v57 = vsel %vm2125_vm1, %v2119_v44, %v2136_v53 }
 0x13b   : > { %v9018_v4 = vmul.u32.u64.low %v2139_v10, %v2134_v11  ;;  %v9019_v32 = vmul.u32.u64.high %v2139_v10, %v2134_v11, %v9018_v4  ;;  %v7256_v43 = vadd.s32 4294967294, %v2263_v15  ;;  %v2130_v20 = vsel %vm2124_vm14, %v2127_v7, %v2129_v52 }
 0x13c   : > { %v2138_v30 = vsel %vm2124_vm14, %v2135_v21, %v2137_v57  ;;  %v7262_v38 = vadd.s32 4294967169, %v2407_v50  ;;  %vm1982_vm5 = vcmp.eq.s32.totalorder %v8982_v16, 2  ;;  %v2410_v59 = vand.u32 8388607, %v2403_v56 }
 0x13d   : > { %v9027_v62 = vmul.u32.u64.low %v2139_v10, %v2138_v30  ;;  %v9028_v36 = vmul.u32.u64.high %v2139_v10, %v2138_v30, %v9027_v62  ;;  %v9032_v49 = vpop.eup %7622  ;;  %v2251_v19 = vadd.s32 %v8904_v8, %v8901_v9  ;;  %vm7257_vm9 = vcmp.lt.s32.totalorder %v7256_v43, 0 }
 0x13e   : > { %v2282_v60 = vsel %vm2197_vm8, %v2281_v48, %v8957_v2  ;;  %v2413_v1 = vadd.s32 1, %v7262_v38  ;;  %v9039_v18 = vpop.eup %7624  ;;  %v11611_v22 = vxor.u32 2147483648, %v9032_v49  ;;  %v2266_v41 = vsel %vm7257_vm9, 0, %v7256_v43 }
 0x13f   : > { %v2146_v26 = vmul.u32 %v2139_v10, %v2130_v20  ;;  %v2149_v44 = vadd.s32 1, %v9019_v32  ;;  %v11612_v24 = vxor.u32 2147483648, %v9039_v18  ;;  %v2267_v0 = vsub.s32 32, %v2266_v41 }
 0x140   : > { %v2268_v54 = vshll.u32 %v8979_v5, %v2266_v41  ;;  %v2271_v9 = vsub.s32 4294967266, %v2266_v41  ;;  %v1984_v8 = vsel %vm1982_vm5, %v11611_v22, %v9039_v18  ;;  %v9052_v2 = vsel %vm8994_vm2, 0, %v2282_v60 }
 0x141   : > { %vm2148_vm12 = vc.u32 %v9028_v36, %v9018_v4  ;;  %vm2414_vm0 = vcmp.gt.s32.totalorder %v2413_v1, 0  ;;  %v1981_v5 = vsel %vm1979_vm3, %v9032_v49, %v11612_v24  ;;  %v2269_v34 = vshrl.u32 %v2251_v19, %v2267_v0 }
 0x142   : > { %v2272_v40 = vadd.s32 127, %v2271_v9  ;;  %v2150_v3 = vsel %vm2148_vm12, %v2149_v44, %v9019_v32  ;;  %v1985_v14 = vsel %vm1978_vm11, %v1981_v5, %v1984_v8  ;;  %v2415_v63 = vsel %vm2414_vm0, %v2413_v1, 0 }
 0x143   : > { %v2151_v10 = vadd.s32 %v2150_v3, %v2146_v26  ;;  %v2302_v7 = vand.u32 2139095040, %v9013_v6  ;;  %v1986_v25 = vsel %vm11620_vm7, nan, %v1985_v14  ;;  %v2270_v50 = vor.u32 %v2269_v34, %v2268_v54 }
 0x144   : > { %v2273_v52 = vshll.u32 %v2272_v40, 23  ;;  %2723 = vrot.lane.b32.xlu0 %v1986_v25, %s7754_s15  ;;  %v2411_v21 = vor.u32 8388608, %v2410_v59  ;;  %v2417_v53 = vand.u32 31, %v2415_v63  ;;  %v2288_v46 = vadd.s32 3, %v9052_v2 }
 0x145   : > { %v2152_v11 = vadd.s32 536870912, %v2151_v10  ;;  %v2277_v48 = vcvt.s32.f32 %v2270_v50  ;;  %v2299_v16 = vand.u32 2147483647, %v9013_v6  ;;  %v2416_v32 = vshrl.u32 %v2415_v63, 5 }
 0x146   : > { %v2274_v15 = vor.u32 4788187, %v2273_v52  ;;  %v2418_v43 = vsub.s32 32, %v2417_v53  ;;  %v2303_v20 = vshrl.u32 %v2302_v7, 23  ;;  %v2420_v38 = vshll.u32 %v11644_v31, %v2417_v53 }
 0x147   : > { %v2153_v57 = vshrl.u32 %v2152_v11, 30  ;;  %v2423_v62 = vshll.u32 %v11617_v33, %v2417_v53  ;;  %v2426_v19 = vshll.u32 %v11682_v29, %v2417_v53  ;;  %v2429_v1 = vshll.u32 %v11615_v37, %v2417_v53 }
 0x148   : > { %v2275_v30 = vand.u32 2147483647, %v2274_v15  ;;  %v2421_v59 = vshrl.u32 %v11617_v33, %v2418_v43  ;;  %v2432_v41 = vshll.u32 %v11630_v39, %v2417_v53  ;;  %v2424_v44 = vshrl.u32 %v11682_v29, %v2418_v43 }
 0x149   : > { %v2154_v60 = vshll.u32 %v2153_v57, 30  ;;  %v2427_v0 = vshrl.u32 %v11615_v37, %v2418_v43  ;;  %v2430_v54 = vshrl.u32 %v11630_v39, %v2418_v43  ;;  %v9079_v9 = vand.u32 3, %v2288_v46 }
 0x14a   : > { %v2278_v26 = vmul.f32 %v2277_v48, %v2275_v30  ;;  %v2433_v5 = vshrl.u32 %v11632_v47, %v2418_v43  ;;  %v9084_v34 = vshll.u32 %v2411_v21, 8  ;;  %vm2093_vm6 = vcmp.lt.s32.totalorder %v8855_v17, 0 }
 0x14b   : > { %v9081_v8 = vsub.s32 %v2151_v10, %v2154_v60  ;;  %v2422_v3 = vor.u32 %v2421_v59, %v2420_v38  ;;  %v2425_v14 = vor.u32 %v2424_v44, %v2423_v62  ;;  %v7258_v63 = vadd.s32 4294967169, %v2303_v20 }
 0x14c   : > { %v2279_v40 = vxor.u32 2147483648, %v2278_v26  ;;  %v2428_v25 = vor.u32 %v2427_v0, %v2426_v19  ;;  %v2431_v50 = vor.u32 %v2430_v54, %v2429_v1  ;;  %vm2435_vm13 = vcmp.lt.s32.totalorder %v2416_v32, 1 }
 0x14d   : > { %v2157_v7 = vsub.s32 0, %v9081_v8  ;;  %v2419_v10 = vshrl.u32 %v11644_v31, %v2418_v43  ;;  %v2434_v11 = vor.u32 %v2433_v5, %v2432_v41  ;;  %vm2438_vm10 = vcmp.lt.s32.totalorder %v2416_v32, 4 }
 0x14e   : > { %v2280_v52 = vsel %vm2197_vm8, %v2279_v40, %v2278_v26  ;;  %vm2437_vm14 = vcmp.lt.s32.totalorder %v2416_v32, 3  ;;  %v2440_v15 = vsel %vm2438_vm10, %v2428_v25, 2102212464  ;;  %vm9098_vm1 = vcmp.le.f32.partialorder %v2091_v58, 0.7853982 }
 0x14f   : > { %v2283_v21 = vsel %vm8994_vm2, %v8778_v27, %v2280_v52  ;;  %v7251_v53 = vmin.u32 %v2157_v7, %v9081_v8  ;;  %vm2436_vm8 = vcmp.lt.s32.totalorder %v2416_v32, 2  ;;  %v2443_v46 = vsel %vm2435_vm13, %v2422_v3, %v2425_v14 }
 0x150   : > { %7626 = vcosq.f32 %v2283_v21  ;;  %v2444_v43 = vsel %vm2438_vm10, %v2431_v50, 920167782  ;;  %v2177_v20 = vsub.s32 4, %v2153_v57  ;;  %v9106_v30 = vand.u32 8388607, %v2299_v16 }
 0x151   : > { %7628 = vsinq.f32 %v2283_v21  ;;  %v2159_v23 = vclz %v7251_v53  ;;  %v2439_v38 = vsel %vm2435_vm13, %v2419_v10, %v2422_v3  ;;  %v2441_v62 = vsel %vm2437_vm14, %v2425_v14, %v2440_v15 }
 0x152   : > { %v2445_v58 = vsel %vm2437_vm14, %v2428_v25, %v2444_v43  ;;  %v2447_v19 = vsel %vm2435_vm13, %v2425_v14, %v2428_v25  ;;  %v2147_v60 = vadd.s32 %v9018_v4, %v9028_v36  ;;  %v2448_v41 = vsel %vm2438_vm10, %v2434_v11, 1326507024 }
 0x153   : > { %v7252_v59 = vadd.s32 4294967294, %v2159_v23  ;;  %v2446_v1 = vsel %vm2436_vm8, %v2443_v46, %v2445_v58  ;;  %v2449_v26 = vsel %vm2437_vm14, %v2431_v50, %v2448_v41  ;;  %v2309_v54 = vadd.s32 1, %v7258_v63 }
 0x154   : > { %v9118_v44 = vmul.u32.u64.low %v9084_v34, %v2446_v1  ;;  %v9119_v0 = vmul.u32.u64.high %v9084_v34, %v2446_v1, %v9118_v44  ;;  %vm2287_vm15 = vweird.f32 %v8778_v27  ;;  %v2178_v5 = vsel %vm2093_vm6, %v2177_v20, %v2153_v57 }
 0x155   : > { %vm7253_vm2 = vcmp.lt.s32.totalorder %v7252_v59, 0  ;;  %v2442_v4 = vsel %vm2436_vm8, %v2439_v38, %v2441_v62  ;;  %v2450_v36 = vsel %vm2436_vm8, %v2447_v19, %v2449_v26  ;;  %vm2310_vm11 = vcmp.gt.s32.totalorder %v2309_v54, 0 }
 0x156   : > { %v2162_v40 = vsel %vm7253_vm2, 0, %v7252_v59  ;;  %v9128_v3 = vmul.u32.u64.low %v9084_v34, %v2450_v36  ;;  %v9129_v14 = vmul.u32.u64.high %v9084_v34, %v2450_v36, %v9128_v3  ;;  %v2311_v50 = vsel %vm2310_vm11, %v2309_v54, 0 }
 0x157   : > { %v2163_v7 = vsub.s32 32, %v2162_v40  ;;  %v2164_v25 = vshll.u32 %v9081_v8, %v2162_v40  ;;  %v2167_v63 = vsub.s32 4294967266, %v2162_v40  ;;  %vm2290_vm3 = vcmp.lt.s32.totalorder %v9079_v9, 2 }
 0x158   : > { %v2458_v52 = vmul.u32 %v9084_v34, %v2442_v4  ;;  %v2461_v57 = vadd.s32 1, %v9119_v0  ;;  %v2313_v10 = vand.u32 31, %v2311_v50  ;;  %vm2291_vm5 = vcmp.eq.s32.totalorder %v9079_v9, 0 }
 0x159   : > { %v2165_v32 = vshrl.u32 %v2147_v60, %v2163_v7  ;;  %v2168_v11 = vadd.s32 127, %v2167_v63  ;;  %v9138_v21 = vsel %vm9098_vm1, 0, %v2178_v5  ;;  %vm2294_vm9 = vcmp.eq.s32.totalorder %v9079_v9, 2 }
 0x15a   : > { %v9140_v53 = vpop.eup %7626  ;;  %vm2460_vm12 = vc.u32 %v9129_v14, %v9118_v44  ;;  %v2307_v8 = vor.u32 8388608, %v9106_v30  ;;  %v2314_v34 = vsub.s32 32, %v2313_v10  ;;  %v2184_v62 = vadd.s32 3, %v9138_v21 }
 0x15b   : > { %v9146_v15 = vpop.eup %7628  ;;  %v11609_v46 = vxor.u32 2147483648, %v9140_v53  ;;  %v2166_v43 = vor.u32 %v2165_v32, %v2164_v25  ;;  %v2169_v23 = vshll.u32 %v2168_v11, 23  ;;  %v2462_v20 = vsel %vm2460_vm12, %v2461_v57, %v9119_v0 }
 0x15c   : > { %v11610_v38 = vxor.u32 2147483648, %v9146_v15  ;;  %v2463_v58 = vadd.s32 %v2462_v20, %v2458_v52  ;;  %v9152_v19 = vshrl.u32 %v2311_v50, 5  ;;  %v2316_v1 = vshll.u32 %v11644_v31, %v2313_v10 }
 0x15d   : > { %v2296_v30 = vsel %vm2294_vm9, %v11609_v46, %v9146_v15  ;;  %v2170_v60 = vor.u32 4788187, %v2169_v23  ;;  %v2173_v59 = vcvt.s32.f32 %v2166_v43  ;;  %v2317_v0 = vshrl.u32 %v11617_v33, %v2314_v34  ;;  %v7720_v23 = vld [vmem:[%s7786_s12 + $0x38] sm:$0xff] }
 0x15e   : > { %v2293_v41 = vsel %vm2291_vm5, %v9140_v53, %v11610_v38  ;;  %v2464_v26 = vadd.s32 536870912, %v2463_v58  ;;  %v2319_v54 = vshll.u32 %v11617_v33, %v2313_v10  ;;  %v2320_v36 = vshrl.u32 %v11682_v29, %v2314_v34 }
 0x15f   : > { %v2297_v5 = vsel %vm2290_vm3, %v2293_v41, %v2296_v30  ;;  %v2171_v4 = vand.u32 2147483647, %v2170_v60  ;;  %v2322_v40 = vshll.u32 %v11682_v29, %v2313_v10  ;;  %v2323_v25 = vshrl.u32 %v11615_v37, %v2314_v34 }
 0x160   : > { %v2298_v3 = vsel %vm2287_vm15, nan, %v2297_v5  ;;  %v2465_v7 = vshrl.u32 %v2464_v26, 30  ;;  %v2325_v63 = vshll.u32 %v11615_v37, %v2313_v10  ;;  %v9174_v52 = vand.u32 3, %v2184_v62 }
 0x161   : > { %2729 = vrot.lane.b32.xlu1 %v2298_v3, %s7754_s15  ;;  %v2174_v50 = vmul.f32 %v2173_v59, %v2171_v4  ;;  %v2326_v9 = vshrl.u32 %v11630_v39, %v2314_v34  ;;  %v2328_v57 = vshll.u32 %v11630_v39, %v2313_v10  ;;  %v2315_v11 = vshrl.u32 %v11644_v31, %v2314_v34 }
 0x162   : > { %v2466_v32 = vshll.u32 %v2465_v7, 30  ;;  %v2329_v43 = vshrl.u32 %v11632_v47, %v2314_v34  ;;  %v9181_v20 = vmul.f32 2.0, %v7720_v23  ;;  %v2318_v60 = vor.u32 %v2317_v0, %v2316_v1 }
 0x163   : > { %v2175_v30 = vxor.u32 2147483648, %v2174_v50  ;;  %v2321_v41 = vor.u32 %v2320_v36, %v2319_v54  ;;  %v2327_v26 = vor.u32 %v2326_v9, %v2325_v63  ;;  %v2324_v62 = vor.u32 %v2323_v25, %v2322_v40 }
 0x164   : > { %v9183_v5 = vsub.s32 %v2463_v58, %v2466_v32  ;;  %vm2331_vm0 = vcmp.lt.s32.totalorder %v9152_v19, 1  ;;  %vm2334_vm13 = vcmp.lt.s32.totalorder %v9152_v19, 4  ;;  %v2330_v59 = vor.u32 %v2329_v43, %v2328_v57 }
 0x165   : > { %v2176_v10 = vsel %vm2093_vm6, %v2175_v30, %v2174_v50  ;;  %vm2333_vm10 = vcmp.lt.s32.totalorder %v9152_v19, 3  ;;  %v2347_v34 = vshll.u32 %v2307_v8, 8  ;;  %vm2332_vm14 = vcmp.lt.s32.totalorder %v9152_v19, 2 }
 0x166   : > { %v2179_v1 = vsel %vm9098_vm1, %v8855_v17, %v2176_v10  ;;  %v2469_v0 = vsub.s32 0, %v9183_v5  ;;  %v2336_v58 = vsel %vm2334_vm13, %v2324_v62, 2102212464  ;;  %v2339_v54 = vsel %vm2331_vm0, %v2318_v60, %v2321_v41 }
 0x167   : > { %7630 = vcosq.f32 %v2179_v1  ;;  %v2340_v4 = vsel %vm2334_vm13, %v2327_v26, 920167782  ;;  %v2614_v8 = vand.u32 2139095040, %v9181_v20  ;;  %v2335_v36 = vsel %vm2331_vm0, %v2315_v11, %v2318_v60 }
 0x168   : > { %7632 = vsinq.f32 %v2179_v1  ;;  %v7263_v48 = vmin.u32 %v2469_v0, %v9183_v5  ;;  %v2341_v40 = vsel %vm2333_vm10, %v2324_v62, %v2340_v4  ;;  %v2337_v3 = vsel %vm2333_vm10, %v2321_v41, %v2336_v58 }
 0x169   : > { %v2342_v25 = vsel %vm2332_vm14, %v2339_v54, %v2341_v40  ;;  %v2343_v63 = vsel %vm2331_vm0, %v2321_v41, %v2324_v62  ;;  %v2344_v50 = vsel %vm2334_vm13, %v2330_v59, 1326507024  ;;  %v2489_v57 = vsub.s32 4, %v2465_v7 }
 0x16a   : > { %v2471_v9 = vclz %v7263_v48  ;;  %vm9217_vm6 = vcmp.le.f32.partialorder %v2403_v56, 0.7853982  ;;  %v2345_v11 = vsel %vm2333_vm10, %v2327_v26, %v2344_v50  ;;  %vm2183_vm1 = vweird.f32 %v8855_v17 }
 0x16b   : > { %v9223_v43 = vmul.u32.u64.low %v2347_v34, %v2342_v25  ;;  %v9224_v23 = vmul.u32.u64.high %v2347_v34, %v2342_v25, %v9223_v43  ;;  %v2338_v60 = vsel %vm2332_vm14, %v2335_v36, %v2337_v3  ;;  %v2346_v41 = vsel %vm2332_vm14, %v2343_v63, %v2345_v11 }
 0x16c   : > { %v7264_v30 = vadd.s32 4294967294, %v2471_v9  ;;  %v2615_v56 = vshrl.u32 %v2614_v8, 23  ;;  %vm2186_vm8 = vcmp.lt.s32.totalorder %v9174_v52, 2  ;;  %vm2405_vm2 = vcmp.lt.s32.totalorder %v8923_v45, 0 }
 0x16d   : > { %v9234_v62 = vmul.u32.u64.low %v2347_v34, %v2346_v41  ;;  %v9235_v26 = vmul.u32.u64.high %v2347_v34, %v2346_v41, %v9234_v62  ;;  %v2459_v10 = vadd.s32 %v9118_v44, %v9129_v14  ;;  %v2490_v59 = vsel %vm2405_vm2, %v2489_v57, %v2465_v7 }
 0x16e   : > { %vm7265_vm11 = vcmp.lt.s32.totalorder %v7264_v30, 0  ;;  %v7270_v1 = vadd.s32 4294967169, %v2615_v56  ;;  %v2354_v58 = vmul.u32 %v2347_v34, %v2338_v60  ;;  %v2357_v19 = vadd.s32 1, %v9224_v23 }
 0x16f   : > { %v2474_v0 = vsel %vm7265_vm11, 0, %v7264_v30  ;;  %v2611_v54 = vand.u32 2147483647, %v9181_v20  ;;  %vm2187_vm3 = vcmp.eq.s32.totalorder %v9174_v52, 0  ;;  %vm2190_vm5 = vcmp.eq.s32.totalorder %v9174_v52, 2 }
 0x170   : > { %v2475_v4 = vsub.s32 32, %v2474_v0  ;;  %v2476_v8 = vshll.u32 %v9183_v5, %v2474_v0  ;;  %v2479_v48 = vsub.s32 4294967266, %v2474_v0  ;;  %v2621_v36 = vadd.s32 1, %v7270_v1  ;;  %v7721_v1 = vld [vmem:[%s7786_s12 + $0x30] sm:$0xff] }
 0x171   : > { %v9244_v40 = vpop.eup %7630  ;;  %v9250_v44 = vsel %vm9217_vm6, 0, %v2490_v59  ;;  %vm2356_vm9 = vc.u32 %v9235_v26, %v9223_v43  ;;  %v2618_v50 = vand.u32 8388607, %v2611_v54  ;;  %v9273_v0 = vmul.f32 2.0, %v7721_v1 }
 0x172   : > { %v9254_v14 = vpop.eup %7632  ;;  %v11613_v7 = vxor.u32 2147483648, %v9244_v40  ;;  %v2477_v5 = vshrl.u32 %v2459_v10, %v2475_v4  ;;  %v2480_v34 = vadd.s32 127, %v2479_v48  ;;  %v2358_v3 = vsel %vm2356_vm9, %v2357_v19, %v9224_v23 }
 0x173   : > { %v11614_v25 = vxor.u32 2147483648, %v9254_v14  ;;  %v2359_v63 = vadd.s32 %v2358_v3, %v2354_v58  ;;  %vm2622_vm12 = vcmp.gt.s32.totalorder %v2621_v36, 0  ;;  %v2496_v60 = vadd.s32 3, %v9250_v44 }
 0x174   : > { %v2192_v9 = vsel %vm2190_vm5, %v11613_v7, %v9254_v14  ;;  %v2478_v57 = vor.u32 %v2477_v5, %v2476_v8  ;;  %v2481_v11 = vshll.u32 %v2480_v34, 23  ;;  %v2623_v30 = vsel %vm2622_vm12, %v2621_v36, 0 }
 0x175   : > { %v2189_v23 = vsel %vm2187_vm3, %v9244_v40, %v11614_v25  ;;  %v2360_v41 = vadd.s32 536870912, %v2359_v63  ;;  %v2625_v56 = vand.u32 31, %v2623_v30  ;;  %v2619_v4 = vor.u32 8388608, %v2618_v50 }
 0x176   : > { %v2193_v62 = vsel %vm2186_vm8, %v2189_v23, %v2192_v9  ;;  %v2482_v10 = vor.u32 4788187, %v2481_v11  ;;  %v2485_v59 = vcvt.s32.f32 %v2478_v57  ;;  %v2624_v36 = vshrl.u32 %v2623_v30, 5 }
 0x177   : > { %v2194_v58 = vsel %vm2183_vm1, nan, %v2193_v62  ;;  %v9277_v19 = vshrl.u32 %v2360_v41, 30  ;;  %v2626_v8 = vsub.s32 32, %v2625_v56  ;;  %v2628_v5 = vshll.u32 %v11644_v31, %v2625_v56 }
 0x178   : > { %2727 = vrot.lane.b32.xlu0 %v2194_v58, %s7754_s15  ;;  %v2483_v48 = vand.u32 2147483647, %v2482_v10  ;;  %v2631_v52 = vshll.u32 %v11617_v33, %v2625_v56  ;;  %v2634_v9 = vshll.u32 %v11682_v29, %v2625_v56  ;;  %v2637_v57 = vshll.u32 %v11615_v37, %v2625_v56 }
 0x179   : > { %v2362_v34 = vshll.u32 %v9277_v19, 30  ;;  %v2629_v3 = vshrl.u32 %v11617_v33, %v2626_v8  ;;  %v2632_v50 = vshrl.u32 %v11682_v29, %v2626_v8  ;;  %v2635_v23 = vshrl.u32 %v11615_v37, %v2626_v8 }
 0x17a   : > { %v2486_v11 = vmul.f32 %v2485_v59, %v2483_v48  ;;  %v2638_v41 = vshrl.u32 %v11630_v39, %v2626_v8  ;;  %v2640_v62 = vshll.u32 %v11630_v39, %v2625_v56  ;;  %v2510_v10 = vand.u32 2139095040, %v9273_v0 }
 0x17b   : > { %v9289_v30 = vsub.s32 %v2359_v63, %v2362_v34  ;;  %v9293_v58 = vand.u32 3, %v2496_v60  ;;  %v2627_v46 = vshrl.u32 %v11644_v31, %v2626_v8  ;;  %v9296_v38 = vshll.u32 %v2619_v4, 8 }
 0x17c   : > { %v2487_v1 = vxor.u32 2147483648, %v2486_v11  ;;  %v2630_v48 = vor.u32 %v2629_v3, %v2628_v5  ;;  %v2633_v22 = vor.u32 %v2632_v50, %v2631_v52  ;;  %v2641_v24 = vshrl.u32 %v11632_v47, %v2626_v8 }
 0x17d   : > { %v2365_v59 = vsub.s32 0, %v9289_v30  ;;  %v2636_v34 = vor.u32 %v2635_v23, %v2634_v9  ;;  %v2639_v56 = vor.u32 %v2638_v41, %v2637_v57  ;;  %vm2643_vm0 = vcmp.lt.s32.totalorder %v2624_v36, 1 }
 0x17e   : > { %v2488_v63 = vsel %vm2405_vm2, %v2487_v1, %v2486_v11  ;;  %v2642_v4 = vor.u32 %v2641_v24, %v2640_v62  ;;  %v2511_v25 = vshrl.u32 %v2510_v10, 23  ;;  %vm2644_vm13 = vcmp.lt.s32.totalorder %v2624_v36, 2 }
 0x17f   : > { %v2491_v60 = vsel %vm9217_vm6, %v8923_v45, %v2488_v63  ;;  %v7259_v7 = vmin.u32 %v2365_v59, %v9289_v30  ;;  %vm2645_vm10 = vcmp.lt.s32.totalorder %v2624_v36, 3  ;;  %vm2646_vm14 = vcmp.lt.s32.totalorder %v2624_v36, 4 }
 0x180   : > { %7634 = vcosq.f32 %v2491_v60  ;;  %v2647_v5 = vsel %vm2643_vm0, %v2627_v46, %v2630_v48  ;;  %v2651_v52 = vsel %vm2643_vm0, %v2630_v48, %v2633_v22  ;;  %v2355_v3 = vadd.s32 %v9223_v43, %v9235_v26 }
 0x181   : > { %7636 = vsinq.f32 %v2491_v60  ;;  %v2367_v8 = vclz %v7259_v7  ;;  %v2648_v9 = vsel %vm2646_vm14, %v2636_v34, 2102212464  ;;  %v2652_v32 = vsel %vm2646_vm14, %v2639_v56, 920167782 }
 0x182   : > { %v2655_v57 = vsel %vm2643_vm0, %v2633_v22, %v2636_v34  ;;  %v2649_v24 = vsel %vm2645_vm10, %v2633_v22, %v2648_v9  ;;  %v2653_v50 = vsel %vm2645_vm10, %v2636_v34, %v2652_v32  ;;  %v2656_v23 = vsel %vm2646_vm14, %v2642_v4, 1326507024 }
 0x183   : > { %v7260_v11 = vadd.s32 4294967294, %v2367_v8  ;;  %v2650_v41 = vsel %vm2644_vm13, %v2647_v5, %v2649_v24  ;;  %v2654_v7 = vsel %vm2644_vm13, %v2651_v52, %v2653_v50  ;;  %v2657_v46 = vsel %vm2645_vm10, %v2639_v56, %v2656_v23 }
 0x184   : > { %v7266_v62 = vadd.s32 4294967169, %v2511_v25  ;;  %v2658_v43 = vsel %vm2644_vm13, %v2655_v57, %v2657_v46  ;;  %v9318_v26 = vmul.u32.u64.low %v9296_v38, %v2654_v7  ;;  %v9319_v10 = vmul.u32.u64.high %v9296_v38, %v2654_v7, %v9318_v26 }
 0x185   : > { %vm7261_vm6 = vcmp.lt.s32.totalorder %v7260_v11, 0  ;;  %v9323_v22 = vmul.u32.u64.low %v9296_v38, %v2658_v43  ;;  %v9324_v59 = vmul.u32.u64.high %v9296_v38, %v2658_v43, %v9323_v22  ;;  %v2507_v48 = vand.u32 2147483647, %v9273_v0 }
 0x186   : > { %v2370_v1 = vsel %vm7261_vm6, 0, %v7260_v11  ;;  %vm2495_vm8 = vweird.f32 %v8923_v45  ;;  %vm2499_vm2 = vcmp.eq.s32.totalorder %v9293_v58, 0  ;;  %v2666_v25 = vmul.u32 %v9296_v38, %v2650_v41 }
 0x187   : > { %v2371_v63 = vsub.s32 32, %v2370_v1  ;;  %v2372_v34 = vshll.u32 %v9289_v30, %v2370_v1  ;;  %v2375_v56 = vsub.s32 4294967266, %v2370_v1  ;;  %v2517_v36 = vadd.s32 1, %v7266_v62 }
 0x188   : > { %vm2502_vm11 = vcmp.eq.s32.totalorder %v9293_v58, 2  ;;  %v2669_v8 = vadd.s32 1, %v9319_v10  ;;  %v2385_v52 = vsub.s32 4, %v9277_v19  ;;  %vm2668_vm3 = vc.u32 %v9324_v59, %v9318_v26 }
 0x189   : > { %v2373_v60 = vshrl.u32 %v2355_v3, %v2371_v63  ;;  %v2376_v4 = vadd.s32 127, %v2375_v56  ;;  %v2514_v30 = vand.u32 8388607, %v2507_v48  ;;  %vm2518_vm5 = vcmp.gt.s32.totalorder %v2517_v36, 0 }
 0x18a   : > { %v9333_v5 = vpop.eup %7634  ;;  %v2670_v57 = vsel %vm2668_vm3, %v2669_v8, %v9319_v10  ;;  %vm2498_vm9 = vcmp.lt.s32.totalorder %v9293_v58, 2  ;;  %v2519_v50 = vsel %vm2518_vm5, %v2517_v36, 0  ;;  %vm2301_vm12 = vcmp.lt.s32.totalorder %v9013_v6, 0 }
 0x18b   : > { %v9340_v9 = vpop.eup %7636  ;;  %v2503_v38 = vxor.u32 2147483648, %v9333_v5  ;;  %v2374_v32 = vor.u32 %v2373_v60, %v2372_v34  ;;  %v2377_v3 = vshll.u32 %v2376_v4, 23  ;;  %v2671_v24 = vadd.s32 %v2670_v57, %v2666_v25 }
 0x18c   : > { %v2500_v11 = vxor.u32 2147483648, %v9340_v9  ;;  %v2386_v62 = vsel %vm2301_vm12, %v2385_v52, %v9277_v19  ;;  %v2521_v10 = vand.u32 31, %v2519_v50  ;;  %vm9362_vm0 = vcmp.le.f32.partialorder %v2299_v16, 0.7853982 }
 0x18d   : > { %v2504_v23 = vsel %vm2502_vm11, %v2503_v38, %v9340_v9  ;;  %v2378_v41 = vor.u32 4788187, %v2377_v3  ;;  %v2381_v7 = vcvt.s32.f32 %v2374_v32  ;;  %v2672_v43 = vadd.s32 536870912, %v2671_v24 }
 0x18e   : > { %v2501_v46 = vsel %vm2499_vm2, %v9333_v5, %v2500_v11  ;;  %v2515_v34 = vor.u32 8388608, %v2514_v30  ;;  %v2520_v25 = vshrl.u32 %v2519_v50, 5  ;;  %v2522_v36 = vsub.s32 32, %v2521_v10 }
 0x18f   : > { %v2505_v1 = vsel %vm2498_vm9, %v2501_v46, %v2504_v23  ;;  %v2379_v63 = vand.u32 2147483647, %v2378_v41  ;;  %v9368_v58 = vshrl.u32 %v2672_v43, 30  ;;  %v9373_v60 = vsel %vm9362_vm0, 0, %v2386_v62 }
 0x190   : > { %v2506_v56 = vsel %vm2495_vm8, nan, %v2505_v1  ;;  %v2524_v16 = vshll.u32 %v11644_v31, %v2521_v10  ;;  %v2527_v4 = vshll.u32 %v11617_v33, %v2521_v10  ;;  %v2525_v52 = vshrl.u32 %v11617_v33, %v2522_v36 }
 0x191   : > { %2733 = vrot.lane.b32.xlu1 %v2506_v56, %s7754_s15  ;;  %v2382_v19 = vmul.f32 %v2381_v7, %v2379_v63  ;;  %v2674_v8 = vshll.u32 %v9368_v58, 30  ;;  %v2530_v30 = vshll.u32 %v11682_v29, %v2521_v10  ;;  %v2533_v32 = vshll.u32 %v11615_v37, %v2521_v10 }
 0x192   : > { %v2528_v57 = vshrl.u32 %v11682_v29, %v2522_v36  ;;  %v2531_v50 = vshrl.u32 %v11615_v37, %v2522_v36  ;;  %v2534_v23 = vshrl.u32 %v11630_v39, %v2522_v36  ;;  %v2392_v41 = vadd.s32 3, %v9373_v60 }
 0x193   : > { %v2383_v3 = vxor.u32 2147483648, %v2382_v19  ;;  %v9385_v7 = vsub.s32 %v2671_v24, %v2674_v8  ;;  %vm2539_vm13 = vcmp.lt.s32.totalorder %v2520_v25, 1  ;;  %v9387_v46 = vshll.u32 %v2515_v34, 8 }
 0x194   : > { %v2526_v43 = vor.u32 %v2525_v52, %v2524_v16  ;;  %v2529_v1 = vor.u32 %v2528_v57, %v2527_v4  ;;  %v2536_v63 = vshll.u32 %v11630_v39, %v2521_v10  ;;  %v2523_v33 = vshrl.u32 %v11644_v31, %v2522_v36 }
 0x195   : > { %v2384_v62 = vsel %vm2301_vm12, %v2383_v3, %v2382_v19  ;;  %v2677_v37 = vsub.s32 0, %v9385_v7  ;;  %v2535_v24 = vor.u32 %v2534_v23, %v2533_v32  ;;  %v2532_v8 = vor.u32 %v2531_v50, %v2530_v30 }
 0x196   : > { %v2387_v56 = vsel %vm9362_vm0, %v9013_v6, %v2384_v62  ;;  %v2537_v34 = vshrl.u32 %v11632_v47, %v2522_v36  ;;  %vm2542_vm10 = vcmp.lt.s32.totalorder %v2520_v25, 4  ;;  %vm2540_vm14 = vcmp.lt.s32.totalorder %v2520_v25, 2 }
 0x197   : > { %7638 = vcosq.f32 %v2387_v56  ;;  %v7271_v19 = vmin.u32 %v2677_v37, %v9385_v7  ;;  %vm2541_vm6 = vcmp.lt.s32.totalorder %v2520_v25, 3  ;;  %v2544_v16 = vsel %vm2542_vm10, %v2532_v8, 2102212464 }
 0x198   : > { %7640 = vsinq.f32 %v2387_v56  ;;  %v2538_v10 = vor.u32 %v2537_v34, %v2536_v63  ;;  %v2547_v22 = vsel %vm2539_vm13, %v2526_v43, %v2529_v1  ;;  %v2548_v4 = vsel %vm2542_vm10, %v2535_v24, 920167782 }
 0x199   : > { %v2393_v52 = vand.u32 3, %v2392_v41  ;;  %v2679_v3 = vclz %v7271_v19  ;;  %v2543_v57 = vsel %vm2539_vm13, %v2523_v33, %v2526_v43  ;;  %v2545_v32 = vsel %vm2541_vm6, %v2529_v1, %v2544_v16 }
 0x19a   : > { %v2549_v23 = vsel %vm2541_vm6, %v2532_v8, %v2548_v4  ;;  %v2551_v30 = vsel %vm2539_vm13, %v2529_v1, %v2532_v8  ;;  %v2552_v36 = vsel %vm2542_vm10, %v2538_v10, 1326507024  ;;  %v2697_v62 = vsub.s32 4, %v9368_v58 }
 0x19b   : > { %v7272_v50 = vadd.s32 4294967294, %v2679_v3  ;;  %v2550_v37 = vsel %vm2540_vm14, %v2547_v22, %v2549_v23  ;;  %v2553_v56 = vsel %vm2541_vm6, %v2535_v24, %v2552_v36  ;;  %v2667_v63 = vadd.s32 %v9318_v26, %v9324_v59 }
 0x19c   : > { %v2554_v34 = vsel %vm2540_vm14, %v2551_v30, %v2553_v56  ;;  %v9408_v41 = vmul.u32.u64.low %v9387_v46, %v2550_v37  ;;  %v9409_v19 = vmul.u32.u64.high %v9387_v46, %v2550_v37, %v9408_v41  ;;  %v2546_v33 = vsel %vm2540_vm14, %v2543_v57, %v2545_v32 }
 0x19d   : > { %vm7273_vm2 = vcmp.lt.s32.totalorder %v7272_v50, 0  ;;  %v9414_v43 = vmul.u32.u64.low %v9387_v46, %v2554_v34  ;;  %v9415_v1 = vmul.u32.u64.high %v9387_v46, %v2554_v34, %v9414_v43  ;;  %vm11619_vm11 = vweird.f32 %v9013_v6 }
 0x19e   : > { %vm9420_vm3 = vcmp.le.f32.partialorder %v2611_v54, 0.7853982  ;;  %vm2613_vm5 = vcmp.lt.s32.totalorder %v9181_v20, 0  ;;  %v2682_v59 = vsel %vm7273_vm2, 0, %v7272_v50  ;;  %vm2398_vm9 = vcmp.eq.s32.totalorder %v2393_v52, 2 }
 0x19f   : > { %v2683_v24 = vsub.s32 32, %v2682_v59  ;;  %v2684_v8 = vshll.u32 %v9385_v7, %v2682_v59  ;;  %v2687_v25 = vsub.s32 4294967266, %v2682_v59  ;;  %v2698_v10 = vsel %vm2613_vm5, %v2697_v62, %v9368_v58 }
 0x1a0   : > { %v2562_v22 = vmul.u32 %v9387_v46, %v2546_v33  ;;  %v2565_v54 = vadd.s32 1, %v9409_v19  ;;  %v2952_v4 = vand.u32 3, %v8840_v42  ;;  %vm2395_vm12 = vcmp.eq.s32.totalorder %v2393_v52, 0 }
 0x1a1   : > { %v9429_v16 = vpop.eup %7638  ;;  %v2685_v7 = vshrl.u32 %v2667_v63, %v2683_v24  ;;  %v2688_v32 = vadd.s32 127, %v2687_v25  ;;  %vm2394_vm0 = vcmp.lt.s32.totalorder %v2393_v52, 2  ;;  %v9440_v58 = vsel %vm9420_vm3, 0, %v2698_v10 }
 0x1a2   : > { %v9434_v3 = vpop.eup %7640  ;;  %v2399_v57 = vxor.u32 2147483648, %v9429_v16  ;;  %vm2564_vm13 = vc.u32 %v9415_v1, %v9408_v41  ;;  %vm2954_vm10 = vcmp.eq.s32.totalorder %v2952_v4, 0  ;;  %vm2957_vm14 = vcmp.eq.s32.totalorder %v2952_v4, 2 }
 0x1a3   : > { %v2396_v23 = vxor.u32 2147483648, %v9434_v3  ;;  %v2686_v46 = vor.u32 %v2685_v7, %v2684_v8  ;;  %v2689_v30 = vshll.u32 %v2688_v32, 23  ;;  %v2566_v36 = vsel %vm2564_vm13, %v2565_v54, %v9409_v19 }
 0x1a4   : > { %v2400_v42 = vsel %vm2398_vm9, %v2399_v57, %v9434_v3  ;;  %v2567_v52 = vadd.s32 %v2566_v36, %v2562_v22  ;;  %v2704_v63 = vadd.s32 3, %v9440_v58  ;;  %vm2953_vm6 = vcmp.lt.s32.totalorder %v2952_v4, 2 }
 0x1a5   : > { %v2397_v50 = vsel %vm2395_vm12, %v9429_v16, %v2396_v23  ;;  %v2690_v37 = vor.u32 4788187, %v2689_v30  ;;  %v2693_v56 = vcvt.s32.f32 %v2686_v46  ;;  %v2956_v19 = vsel %vm2954_vm10, %v8937_v28, %v2084_v12 }
 0x1a6   : > { %v2401_v62 = vsel %vm2394_vm0, %v2397_v50, %v2400_v42  ;;  %v2568_v33 = vadd.s32 536870912, %v2567_v52  ;;  %v2959_v59 = vsel %vm2957_vm14, %v2087_v51, %v8944_v55  ;;  %v3055_v24 = vand.u32 3, %v9138_v21 }
 0x1a7   : > { %v2402_v34 = vsel %vm11619_vm11, nan, %v2401_v62  ;;  %v2691_v43 = vand.u32 2147483647, %v2690_v37  ;;  %v3364_v25 = vand.u32 3, %v9250_v44  ;;  %v9461_v22 = vand.u32 3, %v2704_v63 }
 0x1a8   : > { %2731 = vrot.lane.b32.xlu0 %v2402_v34, %s7754_s15  ;;  %v2569_v8 = vshrl.u32 %v2568_v33, 30  ;;  %vm3056_vm2 = vcmp.lt.s32.totalorder %v3055_v24, 2  ;;  %vm3057_vm9 = vcmp.eq.s32.totalorder %v3055_v24, 0  ;;  %v2960_v4 = vsel %vm2953_vm6, %v2956_v19, %v2959_v59 }
 0x1a9   : > { %v2694_v10 = vmul.f32 %v2693_v56, %v2691_v43  ;;  %v11711_v7 = vxor.u32 2147483648, %v9254_v14  ;;  %vm3060_vm12 = vcmp.eq.s32.totalorder %v3055_v24, 2  ;;  %v11712_v28 = vxor.u32 2147483648, %v9244_v40 }
 0x1aa   : > { %v2570_v54 = vshll.u32 %v2569_v8, 30  ;;  %vm3366_vm0 = vcmp.eq.s32.totalorder %v3364_v25, 0  ;;  %v3261_v51 = vand.u32 3, %v9373_v60  ;;  %vm3365_vm13 = vcmp.lt.s32.totalorder %v3364_v25, 2 }
 0x1ab   : > { %v3059_v12 = vsel %vm3057_vm9, %v9244_v40, %v11711_v7  ;;  %v2695_v32 = vxor.u32 2147483648, %v2694_v10  ;;  %v3062_v55 = vsel %vm3060_vm12, %v11712_v28, %v9254_v14  ;;  %v3368_v42 = vsel %vm3366_vm0, %v9333_v5, %v2500_v11 }
 0x1ac   : > { %v9470_v21 = vsub.s32 %v2567_v52, %v2570_v54  ;;  %v3063_v44 = vsel %vm3056_vm2, %v3059_v12, %v3062_v55  ;;  %v2849_v30 = vand.u32 3, %v8916_v13  ;;  %vm3369_vm10 = vcmp.eq.s32.totalorder %v3364_v25, 2  ;;  %v7723_v25 = vld [vmem:[%s7786_s12] sm:$0xff] }
 0x1ad   : > { %v2696_v46 = vsel %vm2613_vm5, %v2695_v32, %v2694_v10  ;;  %v9480_v40 = vsel %vm2183_vm1, nan, %v3063_v44  ;;  %v3158_v36 = vand.u32 3, %v9052_v2  ;;  %v3371_v11 = vsel %vm3369_vm10, %v2503_v38, %v9340_v9 }
 0x1ae   : > { %v2699_v14 = vsel %vm9420_vm3, %v9181_v20, %v2696_v46  ;;  %v2573_v60 = vsub.s32 0, %v9470_v21  ;;  %v2593_v50 = vsub.s32 4, %v2569_v8  ;;  %v9490_v13 = vsel %vm3365_vm13, %v3368_v42, %v3371_v11 }
 0x1af   : > { %7642 = vcosq.f32 %v2699_v14  ;;  %vm3263_vm5 = vcmp.eq.s32.totalorder %v3261_v51, 0  ;;  %vm9494_vm1 = vcmp.le.f32.partialorder %v2507_v48, 0.7853982  ;;  %vm2509_vm3 = vcmp.lt.s32.totalorder %v9273_v0, 0 }
 0x1b0   : > { %7644 = vsinq.f32 %v2699_v14  ;;  %v7267_v2 = vmin.u32 %v2573_v60, %v9470_v21  ;;  %vm2710_vm14 = vcmp.eq.s32.totalorder %v9461_v22, 2  ;;  %vm3262_vm6 = vcmp.lt.s32.totalorder %v3261_v51, 2 }
 0x1b1   : > { %v3265_v5 = vsel %vm3263_vm5, %v9429_v16, %v2396_v23  ;;  %vm3266_vm2 = vcmp.eq.s32.totalorder %v3261_v51, 2  ;;  %vm2707_vm9 = vcmp.eq.s32.totalorder %v9461_v22, 0  ;;  %v9505_v38 = vsel %vm2079_vm4, nan, %v2960_v4 }
 0x1b2   : > { %v2575_v9 = vclz %v7267_v2  ;;  %vm2851_vm12 = vcmp.eq.s32.totalorder %v2849_v30, 0  ;;  %vm2854_vm0 = vcmp.eq.s32.totalorder %v2849_v30, 2  ;;  %vm2706_vm13 = vcmp.lt.s32.totalorder %v9461_v22, 2 }
 0x1b3   : > { %v2594_v48 = vsel %vm2509_vm3, %v2593_v50, %v2569_v8  ;;  %vm3160_vm10 = vcmp.eq.s32.totalorder %v3158_v36, 0  ;;  %vm3163_vm11 = vcmp.eq.s32.totalorder %v3158_v36, 2  ;;  %v3268_v26 = vsel %vm3266_vm2, %v2399_v57, %v9434_v3  ;;  %v7722_v3 = vld [vmem:[%s7786_s12 + $0x8] sm:$0xff] }
 0x1b4   : > { %vm2703_vm5 = vweird.f32 %v9181_v20  ;;  %v2563_v61 = vadd.s32 %v9408_v41, %v9415_v1  ;;  %v7268_v23 = vadd.s32 4294967294, %v2575_v9  ;;  %vm2850_vm4 = vcmp.lt.s32.totalorder %v2849_v30, 2 }
 0x1b5   : > { %v9517_v52 = vsel %vm3262_vm6, %v3265_v5, %v3268_v26  ;;  %v11715_v62 = vxor.u32 2147483648, %v9039_v18  ;;  %v11716_v56 = vxor.u32 2147483648, %v9032_v49  ;;  %vm3159_vm2 = vcmp.lt.s32.totalorder %v3158_v36, 2 }
 0x1b6   : > { %v9526_v57 = vmul.f32 4.0, %v7722_v3  ;;  %vm7269_vm7 = vcmp.lt.s32.totalorder %v7268_v23, 0  ;;  %v9530_v41 = vsel %vm9494_vm1, 0, %v2594_v48  ;;  %v11717_v1 = vxor.u32 2147483648, %v9146_v15 }
 0x1b7   : > { %v2853_v37 = vsel %vm2851_vm12, %v9032_v49, %v11715_v62  ;;  %v2856_v16 = vsel %vm2854_vm0, %v11716_v56, %v9039_v18  ;;  %v11718_v34 = vxor.u32 2147483648, %v9140_v53  ;;  %v2578_v49 = vsel %vm7269_vm7, 0, %v7268_v23 }
 0x1b8   : > { %v3162_v63 = vsel %vm3160_vm10, %v9140_v53, %v11717_v1  ;;  %v3570_v18 = vand.u32 3, %v9440_v58  ;;  %v3733_v43 = vand.u32 2147483647, %v9526_v57  ;;  %v3736_v19 = vand.u32 2139095040, %v9526_v57 }
 0x1b9   : > { %v3165_v33 = vsel %vm3163_vm11, %v11718_v34, %v9146_v15  ;;  %v2579_v59 = vsub.s32 32, %v2578_v49  ;;  %v2580_v24 = vshll.u32 %v9470_v21, %v2578_v49  ;;  %v2583_v8 = vsub.s32 4294967266, %v2578_v49  ;;  %v7643_v54 = vpop.eup %7642 }
 0x1ba   : > { %v9543_v10 = vmul.f32 4.0, %v7723_v25  ;;  %v2600_v4 = vadd.s32 3, %v9530_v41  ;;  %v9547_v53 = vsel %vm2850_vm4, %v2853_v37, %v2856_v16  ;;  %v3166_v15 = vsel %vm3159_vm2, %v3162_v63, %v3165_v33  ;;  %v7645_v7 = vpop.eup %7644 }
 0x1bb   : > { %v3737_v58 = vshrl.u32 %v3736_v19, 23  ;;  %v2711_v12 = vxor.u32 2147483648, %v7643_v54  ;;  %v2581_v32 = vshrl.u32 %v2563_v61, %v2579_v59  ;;  %v2584_v28 = vadd.s32 127, %v2583_v8 }
 0x1bc   : > { %v3740_v55 = vand.u32 8388607, %v3733_v43  ;;  %v2708_v51 = vxor.u32 2147483648, %v7645_v7  ;;  %vm3572_vm7 = vcmp.eq.s32.totalorder %v3570_v18, 0  ;;  %vm3575_vm11 = vcmp.eq.s32.totalorder %v3570_v18, 2 }
 0x1bd   : > { %v7310_v21 = vadd.s32 4294967169, %v3737_v58  ;;  %v2712_v44 = vsel %vm2710_vm14, %v2711_v12, %v7645_v7  ;;  %v2582_v42 = vor.u32 %v2581_v32, %v2580_v24  ;;  %v2585_v46 = vshll.u32 %v2584_v28, 23 }
 0x1be   : > { %v3632_v30 = vand.u32 2139095040, %v9543_v10  ;;  %v2709_v14 = vsel %vm2707_vm9, %v7643_v54, %v2708_v51  ;;  %v3167_v60 = vsel %vm2287_vm15, nan, %v3166_v15  ;;  %vm3571_vm6 = vcmp.lt.s32.totalorder %v3570_v18, 2 }
 0x1bf   : > { %v3743_v36 = vadd.s32 1, %v7310_v21  ;;  %v2713_v11 = vsel %vm2706_vm13, %v2709_v14, %v2712_v44  ;;  %v2586_v50 = vor.u32 4788187, %v2585_v46  ;;  %v2589_v2 = vcvt.s32.f32 %v2582_v42 }
 0x1c0   : > { %v3741_v5 = vor.u32 8388608, %v3740_v55  ;;  %v2714_v9 = vsel %vm2703_vm5, nan, %v2713_v11  ;;  %v3574_v48 = vsel %vm3572_vm7, %v7643_v54, %v2708_v51  ;;  %v3577_v26 = vsel %vm3575_vm11, %v2711_v12, %v7645_v7 }
 0x1c1   : > { %vm3744_vm14 = vcmp.gt.s32.totalorder %v3743_v36, 0  ;;  %2737 = vrot.lane.b32.xlu1 %v2714_v9, %s7754_s15  ;;  %v2587_v27 = vand.u32 2147483647, %v2586_v50  ;;  %v9566_v61 = vand.u32 3, %v2600_v4  ;;  %v3633_v62 = vshrl.u32 %v3632_v30, 23 }
 0x1c2   : > { %v3745_v23 = vsel %vm3744_vm14, %v3743_v36, 0  ;;  %v3373_v22 = vsel %vm2495_vm8, nan, %v9490_v13  ;;  %v3629_v16 = vand.u32 2147483647, %v9543_v10  ;;  %v3578_v1 = vsel %vm3571_vm6, %v3574_v48, %v3577_v26 }
 0x1c3   : > { %v3746_v37 = vshrl.u32 %v3745_v23, 5  ;;  %v3747_v56 = vand.u32 31, %v3745_v23  ;;  %v2590_v3 = vmul.f32 %v2589_v2, %v2587_v27  ;;  %v9573_v63 = vshll.u32 %v3741_v5, 8 }
 0x1c4   : > { %v7306_v34 = vadd.s32 4294967169, %v3633_v62  ;;  %v11719_v19 = vmov 2475754826   ;;  %v11720_v45 = vmov 2102212464   ;;  %v9615_v20 = vand.u32 3, %v9530_v41 }
 0x1c5   : > { %v3748_v33 = vsub.s32 32, %v3747_v56  ;;  %v3750_v49 = vshll.u32 %v11644_v31, %v3747_v56  ;;  %v3753_v59 = vshll.u32 %v11719_v19, %v3747_v56  ;;  %v3756_v24 = vshll.u32 %v11682_v29, %v3747_v56  ;;  %3590 = vrot.lane.b32.xlu1 %v9505_v38, %s7755_s16 }
 0x1c6   : > { %v2591_v8 = vxor.u32 2147483648, %v2590_v3  ;;  %v3759_v13 = vshll.u32 %v11720_v45, %v3747_v56  ;;  %v3762_v18 = vshll.u32 %v11630_v39, %v3747_v56  ;;  %vm3765_vm15 = vcmp.lt.s32.totalorder %v3746_v37, 1 }
 0x1c7   : > { %v3749_v25 = vshrl.u32 %v11644_v31, %v3748_v33  ;;  %v3751_v54 = vshrl.u32 %v11719_v19, %v3748_v33  ;;  %v3754_v4 = vshrl.u32 %v11682_v29, %v3748_v33  ;;  %v3757_v15 = vshrl.u32 %v11720_v45, %v3748_v33 }
 0x1c8   : > { %v2592_v58 = vsel %vm2509_vm3, %v2591_v8, %v2590_v3  ;;  %v3760_v7 = vshrl.u32 %v11630_v39, %v3748_v33  ;;  %v3763_v38 = vshrl.u32 %v11632_v47, %v3748_v33  ;;  %vm3766_vm8 = vcmp.lt.s32.totalorder %v3746_v37, 2 }
 0x1c9   : > { %v2595_v12 = vsel %vm9494_vm1, %v9273_v0, %v2592_v58  ;;  %v3752_v32 = vor.u32 %v3751_v54, %v3750_v49  ;;  %v3755_v28 = vor.u32 %v3754_v4, %v3753_v59  ;;  %v3758_v55 = vor.u32 %v3757_v15, %v3756_v24  ;;  %3594 = vrot.lane.b32.xlu1 %v3167_v60, %s7755_s16 }
 0x1ca   : > { %7646 = vcosq.f32 %v2595_v12  ;;  %v3761_v51 = vor.u32 %v3760_v7, %v3759_v13  ;;  %v3764_v21 = vor.u32 %v3763_v38, %v3762_v18  ;;  %vm3767_vm9 = vcmp.lt.s32.totalorder %v3746_v37, 3 }
 0x1cb   : > { %7648 = vsinq.f32 %v2595_v12  ;;  %vm3768_vm3 = vcmp.lt.s32.totalorder %v3746_v37, 4  ;;  %v3769_v44 = vsel %vm3765_vm15, %v3749_v25, %v3752_v32  ;;  %v3773_v42 = vsel %vm3765_vm15, %v3752_v32, %v3755_v28 }
 0x1cc   : > { %v3770_v46 = vsel %vm3768_vm3, %v3758_v55, 2102212464  ;;  %v3774_v30 = vsel %vm3768_vm3, %v3761_v51, 920167782  ;;  %v3777_v17 = vsel %vm3765_vm15, %v3755_v28, %v3758_v55  ;;  %v3778_v14 = vsel %vm3768_vm3, %v3764_v21, 1326507024 }
 0x1cd   : > { %v3771_v36 = vsel %vm3767_vm9, %v3755_v28, %v3770_v46  ;;  %v3775_v11 = vsel %vm3767_vm9, %v3758_v55, %v3774_v30  ;;  %v3779_v50 = vsel %vm3767_vm9, %v3761_v51, %v3778_v14  ;;  %v3639_v2 = vadd.s32 1, %v7306_v34  ;;  %3598 = vrot.lane.b32.xlu1 %v3373_v22, %s7755_s16 }
 0x1ce   : > { %v3579_v60 = vsel %vm2703_vm5, nan, %v3578_v1  ;;  %v3772_v5 = vsel %vm3766_vm8, %v3769_v44, %v3771_v36  ;;  %v3776_v9 = vsel %vm3766_vm8, %v3773_v42, %v3775_v11  ;;  %v3780_v48 = vsel %vm3766_vm8, %v3777_v17, %v3779_v50 }
 0x1cf   : > { %v9604_v26 = vmul.u32.u64.low %v9573_v63, %v3780_v48  ;;  %v9605_v27 = vmul.u32.u64.high %v9573_v63, %v3780_v48, %v9604_v26  ;;  %v9608_v23 = vmul.u32.u64.low %v9573_v63, %v3776_v9  ;;  %v9609_v62 = vmul.u32.u64.high %v9573_v63, %v3776_v9, %v9608_v23 }
 0x1d0   : > { %v3636_v22 = vand.u32 8388607, %v3629_v16  ;;  %vm3640_vm1 = vcmp.gt.s32.totalorder %v3639_v2, 0  ;;  %vm2599_vm12 = vweird.f32 %v9273_v0  ;;  %vm11721_vm0 = vweird.f32 %v8637_v35 }
 0x1d1   : > { %v3641_v56 = vsel %vm3640_vm1, %v3639_v2, 0  ;;  %v2858_v37 = vsel %vm11721_vm0, nan, %v9547_v53  ;;  %3602 = vrot.lane.b32.xlu1 %v3579_v60, %s7755_s16  ;;  %v3788_v3 = vmul.u32 %v9573_v63, %v3772_v5  ;;  %vm2602_vm13 = vcmp.lt.s32.totalorder %v9566_v61, 2  ;;  %v7724_v53 = vld [vmem:[%s7786_s12 + $0x18] sm:$0xff] }
 0x1d2   : > { %v3643_v1 = vand.u32 31, %v3641_v56  ;;  %vm2603_vm10 = vcmp.eq.s32.totalorder %v9566_v61, 0  ;;  %vm3790_vm5 = vc.u32 %v9605_v27, %v9608_v23  ;;  %v3791_v41 = vadd.s32 1, %v9609_v62 }
 0x1d3   : > { %vm2606_vm4 = vcmp.eq.s32.totalorder %v9566_v61, 2  ;;  %v3637_v33 = vor.u32 8388608, %v3636_v22  ;;  %v9630_v49 = vmul.f32 4.0, %v7724_v53  ;;  %vm3472_vm2 = vcmp.eq.s32.totalorder %v9615_v20, 2 }
 0x1d4   : > { %v7647_v34 = vpop.eup %7646  ;;  %v3644_v35 = vsub.s32 32, %v3643_v1  ;;  %v3792_v24 = vsel %vm3790_vm5, %v3791_v41, %v9609_v62  ;;  %v3646_v8 = vshll.u32 %v11644_v31, %v3643_v1  ;;  %v3649_v13 = vshll.u32 %v11719_v19, %v3643_v1 }
 0x1d5   : > { %v7649_v59 = vpop.eup %7648  ;;  %v2607_v63 = vxor.u32 2147483648, %v7647_v34  ;;  %vm3469_vm7 = vcmp.eq.s32.totalorder %v9615_v20, 0  ;;  %v3793_v25 = vadd.s32 %v3792_v24, %v3788_v3  ;;  %v3642_v54 = vshrl.u32 %v3641_v56, 5 }
 0x1d6   : > { %v2604_v18 = vxor.u32 2147483648, %v7649_v59  ;;  %v3647_v4 = vshrl.u32 %v11719_v19, %v3644_v35  ;;  %v3650_v58 = vshrl.u32 %v11682_v29, %v3644_v35  ;;  %v3652_v7 = vshll.u32 %v11682_v29, %v3643_v1 }
 0x1d7   : > { %v2608_v15 = vsel %vm2606_vm4, %v2607_v63, %v7649_v59  ;;  %v3653_v38 = vshrl.u32 %v11720_v45, %v3644_v35  ;;  %v3794_v32 = vadd.s32 536870912, %v3793_v25  ;;  %v3655_v28 = vshll.u32 %v11720_v45, %v3643_v1 }
 0x1d8   : > { %v2605_v12 = vsel %vm2603_vm10, %v7647_v34, %v2604_v18  ;;  %v9646_v55 = vshll.u32 %v3637_v33, 8  ;;  %v3648_v21 = vor.u32 %v3647_v4, %v3646_v8  ;;  %v3651_v44 = vor.u32 %v3650_v58, %v3649_v13 }
 0x1d9   : > { %v2609_v51 = vsel %vm2602_vm13, %v2605_v12, %v2608_v15  ;;  %v3658_v42 = vshll.u32 %v11630_v39, %v3643_v1  ;;  %vm3468_vm11 = vcmp.lt.s32.totalorder %v9615_v20, 2  ;;  %v3795_v30 = vshrl.u32 %v3794_v32, 30  ;;  %v7725_v32 = vld [vmem:[%s7786_s12 + $0x10] sm:$0xff] }
 0x1da   : > { %v2610_v46 = vsel %vm2599_vm12, nan, %v2609_v51  ;;  %v3656_v17 = vshrl.u32 %v11630_v39, %v3644_v35  ;;  %v3944_v14 = vand.u32 2139095040, %v9630_v49  ;;  %v3645_v36 = vshrl.u32 %v11644_v31, %v3644_v35 }
 0x1db   : > { %2735 = vrot.lane.b32.xlu0 %v2610_v46, %s7754_s15  ;;  %v3654_v61 = vor.u32 %v3653_v38, %v3652_v7  ;;  %v3659_v11 = vshrl.u32 %v11632_v47, %v3644_v35  ;;  %vm3661_vm6 = vcmp.lt.s32.totalorder %v3642_v54, 1  ;;  %v3796_v50 = vshll.u32 %v3795_v30, 30 }
 0x1dc   : > { %v3657_v2 = vor.u32 %v3656_v17, %v3655_v28  ;;  %vm3663_vm14 = vcmp.lt.s32.totalorder %v3642_v54, 3  ;;  %vm3664_vm15 = vcmp.lt.s32.totalorder %v3642_v54, 4  ;;  %vm3662_vm8 = vcmp.lt.s32.totalorder %v3642_v54, 2  ;;  %v7726_v28 = vld [vmem:[%s7786_s12 + $0x28] sm:$0xff] }
 0x1dd   : > { %v3660_v60 = vor.u32 %v3659_v11, %v3658_v42  ;;  %v3666_v5 = vsel %vm3664_vm15, %v3654_v61, 2102212464  ;;  %v3669_v9 = vsel %vm3661_vm6, %v3648_v21, %v3651_v44  ;;  %v9661_v48 = vsub.s32 %v3793_v25, %v3796_v50 }
 0x1de   : > { %v3670_v26 = vsel %vm3664_vm15, %v3657_v2, 920167782  ;;  %v3941_v62 = vand.u32 2147483647, %v9630_v49  ;;  %v3945_v22 = vshrl.u32 %v3944_v14, 23  ;;  %v3665_v56 = vsel %vm3661_vm6, %v3645_v36, %v3648_v21 }
 0x1df   : > { %3588 = vrot.lane.b32.xlu0 %v2858_v37, %s7755_s16  ;;  %v3667_v3 = vsel %vm3663_vm14, %v3651_v44, %v3666_v5  ;;  %v3671_v1 = vsel %vm3663_vm14, %v3654_v61, %v3670_v26  ;;  %v3673_v41 = vsel %vm3661_vm6, %v3651_v44, %v3654_v61  ;;  %v3474_v33 = vsel %vm3472_vm2, %v2607_v63, %v7649_v59 }
 0x1e0   : > { %v3799_v35 = vsub.s32 0, %v9661_v48  ;;  %v3672_v53 = vsel %vm3662_vm8, %v3669_v9, %v3671_v1  ;;  %v3674_v24 = vsel %vm3664_vm15, %v3660_v60, 1326507024  ;;  %v3471_v37 = vsel %vm3469_vm7, %v7647_v34, %v2604_v18 }
 0x1e1   : > { %v3675_v8 = vsel %vm3663_vm14, %v3657_v2, %v3674_v24  ;;  %v9679_v13 = vmul.u32.u64.low %v9646_v55, %v3672_v53  ;;  %v9680_v25 = vmul.u32.u64.high %v9646_v55, %v3672_v53, %v9679_v13  ;;  %v3668_v63 = vsel %vm3662_vm8, %v3665_v56, %v3667_v3 }
 0x1e2   : > { %v7311_v59 = vmin.u32 %v3799_v35, %v9661_v48  ;;  %v3676_v4 = vsel %vm3662_vm8, %v3673_v41, %v3675_v8  ;;  %v7318_v15 = vadd.s32 4294967169, %v3945_v22  ;;  %vm11722_vm9 = vweird.f32 %v9013_v6 }
 0x1e3   : > { %3592 = vrot.lane.b32.xlu0 %v9480_v40, %s7755_s16  ;;  %v3270_v34 = vsel %vm11722_vm9, nan, %v9517_v52  ;;  %v3819_v18 = vsub.s32 4, %v3795_v30  ;;  %v9692_v58 = vmul.u32.u64.low %v9646_v55, %v3676_v4  ;;  %v9693_v7 = vmul.u32.u64.high %v9646_v55, %v3676_v4, %v9692_v58 }
 0x1e4   : > { %v3801_v38 = vclz %v7311_v59  ;;  %v3948_v12 = vand.u32 8388607, %v3941_v62  ;;  %v9698_v54 = vmul.f32 4.0, %v7725_v32  ;;  %v9701_v51 = vmul.f32 4.0, %v7726_v28 }
 0x1e5   : > { %v3475_v40 = vsel %vm3468_vm11, %v3471_v37, %v3474_v33  ;;  %v3684_v6 = vmul.u32 %v9646_v55, %v3668_v63  ;;  %v3687_v52 = vadd.s32 1, %v9680_v25  ;;  %v3951_v21 = vadd.s32 1, %v7318_v15 }
 0x1e6   : > { %vm9709_vm3 = vcmp.le.f32.partialorder %v3733_v43, 0.7853982  ;;  %vm3735_vm1 = vcmp.lt.s32.totalorder %v9526_v57, 0  ;;  %v7312_v42 = vadd.s32 4294967294, %v3801_v38  ;;  %v3837_v46 = vand.u32 2147483647, %v9698_v54 }
 0x1e7   : > { %3596 = vrot.lane.b32.xlu0 %v3270_v34, %s7755_s16  ;;  %v3789_v20 = vadd.s32 %v9608_v23, %v9605_v27  ;;  %v3820_v55 = vsel %vm3735_vm1, %v3819_v18, %v3795_v30  ;;  %vm3686_vm0 = vc.u32 %v9693_v7, %v9679_v13  ;;  %vm3952_vm13 = vcmp.gt.s32.totalorder %v3951_v21, 0 }
 0x1e8   : > { %v3476_v43 = vsel %vm2599_vm12, nan, %v3475_v40  ;;  %vm7313_vm10 = vcmp.lt.s32.totalorder %v7312_v42, 0  ;;  %v3688_v17 = vsel %vm3686_vm0, %v3687_v52, %v9680_v25  ;;  %v3953_v14 = vsel %vm3952_vm13, %v3951_v21, 0 }
 0x1e9   : > { %v3804_v36 = vsel %vm7313_vm10, 0, %v7312_v42  ;;  %v3689_v61 = vadd.s32 %v3688_v17, %v3684_v6  ;;  %v3949_v11 = vor.u32 8388608, %v3948_v12  ;;  %v3955_v50 = vand.u32 31, %v3953_v14 }
 0x1ea   : > { %v3805_v2 = vsub.s32 32, %v3804_v36  ;;  %v3806_v27 = vshll.u32 %v9661_v48, %v3804_v36  ;;  %v3809_v23 = vsub.s32 4294967266, %v3804_v36  ;;  %v9728_v30 = vsel %vm9709_vm3, 0, %v3820_v55 }
 0x1eb   : > { %3600 = vrot.lane.b32.xlu0 %v3476_v43, %s7755_s16  ;;  %v3690_v0 = vadd.s32 536870912, %v3689_v61  ;;  %v9731_v60 = vshrl.u32 %v3953_v14, 5  ;;  %v3956_v5 = vsub.s32 32, %v3955_v50  ;;  %v3958_v9 = vshll.u32 %v11644_v31, %v3955_v50 }
 0x1ec   : > { %v3807_v26 = vshrl.u32 %v3789_v20, %v3805_v2  ;;  %v3810_v22 = vadd.s32 127, %v3809_v23  ;;  %v3961_v56 = vshll.u32 %v11719_v19, %v3955_v50  ;;  %v3964_v3 = vshll.u32 %v11682_v29, %v3955_v50 }
 0x1ed   : > { %v3691_v48 = vshrl.u32 %v3690_v0, 30  ;;  %v3959_v1 = vshrl.u32 %v11719_v19, %v3956_v5  ;;  %v3962_v41 = vshrl.u32 %v11682_v29, %v3956_v5  ;;  %v3967_v33 = vshll.u32 %v11720_v45, %v3955_v50 }
 0x1ee   : > { %v3808_v35 = vor.u32 %v3807_v26, %v3806_v27  ;;  %v3811_v53 = vshll.u32 %v3810_v22, 23  ;;  %v3965_v24 = vshrl.u32 %v11720_v45, %v3956_v5  ;;  %v3968_v37 = vshrl.u32 %v11630_v39, %v3956_v5 }
 0x1ef   : > { %v3826_v8 = vadd.s32 3, %v9728_v30  ;;  %vm3631_vm12 = vcmp.lt.s32.totalorder %v9543_v10, 0  ;;  %v3692_v25 = vshll.u32 %v3691_v48, 30  ;;  %v9743_v59 = vshll.u32 %v3949_v11, 8 }
 0x1f0   : > { %v3840_v63 = vand.u32 2139095040, %v9698_v54  ;;  %v3812_v4 = vor.u32 4788187, %v3811_v53  ;;  %v3815_v15 = vcvt.s32.f32 %v3808_v35  ;;  %v3960_v34 = vor.u32 %v3959_v1, %v3958_v9 }
 0x1f1   : > { %v3963_v18 = vor.u32 %v3962_v41, %v3961_v56  ;;  %v9746_v58 = vsub.s32 %v3689_v61, %v3692_v25  ;;  %v3969_v38 = vor.u32 %v3968_v37, %v3967_v33  ;;  %v3970_v12 = vshll.u32 %v11630_v39, %v3955_v50 }
 0x1f2   : > { %v3971_v32 = vshrl.u32 %v11632_v47, %v3956_v5  ;;  %v3813_v28 = vand.u32 2147483647, %v3812_v4  ;;  %v3957_v40 = vshrl.u32 %v11644_v31, %v3956_v5  ;;  %v3966_v6 = vor.u32 %v3965_v24, %v3964_v3 }
 0x1f3   : > { %vm3973_vm5 = vcmp.lt.s32.totalorder %v9731_v60, 1  ;;  %vm9754_vm4 = vcmp.le.f32.partialorder %v3629_v16, 0.7853982  ;;  %v3695_v21 = vsub.s32 0, %v9746_v58  ;;  %v3715_v42 = vsub.s32 4, %v3691_v48 }
 0x1f4   : > { %vm3975_vm2 = vcmp.lt.s32.totalorder %v9731_v60, 3  ;;  %v3841_v20 = vshrl.u32 %v3840_v63, 23  ;;  %v3816_v55 = vmul.f32 %v3815_v15, %v3813_v28  ;;  %v3972_v43 = vor.u32 %v3971_v32, %v3970_v12 }
 0x1f5   : > { %vm3974_vm7 = vcmp.lt.s32.totalorder %v9731_v60, 2  ;;  %vm3976_vm11 = vcmp.lt.s32.totalorder %v9731_v60, 4  ;;  %v7307_v17 = vmin.u32 %v3695_v21, %v9746_v58  ;;  %v3981_v14 = vsel %vm3973_vm5, %v3960_v34, %v3963_v18 }
 0x1f6   : > { %v3978_v16 = vsel %vm3976_vm11, %v3966_v6, 2102212464  ;;  %v3982_v36 = vsel %vm3976_vm11, %v3969_v38, 920167782  ;;  %v3817_v61 = vxor.u32 2147483648, %v3816_v55  ;;  %v3977_v11 = vsel %vm3973_vm5, %v3957_v40, %v3960_v34 }
 0x1f7   : > { %v3979_v50 = vsel %vm3975_vm2, %v3963_v18, %v3978_v16  ;;  %v3983_v2 = vsel %vm3975_vm2, %v3966_v6, %v3982_v36  ;;  %v3685_v27 = vadd.s32 %v9679_v13, %v9693_v7  ;;  %v3697_v23 = vclz %v7307_v17 }
 0x1f8   : > { %v3985_v0 = vsel %vm3973_vm5, %v3963_v18, %v3966_v6  ;;  %v7314_v5 = vadd.s32 4294967169, %v3841_v20  ;;  %v3818_v9 = vsel %vm3735_vm1, %v3817_v61, %v3816_v55  ;;  %v3716_v26 = vsel %vm3631_vm12, %v3715_v42, %v3691_v48 }
 0x1f9   : > { %v3984_v22 = vsel %vm3974_vm7, %v3981_v14, %v3983_v2  ;;  %v3986_v56 = vsel %vm3976_vm11, %v3972_v43, 1326507024  ;;  %v3821_v13 = vsel %vm9709_vm3, %v9526_v57, %v3818_v9  ;;  %v7308_v7 = vadd.s32 4294967294, %v3697_v23 }
 0x1fa   : > { %v3980_v3 = vsel %vm3974_vm7, %v3977_v11, %v3979_v50  ;;  %v3987_v1 = vsel %vm3975_vm2, %v3969_v38, %v3986_v56  ;;  %7650 = vcosq.f32 %v3821_v13  ;;  %v9807_v24 = vsel %vm9754_vm4, 0, %v3716_v26 }
 0x1fb   : > { %v3988_v48 = vsel %vm3974_vm7, %v3985_v0, %v3987_v1  ;;  %v9797_v41 = vmul.u32.u64.low %v9743_v59, %v3984_v22  ;;  %v9798_v33 = vmul.u32.u64.high %v9743_v59, %v3984_v22, %v9797_v41  ;;  %7652 = vsinq.f32 %v3821_v13 }
 0x1fc   : > { %vm7309_vm6 = vcmp.lt.s32.totalorder %v7308_v7, 0  ;;  %v9802_v44 = vmul.u32.u64.low %v9743_v59, %v3988_v48  ;;  %v9803_v35 = vmul.u32.u64.high %v9743_v59, %v3988_v48, %v9802_v44  ;;  %v3844_v60 = vand.u32 8388607, %v3837_v46 }
 0x1fd   : > { %v3700_v53 = vsel %vm7309_vm6, 0, %v7308_v7  ;;  %v3847_v37 = vadd.s32 1, %v7314_v5  ;;  %v3996_v15 = vmul.u32 %v9743_v59, %v3980_v3  ;;  %v3827_v34 = vand.u32 3, %v3826_v8 }
 0x1fe   : > { %v3701_v25 = vsub.s32 32, %v3700_v53  ;;  %v3702_v63 = vshll.u32 %v9746_v58, %v3700_v53  ;;  %v3705_v4 = vsub.s32 4294967266, %v3700_v53  ;;  %v3999_v18 = vadd.s32 1, %v9798_v33 }
 0x1ff   : > { %vm3848_vm14 = vcmp.gt.s32.totalorder %v3847_v37, 0  ;;  %vm3998_vm15 = vc.u32 %v9803_v35, %v9797_v41  ;;  %v4149_v32 = vand.u32 2147483647, %v9701_v51  ;;  %v3722_v28 = vadd.s32 3, %v9807_v24 }
 0x200   : > { %v3703_v38 = vshrl.u32 %v3685_v27, %v3701_v25  ;;  %v3706_v12 = vadd.s32 127, %v3705_v4  ;;  %v4000_v40 = vsel %vm3998_vm15, %v3999_v18, %v9798_v33  ;;  %v3845_v6 = vor.u32 8388608, %v3844_v60 }
 0x201   : > { %v3849_v58 = vsel %vm3848_vm14, %v3847_v37, 0  ;;  %v4001_v59 = vadd.s32 %v4000_v40, %v3996_v15  ;;  %v4152_v8 = vand.u32 2139095040, %v9701_v51  ;;  %vm3825_vm8 = vweird.f32 %v9526_v57 }
 0x202   : > { %v3704_v21 = vor.u32 %v3703_v38, %v3702_v63  ;;  %v3707_v42 = vshll.u32 %v3706_v12, 23  ;;  %vm3828_vm9 = vcmp.lt.s32.totalorder %v3827_v34, 2  ;;  %vm3829_vm3 = vcmp.eq.s32.totalorder %v3827_v34, 0 }
 0x203   : > { %v3851_v20 = vand.u32 31, %v3849_v58  ;;  %vm3832_vm1 = vcmp.eq.s32.totalorder %v3827_v34, 2  ;;  %v4002_v17 = vadd.s32 536870912, %v4001_v59  ;;  %v9823_v14 = vand.u32 3, %v3722_v28 }
 0x204   : > { %v3708_v55 = vor.u32 4788187, %v3707_v42  ;;  %v3711_v43 = vcvt.s32.f32 %v3704_v21  ;;  %v9821_v16 = vpop.eup %7650  ;;  %v9825_v61 = vshll.u32 %v3845_v6, 8  ;;  %v9829_v11 = vand.u32 8388607, %v4149_v32 }
 0x205   : > { %v3852_v36 = vsub.s32 32, %v3851_v20  ;;  %v9831_v50 = vpop.eup %7652  ;;  %v11627_v2 = vxor.u32 2147483648, %v9821_v16  ;;  %v9834_v23 = vshrl.u32 %v4002_v17, 30  ;;  %v4153_v0 = vshrl.u32 %v4152_v8, 23 }
 0x206   : > { %v3709_v27 = vand.u32 2147483647, %v3708_v55  ;;  %v3830_v5 = vxor.u32 2147483648, %v9831_v50  ;;  %v3854_v9 = vshll.u32 %v11644_v31, %v3851_v20  ;;  %v3857_v22 = vshll.u32 %v11719_v19, %v3851_v20 }
 0x207   : > { %v3855_v26 = vshrl.u32 %v11719_v19, %v3852_v36  ;;  %v3834_v56 = vsel %vm3832_vm1, %v11627_v2, %v9831_v50  ;;  %v4004_v7 = vshll.u32 %v9834_v23, 30  ;;  %v3858_v3 = vshrl.u32 %v11682_v29, %v3852_v36 }
 0x208   : > { %v3712_v13 = vmul.f32 %v3711_v43, %v3709_v27  ;;  %v3831_v1 = vsel %vm3829_vm3, %v9821_v16, %v3830_v5  ;;  %v3860_v48 = vshll.u32 %v11682_v29, %v3851_v20  ;;  %v3861_v33 = vshrl.u32 %v11720_v45, %v3852_v36 }
 0x209   : > { %v3863_v44 = vshll.u32 %v11720_v45, %v3851_v20  ;;  %v3835_v53 = vsel %vm3828_vm9, %v3831_v1, %v3834_v56  ;;  %v9854_v37 = vsub.s32 %v4001_v59, %v4004_v7  ;;  %v3850_v25 = vshrl.u32 %v3849_v58, 5 }
 0x20a   : > { %v3713_v60 = vxor.u32 2147483648, %v3712_v13  ;;  %v3836_v63 = vsel %vm3825_vm8, nan, %v3835_v53  ;;  %v3853_v4 = vshrl.u32 %v11644_v31, %v3852_v36  ;;  %v3856_v15 = vor.u32 %v3855_v26, %v3854_v9 }
 0x20b   : > { %v3864_v18 = vshrl.u32 %v11630_v39, %v3852_v36  ;;  %4471 = vrot.lane.b32.xlu1 %v3836_v63, %s7756_s17  ;;  %v4007_v34 = vsub.s32 0, %v9854_v37  ;;  %v3859_v12 = vor.u32 %v3858_v3, %v3857_v22  ;;  %v3866_v28 = vshll.u32 %v11630_v39, %v3851_v20 }
 0x20c   : > { %v3714_v38 = vsel %vm3631_vm12, %v3713_v60, %v3712_v13  ;;  %v3862_v6 = vor.u32 %v3861_v33, %v3860_v48  ;;  %v3867_v21 = vshrl.u32 %v11632_v47, %v3852_v36  ;;  %vm3869_vm0 = vcmp.lt.s32.totalorder %v3850_v25, 1 }
 0x20d   : > { %v3717_v40 = vsel %vm9754_vm4, %v9543_v10, %v3714_v38  ;;  %v3865_v58 = vor.u32 %v3864_v18, %v3863_v44  ;;  %v7319_v42 = vmin.u32 %v4007_v34, %v9854_v37  ;;  %v7326_v59 = vadd.s32 4294967169, %v4153_v0 }
 0x20e   : > { %7654 = vcosq.f32 %v3717_v40  ;;  %v3868_v8 = vor.u32 %v3867_v21, %v3866_v28  ;;  %vm3871_vm13 = vcmp.lt.s32.totalorder %v3850_v25, 3  ;;  %vm3872_vm10 = vcmp.lt.s32.totalorder %v3850_v25, 4 }
 0x20f   : > { %7656 = vsinq.f32 %v3717_v40  ;;  %vm3943_vm12 = vcmp.lt.s32.totalorder %v9630_v49, 0  ;;  %v3997_v20 = vadd.s32 %v9797_v41, %v9803_v35  ;;  %v4009_v52 = vclz %v7319_v42 }
 0x210   : > { %vm3870_vm5 = vcmp.lt.s32.totalorder %v3850_v25, 2  ;;  %v3873_v55 = vsel %vm3869_vm0, %v3853_v4, %v3856_v15  ;;  %v3874_v43 = vsel %vm3872_vm10, %v3862_v6, 2102212464  ;;  %v3877_v17 = vsel %vm3869_vm0, %v3856_v15, %v3859_v12 }
 0x211   : > { %v3878_v36 = vsel %vm3872_vm10, %v3865_v58, 920167782  ;;  %v3881_v27 = vsel %vm3869_vm0, %v3859_v12, %v3862_v6  ;;  %vm3724_vm4 = vcmp.lt.s32.totalorder %v9823_v14, 2  ;;  %v7320_v9 = vadd.s32 4294967294, %v4009_v52  ;;  %v7727_v52 = vld [vmem:[%s7786_s12 + $0x20] sm:$0xff] }
 0x212   : > { %v3875_v0 = vsel %vm3871_vm13, %v3859_v12, %v3874_v43  ;;  %v3879_v26 = vsel %vm3871_vm13, %v3862_v6, %v3878_v36  ;;  %v3882_v22 = vsel %vm3872_vm10, %v3868_v8, 1326507024  ;;  %vm11635_vm2 = vweird.f32 %v9543_v10 }
 0x213   : > { %vm9879_vm7 = vcmp.le.f32.partialorder %v3941_v62, 0.7853982  ;;  %v3876_v35 = vsel %vm3870_vm5, %v3873_v55, %v3875_v0  ;;  %v3880_v56 = vsel %vm3870_vm5, %v3877_v17, %v3879_v26  ;;  %v3883_v13 = vsel %vm3871_vm13, %v3865_v58, %v3882_v22 }
 0x214   : > { %v4159_v7 = vadd.s32 1, %v7326_v59  ;;  %vm7321_vm11 = vcmp.lt.s32.totalorder %v7320_v9, 0  ;;  %v3884_v3 = vsel %vm3870_vm5, %v3881_v27, %v3883_v13  ;;  %v4027_v62 = vsub.s32 4, %v9834_v23 }
 0x215   : > { %v9888_v1 = vmul.u32.u64.low %v9825_v61, %v3880_v56  ;;  %v9889_v48 = vmul.u32.u64.high %v9825_v61, %v3880_v56, %v9888_v1  ;;  %v4012_v33 = vsel %vm7321_vm11, 0, %v7320_v9  ;;  %vm3725_vm14 = vcmp.eq.s32.totalorder %v9823_v14, 0 }
 0x216   : > { %v9894_v44 = vmul.u32.u64.low %v9825_v61, %v3884_v3  ;;  %v9895_v53 = vmul.u32.u64.high %v9825_v61, %v3884_v3, %v9894_v44  ;;  %v4013_v60 = vsub.s32 32, %v4012_v33  ;;  %v4014_v63 = vshll.u32 %v9854_v37, %v4012_v33 }
 0x217   : > { %v4017_v4 = vsub.s32 4294967266, %v4012_v33  ;;  %vm4160_vm6 = vcmp.gt.s32.totalorder %v4159_v7, 0  ;;  %vm3728_vm15 = vcmp.eq.s32.totalorder %v9823_v14, 2  ;;  %v3892_v25 = vmul.u32 %v9825_v61, %v3876_v35 }
 0x218   : > { %v4161_v15 = vsel %vm4160_vm6, %v4159_v7, 0  ;;  %v9901_v18 = vpop.eup %7654  ;;  %v4015_v38 = vshrl.u32 %v3997_v20, %v4013_v60  ;;  %v3895_v12 = vadd.s32 1, %v9889_v48  ;;  %v4157_v28 = vor.u32 8388608, %v9829_v11 }
 0x219   : > { %v4018_v34 = vadd.s32 127, %v4017_v4  ;;  %v9905_v40 = vpop.eup %7656  ;;  %v11621_v37 = vxor.u32 2147483648, %v9901_v18  ;;  %v4028_v6 = vsel %vm3943_vm12, %v4027_v62, %v9834_v23  ;;  %vm3894_vm9 = vc.u32 %v9895_v53, %v9888_v1 }
 0x21a   : > { %v4163_v61 = vand.u32 31, %v4161_v15  ;;  %v11622_v58 = vxor.u32 2147483648, %v9905_v40  ;;  %v4016_v21 = vor.u32 %v4015_v38, %v4014_v63  ;;  %v3896_v59 = vsel %vm3894_vm9, %v3895_v12, %v9889_v48 }
 0x21b   : > { %v4019_v42 = vshll.u32 %v4018_v34, 23  ;;  %v3730_v11 = vsel %vm3728_vm15, %v11621_v37, %v9905_v40  ;;  %v3897_v8 = vadd.s32 %v3896_v59, %v3892_v25  ;;  %v9921_v23 = vmul.f32 4.0, %v7727_v52 }
 0x21c   : > { %v4164_v20 = vsub.s32 32, %v4163_v61  ;;  %v3727_v55 = vsel %vm3725_vm14, %v9901_v18, %v11622_v58  ;;  %v4023_v17 = vcvt.s32.f32 %v4016_v21  ;;  %v9930_v36 = vsel %vm9879_vm7, 0, %v4028_v6 }
 0x21d   : > { %v4020_v43 = vor.u32 4788187, %v4019_v42  ;;  %v3731_v27 = vsel %vm3724_vm4, %v3727_v55, %v3730_v11  ;;  %v3898_v9 = vadd.s32 536870912, %v3897_v8  ;;  %v4166_v0 = vshll.u32 %v11644_v31, %v4163_v61 }
 0x21e   : > { %v4169_v26 = vshll.u32 %v11719_v19, %v4163_v61  ;;  %v3732_v22 = vsel %vm11635_vm2, nan, %v3731_v27  ;;  %v4167_v56 = vshrl.u32 %v11719_v19, %v4164_v20  ;;  %v4170_v13 = vshrl.u32 %v11682_v29, %v4164_v20 }
 0x21f   : > { %v4021_v35 = vand.u32 2147483647, %v4020_v43  ;;  %4469 = vrot.lane.b32.xlu0 %v3732_v22, %s7756_s17  ;;  %v3899_v7 = vshrl.u32 %v3898_v9, 30  ;;  %v4172_v3 = vshll.u32 %v11682_v29, %v4163_v61  ;;  %v4173_v14 = vshrl.u32 %v11720_v45, %v4164_v20 }
 0x220   : > { %v4175_v48 = vshll.u32 %v11720_v45, %v4163_v61  ;;  %v4162_v62 = vshrl.u32 %v4161_v15, 5  ;;  %v4176_v44 = vshrl.u32 %v11630_v39, %v4164_v20  ;;  %v4178_v60 = vshll.u32 %v11630_v39, %v4163_v61 }
 0x221   : > { %v4024_v33 = vmul.f32 %v4023_v17, %v4021_v35  ;;  %v4034_v63 = vadd.s32 3, %v9930_v36  ;;  %v3900_v4 = vshll.u32 %v3899_v7, 30  ;;  %v4179_v25 = vshrl.u32 %v11632_v47, %v4164_v20 }
 0x222   : > { %v9948_v38 = vshll.u32 %v4157_v28, 8  ;;  %v4165_v12 = vshrl.u32 %v11644_v31, %v4164_v20  ;;  %v4177_v6 = vor.u32 %v4176_v44, %v4175_v48  ;;  %v4048_v21 = vand.u32 2139095040, %v9921_v23 }
 0x223   : > { %v4025_v34 = vxor.u32 2147483648, %v4024_v33  ;;  %v9952_v42 = vsub.s32 %v3897_v8, %v3900_v4  ;;  %v4168_v15 = vor.u32 %v4167_v56, %v4166_v0  ;;  %v4171_v59 = vor.u32 %v4170_v13, %v4169_v26 }
 0x224   : > { %v4174_v11 = vor.u32 %v4173_v14, %v4172_v3  ;;  %v4180_v52 = vor.u32 %v4179_v25, %v4178_v60  ;;  %vm4181_vm3 = vcmp.lt.s32.totalorder %v4162_v62, 1  ;;  %vm4184_vm1 = vcmp.lt.s32.totalorder %v4162_v62, 4 }
 0x225   : > { %v4026_v61 = vsel %vm3943_vm12, %v4025_v34, %v4024_v33  ;;  %v3903_v20 = vsub.s32 0, %v9952_v42  ;;  %vm4183_vm0 = vcmp.lt.s32.totalorder %v4162_v62, 3  ;;  %vm4182_vm13 = vcmp.lt.s32.totalorder %v4162_v62, 2 }
 0x226   : > { %v4029_v28 = vsel %vm9879_vm7, %v9630_v49, %v4026_v61  ;;  %v4186_v55 = vsel %vm4184_vm1, %v4174_v11, 2102212464  ;;  %v4185_v8 = vsel %vm4181_vm3, %v4165_v12, %v4168_v15  ;;  %v4190_v43 = vsel %vm4184_vm1, %v4177_v6, 920167782 }
 0x227   : > { %7658 = vcosq.f32 %v4029_v28  ;;  %v7315_v17 = vmin.u32 %v3903_v20, %v9952_v42  ;;  %v4187_v27 = vsel %vm4183_vm0, %v4171_v59, %v4186_v55  ;;  %v4189_v9 = vsel %vm4181_vm3, %v4168_v15, %v4171_v59 }
 0x228   : > { %7660 = vsinq.f32 %v4029_v28  ;;  %v4035_v41 = vand.u32 3, %v4034_v63  ;;  %v4191_v0 = vsel %vm4183_vm0, %v4174_v11, %v4190_v43  ;;  %v4193_v26 = vsel %vm4181_vm3, %v4171_v59, %v4174_v11 }
 0x229   : > { %v4194_v22 = vsel %vm4184_vm1, %v4180_v52, 1326507024  ;;  %vm9971_vm10 = vcmp.le.f32.partialorder %v3837_v46, 0.7853982  ;;  %vm3839_vm12 = vcmp.lt.s32.totalorder %v9698_v54, 0  ;;  %v3905_v56 = vclz %v7315_v17 }
 0x22a   : > { %v3923_v13 = vsub.s32 4, %v3899_v7  ;;  %v4188_v3 = vsel %vm4182_vm13, %v4185_v8, %v4187_v27  ;;  %v4192_v14 = vsel %vm4182_vm13, %v4189_v9, %v4191_v0  ;;  %v4195_v48 = vsel %vm4183_vm0, %v4177_v6, %v4194_v22 }
 0x22b   : > { %v4049_v33 = vshrl.u32 %v4048_v21, 23  ;;  %v7316_v44 = vadd.s32 4294967294, %v3905_v56  ;;  %v4196_v60 = vsel %vm4182_vm13, %v4193_v26, %v4195_v48  ;;  %vm4036_vm5 = vcmp.lt.s32.totalorder %v4035_v41, 2 }
 0x22c   : > { %v9981_v63 = vmul.u32.u64.low %v9948_v38, %v4192_v14  ;;  %v9982_v46 = vmul.u32.u64.high %v9948_v38, %v4192_v14, %v9981_v63  ;;  %v9986_v4 = vmul.u32.u64.low %v9948_v38, %v4196_v60  ;;  %v9987_v25 = vmul.u32.u64.high %v9948_v38, %v4196_v60, %v9986_v4 }
 0x22d   : > { %v7322_v34 = vadd.s32 4294967169, %v4049_v33  ;;  %vm4037_vm4 = vcmp.eq.s32.totalorder %v4035_v41, 0  ;;  %v3893_v12 = vadd.s32 %v9888_v1, %v9895_v53  ;;  %vm7317_vm7 = vcmp.lt.s32.totalorder %v7316_v44, 0 }
 0x22e   : > { %v3924_v62 = vsel %vm3839_vm12, %v3923_v13, %v3899_v7  ;;  %v3908_v6 = vsel %vm7317_vm7, 0, %v7316_v44  ;;  %v4204_v21 = vmul.u32 %v9948_v38, %v4188_v3  ;;  %v4045_v15 = vand.u32 2147483647, %v9921_v23 }
 0x22f   : > { %v4055_v59 = vadd.s32 1, %v7322_v34  ;;  %v3909_v11 = vsub.s32 32, %v3908_v6  ;;  %v3910_v61 = vshll.u32 %v9952_v42, %v3908_v6  ;;  %v3913_v52 = vsub.s32 4294967266, %v3908_v6 }
 0x230   : > { %v4207_v28 = vadd.s32 1, %v9982_v46  ;;  %vm4040_vm11 = vcmp.eq.s32.totalorder %v4035_v41, 2  ;;  %v10001_v1 = vsel %vm9971_vm10, 0, %v3924_v62  ;;  %vm4206_vm6 = vc.u32 %v9987_v25, %v9981_v63 }
 0x231   : > { %v9997_v20 = vpop.eup %7658  ;;  %vm4056_vm14 = vcmp.gt.s32.totalorder %v4055_v59, 0  ;;  %v3911_v38 = vshrl.u32 %v3893_v12, %v3909_v11  ;;  %v3914_v42 = vadd.s32 127, %v3913_v52  ;;  %v4052_v17 = vand.u32 8388607, %v4045_v15 }
 0x232   : > { %v10005_v53 = vpop.eup %7660  ;;  %v11623_v7 = vxor.u32 2147483648, %v9997_v20  ;;  %v4208_v55 = vsel %vm4206_vm6, %v4207_v28, %v9982_v46  ;;  %v4057_v27 = vsel %vm4056_vm14, %v4055_v59, 0  ;;  %vm11636_vm15 = vweird.f32 %v9630_v49 }
 0x233   : > { %v11624_v8 = vxor.u32 2147483648, %v10005_v53  ;;  %v4209_v43 = vadd.s32 %v4208_v55, %v4204_v21  ;;  %v3912_v0 = vor.u32 %v3911_v38, %v3910_v61  ;;  %v3915_v26 = vshll.u32 %v3914_v42, 23 }
 0x234   : > { %v4042_v9 = vsel %vm4040_vm11, %v11623_v7, %v10005_v53  ;;  %v4059_v13 = vand.u32 31, %v4057_v27  ;;  %v3930_v33 = vadd.s32 3, %v10001_v1  ;;  %v4053_v46 = vor.u32 8388608, %v4052_v17 }
 0x235   : > { %v4039_v22 = vsel %vm4037_vm4, %v9997_v20, %v11624_v8  ;;  %v4210_v56 = vadd.s32 536870912, %v4209_v43  ;;  %v3916_v14 = vor.u32 4788187, %v3915_v26  ;;  %v3919_v48 = vcvt.s32.f32 %v3912_v0 }
 0x236   : > { %v4043_v3 = vsel %vm4036_vm5, %v4039_v22, %v4042_v9  ;;  %v4060_v4 = vsub.s32 32, %v4059_v13  ;;  %v4058_v12 = vshrl.u32 %v4057_v27, 5  ;;  %v4062_v62 = vshll.u32 %v11644_v31, %v4059_v13 }
 0x237   : > { %v4044_v44 = vsel %vm11636_vm15, nan, %v4043_v3  ;;  %v10024_v60 = vshrl.u32 %v4210_v56, 30  ;;  %v3917_v34 = vand.u32 2147483647, %v3916_v14  ;;  %v4065_v41 = vshll.u32 %v11719_v19, %v4059_v13 }
 0x238   : > { %4475 = vrot.lane.b32.xlu1 %v4044_v44, %s7756_s17  ;;  %v4063_v21 = vshrl.u32 %v11719_v19, %v4060_v4  ;;  %v4068_v59 = vshll.u32 %v11682_v29, %v4059_v13  ;;  %v4071_v11 = vshll.u32 %v11720_v45, %v4059_v13  ;;  %v4066_v52 = vshrl.u32 %v11682_v29, %v4060_v4 }
 0x239   : > { %v4212_v6 = vshll.u32 %v10024_v60, 30  ;;  %v3920_v61 = vmul.f32 %v3919_v48, %v3917_v34  ;;  %v4069_v28 = vshrl.u32 %v11720_v45, %v4060_v4  ;;  %v4072_v38 = vshrl.u32 %v11630_v39, %v4060_v4 }
 0x23a   : > { %v4074_v55 = vshll.u32 %v11630_v39, %v4059_v13  ;;  %v10039_v27 = vand.u32 3, %v3930_v33  ;;  %v4061_v9 = vshrl.u32 %v11644_v31, %v4060_v4  ;;  %v10042_v0 = vshll.u32 %v4053_v46, 8 }
 0x23b   : > { %v10036_v42 = vsub.s32 %v4209_v43, %v4212_v6  ;;  %v3921_v17 = vxor.u32 2147483648, %v3920_v61  ;;  %v4064_v22 = vor.u32 %v4063_v21, %v4062_v62  ;;  %v4067_v56 = vor.u32 %v4066_v52, %v4065_v41  ;;  %v7728_v21 = vld [vmem:[%s7786_s12 + $0x38] sm:$0xff] }
 0x23c   : > { %v4075_v3 = vshrl.u32 %v11632_v47, %v4060_v4  ;;  %vm4151_vm9 = vcmp.lt.s32.totalorder %v9701_v51, 0  ;;  %v4070_v43 = vor.u32 %v4069_v28, %v4068_v59  ;;  %v4073_v13 = vor.u32 %v4072_v38, %v4071_v11 }
 0x23d   : > { %v4215_v26 = vsub.s32 0, %v10036_v42  ;;  %v3922_v14 = vsel %vm3839_vm12, %v3921_v17, %v3920_v61  ;;  %vm4077_vm3 = vcmp.lt.s32.totalorder %v4058_v12, 1  ;;  %vm4080_vm1 = vcmp.lt.s32.totalorder %v4058_v12, 4 }
 0x23e   : > { %v3925_v48 = vsel %vm9971_vm10, %v9698_v54, %v3922_v14  ;;  %v4076_v44 = vor.u32 %v4075_v3, %v4074_v55  ;;  %vm4078_vm0 = vcmp.lt.s32.totalorder %v4058_v12, 2  ;;  %vm4079_vm13 = vcmp.lt.s32.totalorder %v4058_v12, 3 }
 0x23f   : > { %v7327_v33 = vmin.u32 %v4215_v26, %v10036_v42  ;;  %7662 = vcosq.f32 %v3925_v48  ;;  %v4082_v46 = vsel %vm4080_vm1, %v4070_v43, 2102212464  ;;  %v4081_v34 = vsel %vm4077_vm3, %v4061_v9, %v4064_v22 }
 0x240   : > { %7664 = vsinq.f32 %v3925_v48  ;;  %v4085_v62 = vsel %vm4077_vm3, %v4064_v22, %v4067_v56  ;;  %v4083_v41 = vsel %vm4079_vm13, %v4067_v56, %v4082_v46  ;;  %v4086_v6 = vsel %vm4080_vm1, %v4073_v13, 920167782 }
 0x241   : > { %v4217_v4 = vclz %v7327_v33  ;;  %v4089_v35 = vsel %vm4077_vm3, %v4067_v56, %v4070_v43  ;;  %v10057_v59 = vmul.f32 4.0, %v7728_v21  ;;  %v4235_v61 = vsub.s32 4, %v10024_v60 }
 0x242   : > { %v4087_v52 = vsel %vm4079_vm13, %v4070_v43, %v4086_v6  ;;  %v4090_v28 = vsel %vm4080_vm1, %v4076_v44, 1326507024  ;;  %v4205_v38 = vadd.s32 %v9981_v63, %v9987_v25  ;;  %v4084_v55 = vsel %vm4078_vm0, %v4081_v34, %v4083_v41 }
 0x243   : > { %v7328_v11 = vadd.s32 4294967294, %v4217_v4  ;;  %v4088_v17 = vsel %vm4078_vm0, %v4085_v62, %v4087_v52  ;;  %v4091_v9 = vsel %vm4079_vm13, %v4073_v13, %v4090_v28  ;;  %vm3929_vm10 = vweird.f32 %v9698_v54 }
 0x244   : > { %v4092_v26 = vsel %vm4078_vm0, %v4089_v35, %v4091_v9  ;;  %v10070_v22 = vmul.u32.u64.low %v10042_v0, %v4088_v17  ;;  %v10071_v56 = vmul.u32.u64.high %v10042_v0, %v4088_v17, %v10070_v22  ;;  %v4360_v25 = vand.u32 2139095040, %v10057_v59 }
 0x245   : > { %vm7329_vm12 = vcmp.lt.s32.totalorder %v7328_v11, 0  ;;  %v10075_v14 = vmul.u32.u64.low %v10042_v0, %v4092_v26  ;;  %v10076_v63 = vmul.u32.u64.high %v10042_v0, %v4092_v26, %v10075_v14  ;;  %v4236_v12 = vsel %vm4151_vm9, %v4235_v61, %v10024_v60 }
 0x246   : > { %v4220_v3 = vsel %vm7329_vm12, 0, %v7328_v11  ;;  %vm3933_vm5 = vcmp.eq.s32.totalorder %v10039_v27, 0  ;;  %vm10086_vm4 = vcmp.le.f32.partialorder %v4149_v32, 0.7853982  ;;  %v4100_v44 = vmul.u32 %v10042_v0, %v4084_v55 }
 0x247   : > { %v4221_v43 = vsub.s32 32, %v4220_v3  ;;  %v4222_v13 = vshll.u32 %v10036_v42, %v4220_v3  ;;  %v4225_v48 = vsub.s32 4294967266, %v4220_v3  ;;  %v4361_v46 = vshrl.u32 %v4360_v25, 23  ;;  %v7729_v3 = vld [vmem:[%s7786_s12 + $0x30] sm:$0xff] }
 0x248   : > { %vm3936_vm7 = vcmp.eq.s32.totalorder %v10039_v27, 2  ;;  %v4103_v34 = vadd.s32 1, %v10071_v56  ;;  %v10097_v60 = vsel %vm10086_vm4, 0, %v4236_v12  ;;  %vm4102_vm11 = vc.u32 %v10076_v63, %v10070_v22 }
 0x249   : > { %v4223_v4 = vshrl.u32 %v4205_v38, %v4221_v43  ;;  %v4226_v42 = vadd.s32 127, %v4225_v48  ;;  %v10093_v62 = vpop.eup %7662  ;;  %v4357_v32 = vand.u32 2147483647, %v10057_v59  ;;  %v7334_v41 = vadd.s32 4294967169, %v4361_v46 }
 0x24a   : > { %v10102_v0 = vpop.eup %7664  ;;  %v11629_v6 = vxor.u32 2147483648, %v10093_v62  ;;  %v4104_v11 = vsel %vm4102_vm11, %v4103_v34, %v10071_v56  ;;  %vm3932_vm6 = vcmp.lt.s32.totalorder %v10039_v27, 2  ;;  %v4242_v9 = vadd.s32 3, %v10097_v60 }
 0x24b   : > { %v4224_v35 = vor.u32 %v4223_v4, %v4222_v13  ;;  %v4227_v21 = vshll.u32 %v4226_v42, 23  ;;  %v3934_v61 = vxor.u32 2147483648, %v10102_v0  ;;  %v4105_v52 = vadd.s32 %v4104_v11, %v4100_v44 }
 0x24c   : > { %v4367_v28 = vadd.s32 1, %v7334_v41  ;;  %v3938_v38 = vsel %vm3936_vm7, %v11629_v6, %v10102_v0  ;;  %v10120_v14 = vmul.f32 4.0, %v7729_v3  ;;  %v4364_v13 = vand.u32 8388607, %v4357_v32 }
 0x24d   : > { %v4228_v55 = vor.u32 4788187, %v4227_v21  ;;  %v4231_v17 = vcvt.s32.f32 %v4224_v35  ;;  %v3935_v26 = vsel %vm3933_vm5, %v10093_v62, %v3934_v61  ;;  %v4106_v56 = vadd.s32 536870912, %v4105_v52 }
 0x24e   : > { %vm4368_vm14 = vcmp.gt.s32.totalorder %v4367_v28, 0  ;;  %v3939_v25 = vsel %vm3932_vm6, %v3935_v26, %v3938_v38  ;;  %v10129_v4 = vand.u32 3, %v4242_v9  ;;  %v11628_v41 = vand.u32 2147483647, %v10120_v14 }
 0x24f   : > { %v4229_v43 = vand.u32 2147483647, %v4228_v55  ;;  %v4369_v48 = vsel %vm4368_vm14, %v4367_v28, 0  ;;  %v3940_v12 = vsel %vm3929_vm10, nan, %v3939_v25  ;;  %v10126_v44 = vshrl.u32 %v4106_v56, 30 }
 0x250   : > { %v4371_v46 = vand.u32 31, %v4369_v48  ;;  %4473 = vrot.lane.b32.xlu0 %v3940_v12, %s7756_s17  ;;  %v4256_v35 = vand.u32 2139095040, %v10120_v14  ;;  %v4365_v11 = vor.u32 8388608, %v4364_v13  ;;  %v4370_v28 = vshrl.u32 %v4369_v48, 5 }
 0x251   : > { %v4232_v27 = vmul.f32 %v4231_v17, %v4229_v43  ;;  %v4108_v42 = vshll.u32 %v10126_v44, 30  ;;  %v4101_v13 = vadd.s32 %v10070_v22, %v10076_v63  ;;  %vm4047_vm3 = vcmp.lt.s32.totalorder %v9921_v23, 0 }
 0x252   : > { %v4372_v34 = vsub.s32 32, %v4371_v46  ;;  %v4374_v38 = vshll.u32 %v11644_v31, %v4371_v46  ;;  %v4377_v17 = vshll.u32 %v11719_v19, %v4371_v46  ;;  %v4380_v9 = vshll.u32 %v11682_v29, %v4371_v46 }
 0x253   : > { %v4233_v21 = vxor.u32 2147483648, %v4232_v27  ;;  %v10135_v55 = vsub.s32 %v4105_v52, %v4108_v42  ;;  %v4383_v43 = vshll.u32 %v11720_v45, %v4371_v46  ;;  %v4257_v12 = vshrl.u32 %v4256_v35, 23 }
 0x254   : > { %v4375_v26 = vshrl.u32 %v11719_v19, %v4372_v34  ;;  %v4378_v3 = vshrl.u32 %v11682_v29, %v4372_v34  ;;  %v4381_v25 = vshrl.u32 %v11720_v45, %v4372_v34  ;;  %v4373_v42 = vshrl.u32 %v11644_v31, %v4372_v34 }
 0x255   : > { %v4234_v56 = vsel %vm4151_vm9, %v4233_v21, %v4232_v27  ;;  %v4111_v48 = vsub.s32 0, %v10135_v55  ;;  %v4384_v21 = vshrl.u32 %v11630_v39, %v4372_v34  ;;  %v4386_v7 = vshll.u32 %v11630_v39, %v4371_v46 }
 0x256   : > { %v4237_v52 = vsel %vm10086_vm4, %v9701_v51, %v4234_v56  ;;  %v4376_v27 = vor.u32 %v4375_v26, %v4374_v38  ;;  %v4379_v58 = vor.u32 %v4378_v3, %v4377_v17  ;;  %vm4248_vm9 = vcmp.eq.s32.totalorder %v10129_v4, 2 }
 0x257   : > { %7666 = vcosq.f32 %v4237_v52  ;;  %v7323_v37 = vmin.u32 %v4111_v48, %v10135_v55  ;;  %v4382_v22 = vor.u32 %v4381_v25, %v4380_v9  ;;  %v4385_v63 = vor.u32 %v4384_v21, %v4383_v43 }
 0x258   : > { %7668 = vsinq.f32 %v4237_v52  ;;  %v4387_v33 = vshrl.u32 %v11632_v47, %v4372_v34  ;;  %vm4389_vm1 = vcmp.lt.s32.totalorder %v4370_v28, 1  ;;  %vm4245_vm0 = vcmp.eq.s32.totalorder %v10129_v4, 0 }
 0x259   : > { %v4113_v35 = vclz %v7323_v37  ;;  %vm4390_vm13 = vcmp.lt.s32.totalorder %v4370_v28, 2  ;;  %v4405_v38 = vshll.u32 %v4365_v11, 8  ;;  %v7330_v26 = vadd.s32 4294967169, %v4257_v12 }
 0x25a   : > { %vm4244_vm12 = vcmp.lt.s32.totalorder %v10129_v4, 2  ;;  %v4388_v17 = vor.u32 %v4387_v33, %v4386_v7  ;;  %vm4391_vm5 = vcmp.lt.s32.totalorder %v4370_v28, 3  ;;  %vm4392_vm4 = vcmp.lt.s32.totalorder %v4370_v28, 4 }
 0x25b   : > { %v4393_v46 = vsel %vm4389_vm1, %v4373_v42, %v4376_v27  ;;  %vm4241_vm7 = vweird.f32 %v9701_v51  ;;  %vm10164_vm11 = vcmp.le.f32.partialorder %v4045_v15, 0.7853982  ;;  %v7324_v9 = vadd.s32 4294967294, %v4113_v35 }
 0x25c   : > { %v4394_v37 = vsel %vm4392_vm4, %v4382_v22, 2102212464  ;;  %v4397_v11 = vsel %vm4389_vm1, %v4376_v27, %v4379_v58  ;;  %v4398_v56 = vsel %vm4392_vm4, %v4385_v63, 920167782  ;;  %v4401_v25 = vsel %vm4389_vm1, %v4379_v58, %v4382_v22 }
 0x25d   : > { %v4395_v3 = vsel %vm4391_vm5, %v4379_v58, %v4394_v37  ;;  %v4399_v7 = vsel %vm4391_vm5, %v4382_v22, %v4398_v56  ;;  %v4402_v43 = vsel %vm4392_vm4, %v4388_v17, 1326507024  ;;  %vm7325_vm6 = vcmp.lt.s32.totalorder %v7324_v9, 0 }
 0x25e   : > { %v4131_v52 = vsub.s32 4, %v10126_v44  ;;  %v4400_v15 = vsel %vm4390_vm13, %v4397_v11, %v4399_v7  ;;  %v4403_v48 = vsel %vm4391_vm5, %v4385_v63, %v4402_v43  ;;  %v4116_v12 = vsel %vm7325_vm6, 0, %v7324_v9 }
 0x25f   : > { %v4404_v42 = vsel %vm4390_vm13, %v4401_v25, %v4403_v48  ;;  %v10176_v21 = vmul.u32.u64.low %v4405_v38, %v4400_v15  ;;  %v10177_v27 = vmul.u32.u64.high %v4405_v38, %v4400_v15, %v10176_v21  ;;  %v4117_v33 = vsub.s32 32, %v4116_v12 }
 0x260   : > { %v4118_v35 = vshll.u32 %v10135_v55, %v4116_v12  ;;  %v4121_v37 = vsub.s32 4294967266, %v4116_v12  ;;  %v4396_v58 = vsel %vm4390_vm13, %v4393_v46, %v4395_v3  ;;  %v4260_v63 = vand.u32 8388607, %v11628_v41 }
 0x261   : > { %v10182_v22 = vpop.eup %7666  ;;  %v10184_v17 = vmul.u32.u64.low %v4405_v38, %v4404_v42  ;;  %v10185_v56 = vmul.u32.u64.high %v4405_v38, %v4404_v42, %v10184_v17  ;;  %v4263_v9 = vadd.s32 1, %v7330_v26  ;;  %v4119_v25 = vshrl.u32 %v4101_v13, %v4117_v33 }
 0x262   : > { %v10189_v11 = vpop.eup %7668  ;;  %v11625_v7 = vxor.u32 2147483648, %v10182_v22  ;;  %v4122_v43 = vadd.s32 127, %v4121_v37  ;;  %v4132_v28 = vsel %vm4047_vm3, %v4131_v52, %v10126_v44  ;;  %v4412_v46 = vmul.u32 %v4405_v38, %v4396_v58 }
 0x263   : > { %v11626_v55 = vxor.u32 2147483648, %v10189_v11  ;;  %v4415_v3 = vadd.s32 1, %v10177_v27  ;;  %vm4264_vm14 = vcmp.gt.s32.totalorder %v4263_v9, 0  ;;  %v4120_v15 = vor.u32 %v4119_v25, %v4118_v35 }
 0x264   : > { %v4250_v26 = vsel %vm4248_vm9, %v11625_v7, %v10189_v11  ;;  %v4123_v48 = vshll.u32 %v4122_v43, 23  ;;  %v4265_v13 = vsel %vm4264_vm14, %v4263_v9, 0  ;;  %v10209_v38 = vsel %vm10164_vm11, 0, %v4132_v28 }
 0x265   : > { %v4247_v44 = vsel %vm4245_vm0, %v10182_v22, %v11626_v55  ;;  %vm4414_vm1 = vc.u32 %v10185_v56, %v10176_v21  ;;  %v4127_v42 = vcvt.s32.f32 %v4120_v15  ;;  %v4266_v58 = vshrl.u32 %v4265_v13, 5 }
 0x266   : > { %v4251_v52 = vsel %vm4244_vm12, %v4247_v44, %v4250_v26  ;;  %v4124_v12 = vor.u32 4788187, %v4123_v48  ;;  %v4416_v33 = vsel %vm4414_vm1, %v4415_v3, %v10177_v27  ;;  %v4267_v17 = vand.u32 31, %v4265_v13 }
 0x267   : > { %v4252_v35 = vsel %vm4241_vm7, nan, %v4251_v52  ;;  %v4417_v37 = vadd.s32 %v4416_v33, %v4412_v46  ;;  %v4138_v25 = vadd.s32 3, %v10209_v38  ;;  %v4261_v43 = vor.u32 8388608, %v4260_v63 }
 0x268   : > { %4479 = vrot.lane.b32.xlu1 %v4252_v35, %s7756_s17  ;;  %v4125_v9 = vand.u32 2147483647, %v4124_v12  ;;  %v4268_v8 = vsub.s32 32, %v4267_v17  ;;  %v4270_v4 = vshll.u32 %v11644_v31, %v4267_v17  ;;  %v4273_v26 = vshll.u32 %v11719_v19, %v4267_v17 }
 0x269   : > { %v4418_v28 = vadd.s32 536870912, %v4417_v37  ;;  %v4276_v27 = vshll.u32 %v11682_v29, %v4267_v17  ;;  %v4279_v3 = vshll.u32 %v11720_v45, %v4267_v17  ;;  %v4282_v46 = vshll.u32 %v11630_v39, %v4267_v17 }
 0x26a   : > { %v4128_v15 = vmul.f32 %v4127_v42, %v4125_v9  ;;  %v4271_v13 = vshrl.u32 %v11719_v19, %v4268_v8  ;;  %v4274_v44 = vshrl.u32 %v11682_v29, %v4268_v8  ;;  %vm4285_vm9 = vcmp.lt.s32.totalorder %v4266_v58, 1 }
 0x26b   : > { %v4419_v48 = vshrl.u32 %v4418_v28, 30  ;;  %v4277_v52 = vshrl.u32 %v11720_v45, %v4268_v8  ;;  %v4280_v12 = vshrl.u32 %v11630_v39, %v4268_v8  ;;  %v4283_v33 = vshrl.u32 %v11632_v47, %v4268_v8 }
 0x26c   : > { %v4129_v63 = vxor.u32 2147483648, %v4128_v15  ;;  %v4269_v35 = vshrl.u32 %v11644_v31, %v4268_v8  ;;  %v4272_v9 = vor.u32 %v4271_v13, %v4270_v4  ;;  %v4275_v7 = vor.u32 %v4274_v44, %v4273_v26 }
 0x26d   : > { %v4420_v42 = vshll.u32 %v4419_v48, 30  ;;  %v4278_v28 = vor.u32 %v4277_v52, %v4276_v27  ;;  %v4281_v55 = vor.u32 %v4280_v12, %v4279_v3  ;;  %v4284_v2 = vor.u32 %v4283_v33, %v4282_v46 }
 0x26e   : > { %v4130_v17 = vsel %vm4047_vm3, %v4129_v63, %v4128_v15  ;;  %vm4288_vm0 = vcmp.lt.s32.totalorder %v4266_v58, 4  ;;  %v4301_v39 = vshll.u32 %v4261_v43, 8  ;;  %vm4286_vm13 = vcmp.lt.s32.totalorder %v4266_v58, 2 }
 0x26f   : > { %v4133_v41 = vsel %vm10164_vm11, %v9921_v23, %v4130_v17  ;;  %v4421_v6 = vsub.s32 %v4417_v37, %v4420_v42  ;;  %vm4287_vm12 = vcmp.lt.s32.totalorder %v4266_v58, 3  ;;  %v4290_v47 = vsel %vm4288_vm0, %v4278_v28, 2102212464 }
 0x270   : > { %7670 = vcosq.f32 %v4133_v41  ;;  %v4289_v4 = vsel %vm4285_vm9, %v4269_v35, %v4272_v9  ;;  %v4293_v26 = vsel %vm4285_vm9, %v4272_v9, %v4275_v7  ;;  %v4291_v15 = vsel %vm4287_vm12, %v4275_v7, %v4290_v47 }
 0x271   : > { %7672 = vsinq.f32 %v4133_v41  ;;  %v4423_v8 = vsub.s32 0, %v4421_v6  ;;  %v4294_v27 = vsel %vm4288_vm0, %v4281_v55, 920167782  ;;  %v4297_v3 = vsel %vm4285_vm9, %v4275_v7, %v4278_v28 }
 0x272   : > { %v4298_v46 = vsel %vm4288_vm0, %v4284_v2, 1326507024  ;;  %v4443_v13 = vsub.s32 4, %v4419_v48  ;;  %v4295_v37 = vsel %vm4287_vm12, %v4278_v28, %v4294_v27  ;;  %v4139_v43 = vand.u32 3, %v4138_v25 }
 0x273   : > { %v7335_v34 = vmin.u32 %v4423_v8, %v4421_v6  ;;  %v4299_v44 = vsel %vm4287_vm12, %v4281_v55, %v4298_v46  ;;  %v4296_v63 = vsel %vm4286_vm13, %v4293_v26, %v4295_v37  ;;  %vm4359_vm3 = vcmp.lt.s32.totalorder %v10057_v59, 0 }
 0x274   : > { %v4300_v52 = vsel %vm4286_vm13, %v4297_v3, %v4299_v44  ;;  %v4292_v12 = vsel %vm4286_vm13, %v4289_v4, %v4291_v15  ;;  %v10246_v42 = vmul.u32.u64.low %v4301_v39, %v4296_v63  ;;  %v10247_v7 = vmul.u32.u64.high %v4301_v39, %v4296_v63, %v10246_v42 }
 0x275   : > { %v4425_v41 = vclz %v7335_v34  ;;  %v10243_v33 = vmul.u32.u64.low %v4301_v39, %v4300_v52  ;;  %v10244_v47 = vmul.u32.u64.high %v4301_v39, %v4300_v52, %v10243_v33  ;;  %v4444_v55 = vsel %vm4359_vm3, %v4443_v13, %v4419_v48 }
 0x276   : > { %vm11634_vm5 = vweird.f32 %v9921_v23  ;;  %vm4141_vm4 = vcmp.eq.s32.totalorder %v4139_v43, 0  ;;  %vm10255_vm11 = vcmp.le.f32.partialorder %v4357_v32, 0.7853982  ;;  %vm4144_vm6 = vcmp.eq.s32.totalorder %v4139_v43, 2  ;;  %v10294_v33 = vld [vmem:[%s7786_s12 + $0x8] sm:$0xff] }
 0x277   : > { %v7336_v2 = vadd.s32 4294967294, %v4425_v41  ;;  %v4413_v58 = vadd.s32 %v10176_v21, %v10185_v56  ;;  %v4308_v35 = vmul.u32 %v4301_v39, %v4292_v12  ;;  %v10265_v48 = vsel %vm10255_vm11, 0, %v4444_v55 }
 0x278   : > { %vm4310_vm1 = vc.u32 %v10244_v47, %v10246_v42  ;;  %v4311_v32 = vadd.s32 1, %v10247_v7  ;;  %vm4140_vm9 = vcmp.lt.s32.totalorder %v4139_v43, 2  ;;  %v10276_v15 = vand.u32 3, %v9728_v30 }
 0x279   : > { %vm7337_vm14 = vcmp.lt.s32.totalorder %v7336_v2, 0  ;;  %v4450_v13 = vadd.s32 3, %v10265_v48  ;;  %v4801_v37 = vand.u32 3, %v10001_v1  ;;  %v10291_v12 = vand.u32 3, %v9807_v24 }
 0x27a   : > { %v10261_v9 = vpop.eup %7670  ;;  %v4428_v17 = vsel %vm7337_vm14, 0, %v7336_v2  ;;  %v4312_v26 = vsel %vm4310_vm1, %v4311_v32, %v10247_v7  ;;  %v10297_v7 = vmul.f32 8.0, %v10294_v33  ;;  %vm4700_vm0 = vcmp.eq.s32.totalorder %v10276_v15, 0 }
 0x27b   : > { %v10270_v28 = vpop.eup %7672  ;;  %v4145_v8 = vxor.u32 2147483648, %v10261_v9  ;;  %v4429_v4 = vsub.s32 32, %v4428_v17  ;;  %v4430_v21 = vshll.u32 %v4421_v6, %v4428_v17  ;;  %v4433_v56 = vsub.s32 4294967266, %v4428_v17 }
 0x27c   : > { %v4142_v39 = vxor.u32 2147483648, %v10270_v28  ;;  %v4313_v34 = vadd.s32 %v4312_v26, %v4308_v35  ;;  %11737 = vst [vmem:[#allocation2_spill] sm:$0xff] %v10297_v7  ;;  %v10301_v55 = vand.u32 3, %v4450_v13  ;;  %vm4255_vm13 = vcmp.lt.s32.totalorder %v10120_v14, 0 }
 0x27d   : > { %v4146_v27 = vsel %vm4144_vm6, %v4145_v8, %v10270_v28  ;;  %v4431_v3 = vshrl.u32 %v4413_v58, %v4429_v4  ;;  %v4434_v46 = vadd.s32 127, %v4433_v56  ;;  %vm4802_vm12 = vcmp.lt.s32.totalorder %v4801_v37, 2 }
 0x27e   : > { %v4143_v6 = vsel %vm4141_vm4, %v10261_v9, %v4142_v39  ;;  %v4314_v52 = vadd.s32 536870912, %v4313_v34  ;;  %vm4803_vm4 = vcmp.eq.s32.totalorder %v4801_v37, 0  ;;  %vm4806_vm6 = vcmp.eq.s32.totalorder %v4801_v37, 2 }
 0x27f   : > { %v4147_v44 = vsel %vm4140_vm9, %v4143_v6, %v4146_v27  ;;  %v4432_v30 = vor.u32 %v4431_v3, %v4430_v21  ;;  %v4435_v63 = vshll.u32 %v4434_v46, 23  ;;  %vm4699_vm14 = vcmp.lt.s32.totalorder %v10276_v15, 2 }
 0x280   : > { %v4148_v41 = vsel %vm11634_vm5, nan, %v4147_v44  ;;  %v4315_v1 = vshrl.u32 %v4314_v52, 30  ;;  %vm4703_vm1 = vcmp.eq.s32.totalorder %v10276_v15, 2  ;;  %v4702_v35 = vsel %vm4700_vm0, %v9821_v16, %v3830_v5 }
 0x281   : > { %4477 = vrot.lane.b32.xlu0 %v4148_v41, %s7756_s17  ;;  %v4436_v43 = vor.u32 4788187, %v4435_v63  ;;  %v4439_v2 = vcvt.s32.f32 %v4432_v30  ;;  %v4805_v17 = vsel %vm4803_vm4, %v10093_v62, %v3934_v61  ;;  %v11738_v32 = vxor.u32 2147483648, %v10093_v62 }
 0x282   : > { %v4316_v58 = vshll.u32 %v4315_v1, 30  ;;  %v5110_v21 = vand.u32 3, %v10097_v60  ;;  %v11739_v26 = vand.u32 2147483647, %v10120_v14  ;;  %v4904_v5 = vand.u32 3, %v9930_v36 }
 0x283   : > { %v4437_v24 = vand.u32 2147483647, %v4436_v43  ;;  %v4808_v4 = vsel %vm4806_vm6, %v11738_v32, %v10102_v0  ;;  %v4339_v6 = vsub.s32 4, %v4315_v1  ;;  %v11742_v61 = vxor.u32 2147483648, %v9821_v16 }
 0x284   : > { %vm10318_vm9 = vcmp.le.f32.partialorder %v11739_v26, 0.7853982  ;;  %v10322_v3 = vsub.s32 %v4313_v34, %v4316_v58  ;;  %v4809_v46 = vsel %vm4802_vm12, %v4805_v17, %v4808_v4  ;;  %vm5112_vm0 = vcmp.eq.s32.totalorder %v5110_v21, 0 }
 0x285   : > { %v4440_v56 = vmul.f32 %v4439_v2, %v4437_v24  ;;  %v4705_v62 = vsel %vm4703_vm1, %v11742_v61, %v9831_v50  ;;  %v10330_v60 = vsel %vm3929_vm10, nan, %v4809_v46  ;;  %vm5111_vm4 = vcmp.lt.s32.totalorder %v5110_v21, 2  ;;  %v10401_v46 = vld [vmem:[%s7786_s12] sm:$0xff] }
 0x286   : > { %v4319_v13 = vsub.s32 0, %v10322_v3  ;;  %v11743_v34 = vxor.u32 2147483648, %v10189_v11  ;;  %vm4597_vm12 = vcmp.eq.s32.totalorder %v10291_v12, 0  ;;  %vm4600_vm6 = vcmp.eq.s32.totalorder %v10291_v12, 2 }
 0x287   : > { %v4441_v0 = vxor.u32 2147483648, %v4440_v56  ;;  %vm5115_vm5 = vcmp.eq.s32.totalorder %v5110_v21, 2  ;;  %v5007_v16 = vand.u32 3, %v10209_v38  ;;  %vm4596_vm10 = vcmp.lt.s32.totalorder %v10291_v12, 2 }
 0x288   : > { %v5114_v37 = vsel %vm5112_vm0, %v10182_v22, %v11743_v34  ;;  %v7331_v50 = vmin.u32 %v4319_v13, %v10322_v3  ;;  %vm4906_vm1 = vcmp.eq.s32.totalorder %v4904_v5, 0  ;;  %v11744_v36 = vxor.u32 2147483648, %v10182_v22 }
 0x289   : > { %v4442_v54 = vsel %vm4359_vm3, %v4441_v0, %v4440_v56  ;;  %vm4909_vm0 = vcmp.eq.s32.totalorder %v4904_v5, 2  ;;  %vm5009_vm2 = vcmp.eq.s32.totalorder %v5007_v16, 0  ;;  %v4340_v52 = vsel %vm4255_vm13, %v4339_v6, %v4315_v1 }
 0x28a   : > { %v5117_v44 = vsel %vm5115_vm5, %v11744_v36, %v10189_v11  ;;  %v4445_v30 = vsel %vm10255_vm11, %v10057_v59, %v4442_v54  ;;  %v4321_v38 = vclz %v7331_v50  ;;  %vm4905_vm3 = vcmp.lt.s32.totalorder %v4904_v5, 2 }
 0x28b   : > { %v5118_v63 = vsel %vm5111_vm4, %v5114_v37, %v5117_v44  ;;  %7674 = vcosq.f32 %v4445_v30  ;;  %vm5008_vm15 = vcmp.lt.s32.totalorder %v5007_v16, 2  ;;  %v5011_v22 = vsel %vm5009_vm2, %v10261_v9, %v4142_v39 }
 0x28c   : > { %7676 = vsinq.f32 %v4445_v30  ;;  %v10353_v41 = vsel %vm4241_vm7, nan, %v5118_v63  ;;  %v7332_v11 = vadd.s32 4294967294, %v4321_v38  ;;  %v11745_v25 = vxor.u32 2147483648, %v10005_v53 }
 0x28d   : > { %v11746_v2 = vxor.u32 2147483648, %v9997_v20  ;;  %vm5012_vm5 = vcmp.eq.s32.totalorder %v5007_v16, 2  ;;  %vm4453_vm11 = vcmp.eq.s32.totalorder %v10301_v55, 0  ;;  %v10367_v51 = vsel %vm10318_vm9, 0, %v4340_v52 }
 0x28e   : > { %v4908_v43 = vsel %vm4906_vm1, %v9997_v20, %v11745_v25  ;;  %v4706_v24 = vsel %vm4699_vm14, %v4702_v35, %v4705_v62  ;;  %v11747_v39 = vxor.u32 2147483648, %v9905_v40  ;;  %v5014_v20 = vsel %vm5012_vm5, %v4145_v8, %v10270_v28 }
 0x28f   : > { %v4911_v1 = vsel %vm4909_vm0, %v11746_v2, %v10005_v53  ;;  %vm4452_vm2 = vcmp.lt.s32.totalorder %v10301_v55, 2  ;;  %v4309_v53 = vadd.s32 %v10246_v42, %v10244_v47  ;;  %vm7333_vm7 = vcmp.lt.s32.totalorder %v7332_v11, 0 }
 0x290   : > { %v4599_v58 = vsel %vm4597_vm12, %v9901_v18, %v11747_v39  ;;  %v10382_v17 = vsel %vm5008_vm15, %v5011_v22, %v5014_v20  ;;  %v5479_v15 = vand.u32 2147483647, %v10297_v7  ;;  %vm4449_vm14 = vweird.f32 %v10057_v59  ;;  %v10499_v59 = vld [vmem:[%s7786_s12 + $0x18] sm:$0xff] }
 0x291   : > { %v4324_v35 = vsel %vm7333_vm7, 0, %v7332_v11  ;;  %v11748_v32 = vxor.u32 2147483648, %v9901_v18  ;;  %v4912_v28 = vsel %vm4905_vm3, %v4908_v43, %v4911_v1  ;;  %v5482_v8 = vand.u32 2139095040, %v10297_v7 }
 0x292   : > { %v4325_v47 = vsub.s32 32, %v4324_v35  ;;  %v4326_v42 = vshll.u32 %v10322_v3, %v4324_v35  ;;  %v4329_v4 = vsub.s32 4294967266, %v4324_v35  ;;  %v4346_v21 = vadd.s32 3, %v10367_v51 }
 0x293   : > { %v4602_v9 = vsel %vm4600_vm6, %v11748_v32, %v9905_v40  ;;  %v10396_v56 = vand.u32 3, %v10265_v48  ;;  %v5483_v26 = vshrl.u32 %v5482_v8, 23  ;;  %v5486_v18 = vand.u32 8388607, %v5479_v15 }
 0x294   : > { %v10404_v40 = vmul.f32 8.0, %v10401_v46  ;;  %vm4456_vm15 = vcmp.eq.s32.totalorder %v10301_v55, 2  ;;  %v4327_v5 = vshrl.u32 %v4309_v53, %v4325_v47  ;;  %v4330_v6 = vadd.s32 127, %v4329_v4 }
 0x295   : > { %v4707_v3 = vsel %vm3825_vm8, nan, %v4706_v24  ;;  %v10411_v48 = vsel %vm4596_vm10, %v4599_v58, %v4602_v9  ;;  %vm11750_vm4 = vweird.f32 %v9630_v49  ;;  %v7374_v62 = vadd.s32 4294967169, %v5483_v26  ;;  %v7675_v13 = vpop.eup %7674 }
 0x296   : > { %11749 = vst [vmem:[#allocation3_spill] sm:$0xff] %v10404_v40  ;;  %v10415_v61 = vsel %vm11750_vm4, nan, %v4912_v28  ;;  %v5487_v0 = vor.u32 8388608, %v5486_v18  ;;  %v4328_v34 = vor.u32 %v4327_v5, %v4326_v42  ;;  %v4331_v37 = vshll.u32 %v4330_v6, 23  ;;  %v7677_v50 = vpop.eup %7676 }
 0x297   : > { %v10417_v16 = vand.u32 3, %v4346_v21  ;;  %v5378_v54 = vand.u32 2139095040, %v10404_v40  ;;  %v4457_v57 = vxor.u32 2147483648, %v7675_v13  ;;  %vm5321_vm8 = vcmp.eq.s32.totalorder %v10396_v56, 2 }
 0x298   : > { %v5489_v12 = vadd.s32 1, %v7374_v62  ;;  %v5375_v36 = vand.u32 2147483647, %v10404_v40  ;;  %v4454_v44 = vxor.u32 2147483648, %v7677_v50  ;;  %v4332_v49 = vor.u32 4788187, %v4331_v37 }
 0x299   : > { %v4335_v30 = vcvt.s32.f32 %v4328_v34  ;;  %v5379_v63 = vshrl.u32 %v5378_v54, 23  ;;  %v4458_v38 = vsel %vm4456_vm15, %v4457_v57, %v7677_v50  ;;  %vm5318_vm12 = vcmp.eq.s32.totalorder %v10396_v56, 0 }
 0x29a   : > { %vm5490_vm6 = vcmp.gt.s32.totalorder %v5489_v12, 0  ;;  %v10425_v52 = vshll.u32 %v5487_v0, 8  ;;  %v4455_v22 = vsel %vm4453_vm11, %v7675_v13, %v4454_v44  ;;  %v4333_v11 = vand.u32 2147483647, %v4332_v49 }
 0x29b   : > { %vm5317_vm10 = vcmp.lt.s32.totalorder %v10396_v56, 2  ;;  %v5323_v25 = vsel %vm5321_vm8, %v4457_v57, %v7677_v50  ;;  %v5491_v43 = vsel %vm5490_vm6, %v5489_v12, 0  ;;  %v4459_v2 = vsel %vm4452_vm2, %v4455_v22, %v4458_v38 }
 0x29c   : > { %v5492_v1 = vshrl.u32 %v5491_v43, 5  ;;  %v5493_v24 = vand.u32 31, %v5491_v43  ;;  %v10434_v39 = vand.u32 8388607, %v5375_v36  ;;  %v4460_v58 = vsel %vm4449_vm14, nan, %v4459_v2 }
 0x29d   : > { %v4336_v20 = vmul.f32 %v4335_v30, %v4333_v11  ;;  %v5320_v53 = vsel %vm5318_vm12, %v7675_v13, %v4454_v44  ;;  %v7370_v35 = vadd.s32 4294967169, %v5379_v63  ;;  %4483 = vrot.lane.b32.xlu1 %v4460_v58, %s7756_s17  ;;  %v11751_v42 = vmov 920167782  }
 0x29e   : > { %v5494_v32 = vsub.s32 32, %v5493_v24  ;;  %v5496_v9 = vshll.u32 %v11644_v31, %v5493_v24  ;;  %v5499_v55 = vshll.u32 %v11719_v19, %v5493_v24  ;;  %v5502_v28 = vshll.u32 %v11682_v29, %v5493_v24 }
 0x29f   : > { %v4337_v8 = vxor.u32 2147483648, %v4336_v20  ;;  %v5505_v47 = vshll.u32 %v11720_v45, %v5493_v24  ;;  %v5508_v4 = vshll.u32 %v11751_v42, %v5493_v24  ;;  %vm5511_vm1 = vcmp.lt.s32.totalorder %v5492_v1, 1 }
 0x2a0   : > { %v5495_v21 = vshrl.u32 %v11644_v31, %v5494_v32  ;;  %v5497_v26 = vshrl.u32 %v11719_v19, %v5494_v32  ;;  %v5500_v18 = vshrl.u32 %v11682_v29, %v5494_v32  ;;  %v5503_v5 = vshrl.u32 %v11720_v45, %v5494_v32 }
 0x2a1   : > { %v4338_v6 = vsel %vm4255_vm13, %v4337_v8, %v4336_v20  ;;  %v5506_v62 = vshrl.u32 %v11751_v42, %v5494_v32  ;;  %v11752_v0 = vmov 1326507024   ;;  %vm5512_vm0 = vcmp.lt.s32.totalorder %v5492_v1, 2  ;;  %5336 = vrot.lane.b32.xlu1 %v4707_v3, %s7757_s18 }
 0x2a2   : > { %v5509_v13 = vshrl.u32 %v11752_v0, %v5494_v32  ;;  %v4341_v34 = vsel %vm10318_vm9, %v10120_v14, %v4338_v6  ;;  %v5498_v37 = vor.u32 %v5497_v26, %v5496_v9  ;;  %v5501_v54 = vor.u32 %v5500_v18, %v5499_v55 }
 0x2a3   : > { %v5504_v50 = vor.u32 %v5503_v5, %v5502_v28  ;;  %7678 = vcosq.f32 %v4341_v34  ;;  %v5507_v57 = vor.u32 %v5506_v62, %v5505_v47  ;;  %vm5513_vm3 = vcmp.lt.s32.totalorder %v5492_v1, 3 }
 0x2a4   : > { %v5510_v12 = vor.u32 %v5509_v13, %v5508_v4  ;;  %7680 = vsinq.f32 %v4341_v34  ;;  %vm5514_vm13 = vcmp.lt.s32.totalorder %v5492_v1, 4  ;;  %v5515_v44 = vsel %vm5511_vm1, %v5495_v21, %v5498_v37 }
 0x2a5   : > { %v5519_v49 = vsel %vm5511_vm1, %v5498_v37, %v5501_v54  ;;  %v5516_v30 = vsel %vm5514_vm13, %v5504_v50, 2102212464  ;;  %v5520_v63 = vsel %vm5514_vm13, %v5507_v57, 920167782  ;;  %v5523_v27 = vsel %vm5511_vm1, %v5501_v54, %v5504_v50  ;;  %5340 = vrot.lane.b32.xlu1 %v10415_v61, %s7757_s18 }
 0x2a6   : > { %v5524_v38 = vsel %vm5514_vm13, %v5510_v12, 1326507024  ;;  %v5324_v3 = vsel %vm5317_vm10, %v5320_v53, %v5323_v25  ;;  %v5517_v22 = vsel %vm5513_vm3, %v5501_v54, %v5516_v30  ;;  %v5521_v11 = vsel %vm5513_vm3, %v5504_v50, %v5520_v63 }
 0x2a7   : > { %v5525_v43 = vsel %vm5513_vm3, %v5507_v57, %v5524_v38  ;;  %v5518_v2 = vsel %vm5512_vm0, %v5515_v44, %v5517_v22  ;;  %v5522_v24 = vsel %vm5512_vm0, %v5519_v49, %v5521_v11  ;;  %v5385_v20 = vadd.s32 1, %v7370_v35 }
 0x2a8   : > { %v5526_v58 = vsel %vm5512_vm0, %v5523_v27, %v5525_v43  ;;  %v10471_v55 = vmul.u32.u64.low %v10425_v52, %v5522_v24  ;;  %v10472_v61 = vmul.u32.u64.high %v10425_v52, %v5522_v24, %v10471_v55  ;;  %v5383_v56 = vor.u32 8388608, %v10434_v39 }
 0x2a9   : > { %v10467_v32 = vmul.u32.u64.low %v10425_v52, %v5526_v58  ;;  %v10468_v9 = vmul.u32.u64.high %v10425_v52, %v5526_v58, %v10467_v32  ;;  %vm5386_vm9 = vcmp.gt.s32.totalorder %v5385_v20, 0  ;;  %vm4345_vm5 = vweird.f32 %v10120_v14  ;;  %5344 = vrot.lane.b32.xlu1 %v10353_v41, %s7757_s18 }
 0x2aa   : > { %v10480_v25 = vand.u32 3, %v10367_v51  ;;  %v5387_v1 = vsel %vm5386_vm9, %v5385_v20, 0  ;;  %vm11753_vm11 = vweird.f32 %v9543_v10  ;;  %v5325_v35 = vsel %vm4449_vm14, nan, %v5324_v3 }
 0x2ab   : > { %v4604_v53 = vsel %vm11753_vm11, nan, %v10411_v48  ;;  %v5534_v39 = vmul.u32 %v10425_v52, %v5518_v2  ;;  %v5389_v28 = vand.u32 31, %v5387_v1  ;;  %vm4348_vm2 = vcmp.lt.s32.totalorder %v10417_v16, 2 }
 0x2ac   : > { %vm4349_vm7 = vcmp.eq.s32.totalorder %v10417_v16, 0  ;;  %vm5536_vm15 = vc.u32 %v10468_v9, %v10471_v55  ;;  %v5537_v41 = vadd.s32 1, %v10472_v61  ;;  %vm4352_vm4 = vcmp.eq.s32.totalorder %v10417_v16, 2 }
 0x2ad   : > { %v10493_v51 = vpop.eup %7678  ;;  %v5390_v10 = vsub.s32 32, %v5389_v28  ;;  %v10496_v48 = vshll.u32 %v5383_v56, 8  ;;  %v10502_v52 = vmul.f32 8.0, %v10499_v59  ;;  %5348 = vrot.lane.b32.xlu1 %v5325_v35, %s7757_s18  ;;  %vm5218_vm14 = vcmp.eq.s32.totalorder %v10480_v25, 2 }
 0x2ae   : > { %v7681_v8 = vpop.eup %7680  ;;  %v4353_v47 = vxor.u32 2147483648, %v10493_v51  ;;  %v5538_v4 = vsel %vm5536_vm15, %v5537_v41, %v10472_v61  ;;  %v5392_v21 = vshll.u32 %v11644_v31, %v5389_v28  ;;  %v5395_v26 = vshll.u32 %v11719_v19, %v5389_v28 }
 0x2af   : > { %11754 = vst [vmem:[#allocation4_spill] sm:$0xff] %v10502_v52  ;;  %v4350_v18 = vxor.u32 2147483648, %v7681_v8  ;;  %vm5215_vm8 = vcmp.eq.s32.totalorder %v10480_v25, 0  ;;  %v5539_v5 = vadd.s32 %v5538_v4, %v5534_v39  ;;  %v5388_v6 = vshrl.u32 %v5387_v1, 5 }
 0x2b0   : > { %v5393_v62 = vshrl.u32 %v11719_v19, %v5390_v10  ;;  %v4354_v13 = vsel %vm4352_vm4, %v4353_v47, %v7681_v8  ;;  %v5396_v34 = vshrl.u32 %v11682_v29, %v5390_v10  ;;  %v5398_v37 = vshll.u32 %v11682_v29, %v5389_v28 }
 0x2b1   : > { %v5399_v54 = vshrl.u32 %v11720_v45, %v5390_v10  ;;  %v4351_v50 = vsel %vm4349_vm7, %v10493_v51, %v4350_v18  ;;  %v5540_v57 = vadd.s32 536870912, %v5539_v5  ;;  %v5401_v12 = vshll.u32 %v11720_v45, %v5389_v28 }
 0x2b2   : > { %v5687_v44 = vand.u32 2147483647, %v10502_v52  ;;  %v4355_v49 = vsel %vm4348_vm2, %v4351_v50, %v4354_v13  ;;  %v5394_v30 = vor.u32 %v5393_v62, %v5392_v21  ;;  %v5397_v63 = vor.u32 %v5396_v34, %v5395_v26 }
 0x2b3   : > { %v5404_v27 = vshll.u32 %v11751_v42, %v5389_v28  ;;  %v4356_v38 = vsel %vm4345_vm5, nan, %v4355_v49  ;;  %vm5214_vm12 = vcmp.lt.s32.totalorder %v10480_v25, 2  ;;  %vm5481_vm6 = vcmp.lt.s32.totalorder %v10297_v7, 0  ;;  %v10594_v25 = vld [vmem:[%s7786_s12 + $0x10] sm:$0xff] }
 0x2b4   : > { %v5541_v3 = vshrl.u32 %v5540_v57, 30  ;;  %v5402_v22 = vshrl.u32 %v11751_v42, %v5390_v10  ;;  %v5690_v11 = vand.u32 2139095040, %v10502_v52  ;;  %4481 = vrot.lane.b32.xlu0 %v4356_v38, %s7756_s17  ;;  %v5391_v16 = vshrl.u32 %v11644_v31, %v5390_v10 }
 0x2b5   : > { %v5400_v43 = vor.u32 %v5399_v54, %v5398_v37  ;;  %v5405_v2 = vshrl.u32 %v11752_v0, %v5390_v10  ;;  %vm5407_vm10 = vcmp.lt.s32.totalorder %v5388_v6, 1  ;;  %vm5409_vm1 = vcmp.lt.s32.totalorder %v5388_v6, 3 }
 0x2b6   : > { %v5542_v24 = vshll.u32 %v5541_v3, 30  ;;  %v5403_v58 = vor.u32 %v5402_v22, %v5401_v12  ;;  %vm5410_vm0 = vcmp.lt.s32.totalorder %v5388_v6, 4  ;;  %vm5408_vm3 = vcmp.lt.s32.totalorder %v5388_v6, 2 }
 0x2b7   : > { %v5406_v20 = vor.u32 %v5405_v2, %v5404_v27  ;;  %v5412_v32 = vsel %vm5410_vm0, %v5400_v43, 2102212464  ;;  %v5415_v61 = vsel %vm5407_vm10, %v5394_v30, %v5397_v63  ;;  %v5565_v1 = vsub.s32 4, %v5541_v3 }
 0x2b8   : > { %v10536_v56 = vsub.s32 %v5539_v5, %v5542_v24  ;;  %v5416_v35 = vsel %vm5410_vm0, %v5403_v58, 920167782  ;;  %v5691_v39 = vshrl.u32 %v5690_v11, 23  ;;  %5334 = vrot.lane.b32.xlu0 %v4604_v53, %s7757_s18  ;;  %v5411_v28 = vsel %vm5407_vm10, %v5391_v16, %v5394_v30 }
 0x2b9   : > { %v5413_v41 = vsel %vm5409_vm1, %v5397_v63, %v5412_v32  ;;  %v5417_v10 = vsel %vm5409_vm1, %v5400_v43, %v5416_v35  ;;  %v5419_v4 = vsel %vm5407_vm10, %v5397_v63, %v5400_v43  ;;  %v5220_v21 = vsel %vm5218_vm14, %v4353_v47, %v7681_v8 }
 0x2ba   : > { %v5545_v26 = vsub.s32 0, %v10536_v56  ;;  %v5418_v5 = vsel %vm5408_vm3, %v5415_v61, %v5417_v10  ;;  %v5420_v62 = vsel %vm5410_vm0, %v5406_v20, 1326507024  ;;  %v5217_v53 = vsel %vm5215_vm8, %v10493_v51, %v4350_v18 }
 0x2bb   : > { %v5421_v13 = vsel %vm5409_vm1, %v5403_v58, %v5420_v62  ;;  %v10554_v34 = vmul.u32.u64.low %v10496_v48, %v5418_v5  ;;  %v10555_v37 = vmul.u32.u64.high %v10496_v48, %v5418_v5, %v10554_v34  ;;  %v5414_v8 = vsel %vm5408_vm3, %v5411_v28, %v5413_v41 }
 0x2bc   : > { %v7375_v54 = vmin.u32 %v5545_v26, %v10536_v56  ;;  %v5422_v47 = vsel %vm5408_vm3, %v5419_v4, %v5421_v13  ;;  %v7382_v50 = vadd.s32 4294967169, %v5691_v39  ;;  %5338 = vrot.lane.b32.xlu0 %v10330_v60, %s7757_s18  ;;  %v5566_v51 = vsel %vm5481_vm6, %v5565_v1, %v5541_v3 }
 0x2bd   : > { %v10566_v18 = vmul.u32.u64.low %v10496_v48, %v5422_v47  ;;  %v10567_v57 = vmul.u32.u64.high %v10496_v48, %v5422_v47, %v10566_v18  ;;  %vm11755_vm13 = vweird.f32 %v9921_v23  ;;  %vm10574_vm9 = vcmp.le.f32.partialorder %v5479_v15, 0.7853982 }
 0x2be   : > { %v5016_v12 = vsel %vm11755_vm13, nan, %v10382_v17  ;;  %v5547_v49 = vclz %v7375_v54  ;;  %v5221_v60 = vsel %vm5214_vm12, %v5217_v53, %v5220_v21  ;;  %v5430_v30 = vmul.u32 %v10496_v48, %v5414_v8 }
 0x2bf   : > { %v5433_v63 = vadd.s32 1, %v10555_v37  ;;  %v5697_v27 = vadd.s32 1, %v7382_v50  ;;  %v10584_v23 = vsel %vm10574_vm9, 0, %v5566_v51  ;;  %v5694_v17 = vand.u32 8388607, %v5687_v44 }
 0x2c0   : > { %v7376_v38 = vadd.s32 4294967294, %v5547_v49  ;;  %5342 = vrot.lane.b32.xlu0 %v5016_v12, %s7757_s18  ;;  %v5535_v15 = vadd.s32 %v10471_v55, %v10468_v9  ;;  %vm5432_vm11 = vc.u32 %v10567_v57, %v10554_v34  ;;  %v10597_v48 = vmul.f32 8.0, %v10594_v25 }
 0x2c1   : > { %vm5698_vm2 = vcmp.gt.s32.totalorder %v5697_v27, 0  ;;  %v5222_v3 = vsel %vm4345_vm5, nan, %v5221_v60  ;;  %v5434_v22 = vsel %vm5432_vm11, %v5433_v63, %v10555_v37  ;;  %v10603_v43 = vadd.s32 3, %v10584_v23 }
 0x2c2   : > { %vm7377_vm7 = vcmp.lt.s32.totalorder %v7376_v38, 0  ;;  %v5699_v11 = vsel %vm5698_vm2, %v5697_v27, 0  ;;  %v5435_v9 = vadd.s32 %v5434_v22, %v5430_v30  ;;  %v5695_v20 = vor.u32 8388608, %v5694_v17 }
 0x2c3   : > { %v5550_v16 = vsel %vm7377_vm7, 0, %v7376_v38  ;;  %v5701_v55 = vand.u32 31, %v5699_v11  ;;  %v10607_v14 = vshrl.u32 %v5699_v11, 5  ;;  %vm5377_vm5 = vcmp.lt.s32.totalorder %v10404_v40, 0 }
 0x2c4   : > { %v5551_v2 = vsub.s32 32, %v5550_v16  ;;  %v5552_v24 = vshll.u32 %v10536_v56, %v5550_v16  ;;  %v5555_v58 = vsub.s32 4294967266, %v5550_v16  ;;  %5346 = vrot.lane.b32.xlu0 %v5222_v3, %s7757_s18  ;;  %v5436_v32 = vadd.s32 536870912, %v5435_v9 }
 0x2c5   : > { %v5702_v61 = vsub.s32 32, %v5701_v55  ;;  %v5704_v1 = vshll.u32 %v11644_v31, %v5701_v55  ;;  %v5707_v28 = vshll.u32 %v11719_v19, %v5701_v55  ;;  %v5710_v41 = vshll.u32 %v11682_v29, %v5701_v55 }
 0x2c6   : > { %v5553_v35 = vshrl.u32 %v5535_v15, %v5551_v2  ;;  %v5556_v39 = vadd.s32 127, %v5555_v58  ;;  %v5437_v10 = vshrl.u32 %v5436_v32, 30  ;;  %v5713_v21 = vshll.u32 %v11720_v45, %v5701_v55 }
 0x2c7   : > { %v5705_v4 = vshrl.u32 %v11719_v19, %v5702_v61  ;;  %v5708_v56 = vshrl.u32 %v11682_v29, %v5702_v61  ;;  %v5711_v62 = vshrl.u32 %v11720_v45, %v5702_v61  ;;  %v5714_v53 = vshrl.u32 %v11751_v42, %v5702_v61 }
 0x2c8   : > { %v5554_v26 = vor.u32 %v5553_v35, %v5552_v24  ;;  %v5557_v5 = vshll.u32 %v5556_v39, 23  ;;  %v5438_v13 = vshll.u32 %v5437_v10, 30  ;;  %v10618_v37 = vshll.u32 %v5695_v20, 8 }
 0x2c9   : > { %v5583_v54 = vand.u32 2147483647, %v10597_v48  ;;  %v5586_v8 = vand.u32 2139095040, %v10597_v48  ;;  %v5706_v51 = vor.u32 %v5705_v4, %v5704_v1  ;;  %v5709_v18 = vor.u32 %v5708_v56, %v5707_v28 }
 0x2ca   : > { %v5558_v47 = vor.u32 4788187, %v5557_v5  ;;  %v5561_v50 = vcvt.s32.f32 %v5554_v26  ;;  %v10622_v12 = vsub.s32 %v5435_v9, %v5438_v13  ;;  %v5715_v49 = vor.u32 %v5714_v53, %v5713_v21 }
 0x2cb   : > { %v5716_v60 = vshll.u32 %v11751_v42, %v5701_v55  ;;  %v5717_v30 = vshrl.u32 %v11752_v0, %v5702_v61  ;;  %v5703_v27 = vshrl.u32 %v11644_v31, %v5702_v61  ;;  %v5712_v38 = vor.u32 %v5711_v62, %v5710_v41 }
 0x2cc   : > { %v5559_v63 = vand.u32 2147483647, %v5558_v47  ;;  %vm5719_vm15 = vcmp.lt.s32.totalorder %v10607_v14, 1  ;;  %vm10630_vm4 = vcmp.le.f32.partialorder %v5375_v36, 0.7853982  ;;  %v5441_v15 = vsub.s32 0, %v10622_v12 }
 0x2cd   : > { %v5461_v3 = vsub.s32 4, %v5437_v10  ;;  %vm5721_vm14 = vcmp.lt.s32.totalorder %v10607_v14, 3  ;;  %v5587_v22 = vshrl.u32 %v5586_v8, 23  ;;  %v5718_v16 = vor.u32 %v5717_v30, %v5716_v60 }
 0x2ce   : > { %v5562_v11 = vmul.f32 %v5561_v50, %v5559_v63  ;;  %vm5720_vm8 = vcmp.lt.s32.totalorder %v10607_v14, 2  ;;  %vm5722_vm12 = vcmp.lt.s32.totalorder %v10607_v14, 4  ;;  %v7371_v9 = vmin.u32 %v5441_v15, %v10622_v12 }
 0x2cf   : > { %v5724_v36 = vsel %vm5722_vm12, %v5712_v38, 2102212464  ;;  %v5727_v55 = vsel %vm5719_vm15, %v5706_v51, %v5709_v18  ;;  %v5728_v2 = vsel %vm5722_vm12, %v5715_v49, 920167782  ;;  %v5723_v58 = vsel %vm5719_vm15, %v5703_v27, %v5706_v51 }
 0x2d0   : > { %v5563_v24 = vxor.u32 2147483648, %v5562_v11  ;;  %v5725_v20 = vsel %vm5721_vm14, %v5709_v18, %v5724_v36  ;;  %v5729_v32 = vsel %vm5721_vm14, %v5712_v38, %v5728_v2  ;;  %v5431_v61 = vadd.s32 %v10554_v34, %v10567_v57 }
 0x2d1   : > { %v5443_v1 = vclz %v7371_v9  ;;  %v5731_v35 = vsel %vm5719_vm15, %v5709_v18, %v5712_v38  ;;  %v7378_v39 = vadd.s32 4294967169, %v5587_v22  ;;  %v5462_v41 = vsel %vm5377_vm5, %v5461_v3, %v5437_v10 }
 0x2d2   : > { %v5564_v28 = vsel %vm5481_vm6, %v5563_v24, %v5562_v11  ;;  %v5730_v4 = vsel %vm5720_vm8, %v5727_v55, %v5729_v32  ;;  %v5732_v56 = vsel %vm5722_vm12, %v5718_v16, 1326507024  ;;  %v5726_v21 = vsel %vm5720_vm8, %v5723_v58, %v5725_v20  ;;  %v10701_v20 = vld [vmem:[%s7786_s12 + $0x28] sm:$0xff] }
 0x2d3   : > { %v5567_v34 = vsel %vm10574_vm9, %v10297_v7, %v5564_v28  ;;  %v7372_v57 = vadd.s32 4294967294, %v5443_v1  ;;  %v5733_v26 = vsel %vm5721_vm14, %v5715_v49, %v5732_v56  ;;  %v10682_v8 = vsel %vm10630_vm4, 0, %v5462_v41 }
 0x2d4   : > { %7682 = vcosq.f32 %v5567_v34  ;;  %v5734_v10 = vsel %vm5720_vm8, %v5731_v35, %v5733_v26  ;;  %v10673_v5 = vmul.u32.u64.low %v10618_v37, %v5730_v4  ;;  %v10674_v62 = vmul.u32.u64.high %v10618_v37, %v5730_v4, %v10673_v5  ;;  %11760 = vst [vmem:[#allocation5_spill] sm:$0xff] %v10682_v8 }
 0x2d5   : > { %7684 = vsinq.f32 %v5567_v34  ;;  %vm7373_vm6 = vcmp.lt.s32.totalorder %v7372_v57, 0  ;;  %v10677_v6 = vmul.u32.u64.low %v10618_v37, %v5734_v10  ;;  %v10678_v53 = vmul.u32.u64.high %v10618_v37, %v5734_v10, %v10677_v6 }
 0x2d6   : > { %v5446_v13 = vsel %vm7373_vm6, 0, %v7372_v57  ;;  %v5590_v47 = vand.u32 8388607, %v5583_v54  ;;  %v5593_v14 = vadd.s32 1, %v7378_v39  ;;  %v5742_v49 = vmul.u32 %v10618_v37, %v5726_v21 }
 0x2d7   : > { %v5447_v50 = vsub.s32 32, %v5446_v13  ;;  %v5448_v51 = vshll.u32 %v10622_v12, %v5446_v13  ;;  %v5451_v18 = vsub.s32 4294967266, %v5446_v13  ;;  %v5573_v60 = vand.u32 3, %v10603_v43 }
 0x2d8   : > { %v5745_v30 = vadd.s32 1, %v10674_v62  ;;  %vm5594_vm10 = vcmp.gt.s32.totalorder %v5593_v14, 0  ;;  %vm5744_vm1 = vc.u32 %v10678_v53, %v10673_v5  ;;  %v5468_v38 = vadd.s32 3, %v10682_v8 }
 0x2d9   : > { %v5449_v63 = vshrl.u32 %v5431_v61, %v5447_v50  ;;  %v5452_v27 = vadd.s32 127, %v5451_v18  ;;  %v5591_v3 = vor.u32 8388608, %v5590_v47  ;;  %v5595_v22 = vsel %vm5594_vm10, %v5593_v14, 0 }
 0x2da   : > { %v5746_v15 = vsel %vm5744_vm1, %v5745_v30, %v10674_v62  ;;  %vm5571_vm0 = vweird.f32 %v10297_v7  ;;  %vm5574_vm3 = vcmp.lt.s32.totalorder %v5573_v60, 2  ;;  %vm5575_vm13 = vcmp.eq.s32.totalorder %v5573_v60, 0 }
 0x2db   : > { %v5450_v12 = vor.u32 %v5449_v63, %v5448_v51  ;;  %v5453_v11 = vshll.u32 %v5452_v27, 23  ;;  %v5747_v16 = vadd.s32 %v5746_v15, %v5742_v49  ;;  %v5597_v43 = vand.u32 31, %v5595_v22 }
 0x2dc   : > { %vm5578_vm9 = vcmp.eq.s32.totalorder %v5573_v60, 2  ;;  %v10696_v2 = vand.u32 3, %v5468_v38  ;;  %v10698_v58 = vshll.u32 %v5591_v3, 8  ;;  %v10704_v32 = vmul.f32 8.0, %v10701_v20 }
 0x2dd   : > { %v5454_v37 = vor.u32 4788187, %v5453_v11  ;;  %v5457_v9 = vcvt.s32.f32 %v5450_v12  ;;  %v5748_v36 = vadd.s32 536870912, %v5747_v16  ;;  %v5598_v24 = vsub.s32 32, %v5597_v43 }
 0x2de   : > { %v10694_v55 = vpop.eup %7682  ;;  %11762 = vst [vmem:[#allocation7_spill] sm:$0xff] %v10704_v32  ;;  %v10710_v39 = vadd.s32 %v10673_v5, %v10678_v53  ;;  %v5600_v4 = vshll.u32 %v11644_v31, %v5597_v43  ;;  %v5603_v34 = vshll.u32 %v11719_v19, %v5597_v43  ;;  %v5606_v62 = vshll.u32 %v11682_v29, %v5597_v43 }
 0x2df   : > { %11761 = vst [vmem:[#allocation6_spill] sm:$0xff] %v10694_v55  ;;  %v10706_v61 = vpop.eup %7684  ;;  %v11641_v1 = vxor.u32 2147483648, %v10694_v55  ;;  %v5455_v35 = vand.u32 2147483647, %v5454_v37  ;;  %v10712_v28 = vshrl.u32 %v5748_v36, 30  ;;  %v5601_v56 = vshrl.u32 %v11719_v19, %v5598_v24 }
 0x2e0   : > { %11763 = vst [vmem:[#allocation8_spill] sm:$0xff] %v10706_v61  ;;  %v11642_v41 = vxor.u32 2147483648, %v10706_v61  ;;  %v5604_v10 = vshrl.u32 %v11682_v29, %v5598_v24  ;;  %v5607_v6 = vshrl.u32 %v11720_v45, %v5598_v24  ;;  %v5609_v53 = vshll.u32 %v11720_v45, %v5597_v43 }
 0x2e1   : > { %v5580_v57 = vsel %vm5578_vm9, %v11641_v1, %v10706_v61  ;;  %v5458_v21 = vmul.f32 %v5457_v9, %v5455_v35  ;;  %v5750_v26 = vshll.u32 %v10712_v28, 30  ;;  %v5596_v50 = vshrl.u32 %v5595_v22, 5 }
 0x2e2   : > { %v5577_v5 = vsel %vm5575_vm13, %v10694_v55, %v11642_v41  ;;  %v5599_v18 = vshrl.u32 %v11644_v31, %v5598_v24  ;;  %v5602_v49 = vor.u32 %v5601_v56, %v5600_v4  ;;  %v5610_v30 = vshrl.u32 %v11751_v42, %v5598_v24 }
 0x2e3   : > { %v5581_v13 = vsel %vm5574_vm3, %v5577_v5, %v5580_v57  ;;  %v5459_v47 = vxor.u32 2147483648, %v5458_v21  ;;  %v10732_v14 = vsub.s32 %v5747_v16, %v5750_v26  ;;  %v5605_v27 = vor.u32 %v5604_v10, %v5603_v34 }
 0x2e4   : > { %v5582_v51 = vsel %vm5571_vm0, nan, %v5581_v13  ;;  %v5612_v38 = vshll.u32 %v11751_v42, %v5597_v43  ;;  %v5608_v3 = vor.u32 %v5607_v6, %v5606_v62  ;;  %v5611_v22 = vor.u32 %v5610_v30, %v5609_v53 }
 0x2e5   : > { %6217 = vrot.lane.b32.xlu1 %v5582_v51, %s7758_s19  ;;  %v5460_v63 = vsel %vm5377_vm5, %v5459_v47, %v5458_v21  ;;  %v5753_v60 = vsub.s32 0, %v10732_v14  ;;  %v5613_v12 = vshrl.u32 %v11752_v0, %v5598_v24  ;;  %vm5689_vm11 = vcmp.lt.s32.totalorder %v10502_v52, 0 }
 0x2e6   : > { %v5463_v15 = vsel %vm10630_vm4, %v10404_v40, %v5460_v63  ;;  %vm5615_vm2 = vcmp.lt.s32.totalorder %v5596_v50, 1  ;;  %v5898_v16 = vand.u32 2139095040, %v10704_v32  ;;  %vm5617_vm7 = vcmp.lt.s32.totalorder %v5596_v50, 3 }
 0x2e7   : > { %7686 = vcosq.f32 %v5463_v15  ;;  %v7383_v11 = vmin.u32 %v5753_v60, %v10732_v14  ;;  %v5614_v37 = vor.u32 %v5613_v12, %v5612_v38  ;;  %vm5618_vm5 = vcmp.lt.s32.totalorder %v5596_v50, 4 }
 0x2e8   : > { %7688 = vsinq.f32 %v5463_v15  ;;  %v5773_v17 = vsub.s32 4, %v10712_v28  ;;  %vm5616_vm15 = vcmp.lt.s32.totalorder %v5596_v50, 2  ;;  %v5619_v9 = vsel %vm5615_vm2, %v5599_v18, %v5602_v49 }
 0x2e9   : > { %v5755_v43 = vclz %v7383_v11  ;;  %v5620_v36 = vsel %vm5618_vm5, %v5608_v3, 2102212464  ;;  %v5623_v35 = vsel %vm5615_vm2, %v5602_v49, %v5605_v27  ;;  %v5624_v24 = vsel %vm5618_vm5, %v5611_v22, 920167782 }
 0x2ea   : > { %v5627_v4 = vsel %vm5615_vm2, %v5605_v27, %v5608_v3  ;;  %v5621_v34 = vsel %vm5617_vm7, %v5605_v27, %v5620_v36  ;;  %v5625_v57 = vsel %vm5617_vm7, %v5608_v3, %v5624_v24  ;;  %v5628_v21 = vsel %vm5618_vm5, %v5614_v37, 1326507024 }
 0x2eb   : > { %v7384_v56 = vadd.s32 4294967294, %v5755_v43  ;;  %vm5467_vm4 = vweird.f32 %v10404_v40  ;;  %v5622_v26 = vsel %vm5616_vm15, %v5619_v9, %v5621_v34  ;;  %v5626_v10 = vsel %vm5616_vm15, %v5623_v35, %v5625_v57 }
 0x2ec   : > { %v5629_v5 = vsel %vm5617_vm7, %v5611_v22, %v5628_v21  ;;  %v5899_v62 = vshrl.u32 %v5898_v16, 23  ;;  %v10759_v53 = vmul.u32.u64.low %v10698_v58, %v5626_v10  ;;  %v10760_v13 = vmul.u32.u64.high %v10698_v58, %v5626_v10, %v10759_v53 }
 0x2ed   : > { %vm7385_vm14 = vcmp.lt.s32.totalorder %v7384_v56, 0  ;;  %v5630_v6 = vsel %vm5616_vm15, %v5627_v4, %v5629_v5  ;;  %vm10765_vm8 = vcmp.le.f32.partialorder %v5687_v44, 0.7853982  ;;  %vm5470_vm12 = vcmp.lt.s32.totalorder %v10696_v2, 2  ;;  %v10812_v5 = vld [vmem:[%s7786_s12 + $0x20] sm:$0xff] }
 0x2ee   : > { %v5758_v51 = vsel %vm7385_vm14, 0, %v7384_v56  ;;  %v10770_v18 = vmul.u32.u64.low %v10698_v58, %v5630_v6  ;;  %v10771_v49 = vmul.u32.u64.high %v10698_v58, %v5630_v6, %v10770_v18  ;;  %v7390_v60 = vadd.s32 4294967169, %v5899_v62 }
 0x2ef   : > { %v5759_v30 = vsub.s32 32, %v5758_v51  ;;  %v5760_v50 = vshll.u32 %v10732_v14, %v5758_v51  ;;  %v5763_v63 = vsub.s32 4294967266, %v5758_v51  ;;  %vm5474_vm6 = vcmp.eq.s32.totalorder %v10696_v2, 2 }
 0x2f0   : > { %v5774_v44 = vsel %vm5689_vm11, %v5773_v17, %v10712_v28  ;;  %v5638_v27 = vmul.u32 %v10698_v58, %v5622_v26  ;;  %v5641_v22 = vadd.s32 1, %v10760_v13  ;;  %v5905_v14 = vadd.s32 1, %v7390_v60 }
 0x2f1   : > { %v10780_v38 = vpop.eup %7686  ;;  %v5761_v15 = vshrl.u32 %v10710_v39, %v5759_v30  ;;  %v5764_v3 = vadd.s32 127, %v5763_v63  ;;  %vm5471_vm10 = vcmp.eq.s32.totalorder %v10696_v2, 0  ;;  %vm5640_vm1 = vc.u32 %v10771_v49, %v10759_v53 }
 0x2f2   : > { %11766 = vst [vmem:[#allocation9_spill] sm:$0xff] %v10780_v38  ;;  %v10784_v12 = vpop.eup %7688  ;;  %v11637_v11 = vxor.u32 2147483648, %v10780_v38  ;;  %v5895_v28 = vand.u32 2147483647, %v10704_v32  ;;  %v5642_v39 = vsel %vm5640_vm1, %v5641_v22, %v10760_v13  ;;  %v10800_v17 = vsel %vm10765_vm8, 0, %v5774_v44 }
 0x2f3   : > { %11767 = vst [vmem:[#allocation10_spill] sm:$0xff] %v10784_v12  ;;  %v11638_v58 = vxor.u32 2147483648, %v10784_v12  ;;  %v5762_v16 = vor.u32 %v5761_v15, %v5760_v50  ;;  %v5765_v37 = vshll.u32 %v5764_v3, 23  ;;  %11768 = vst [vmem:[#allocation11_spill] sm:$0xff] %v10800_v17  ;;  %v5643_v9 = vadd.s32 %v5642_v39, %v5638_v27 }
 0x2f4   : > { %v5476_v43 = vsel %vm5474_vm6, %v11637_v11, %v10784_v12  ;;  %vm5906_vm3 = vcmp.gt.s32.totalorder %v5905_v14, 0  ;;  %v5902_v10 = vand.u32 8388607, %v5895_v28  ;;  %v10815_v62 = vmul.f32 8.0, %v10812_v5 }
 0x2f5   : > { %v5473_v36 = vsel %vm5471_vm10, %v10780_v38, %v11638_v58  ;;  %v5766_v35 = vor.u32 4788187, %v5765_v37  ;;  %v5769_v24 = vcvt.s32.f32 %v5762_v16  ;;  %v5907_v4 = vsel %vm5906_vm3, %v5905_v14, 0  ;;  %v11021_v38 = vld [vmem:[%s7786_s12 + $0x30] sm:$0xff] }
 0x2f6   : > { %v5477_v56 = vsel %vm5470_vm12, %v5473_v36, %v5476_v43  ;;  %v5644_v34 = vadd.s32 536870912, %v5643_v9  ;;  %v5909_v57 = vand.u32 31, %v5907_v4  ;;  %v5780_v6 = vadd.s32 3, %v10800_v17 }
 0x2f7   : > { %v5478_v21 = vsel %vm5467_vm4, nan, %v5477_v56  ;;  %v5767_v26 = vand.u32 2147483647, %v5766_v35  ;;  %v5908_v13 = vshrl.u32 %v5907_v4, 5  ;;  %v5903_v43 = vor.u32 8388608, %v5902_v10 }
 0x2f8   : > { %6215 = vrot.lane.b32.xlu0 %v5478_v21, %s7758_s19  ;;  %v10819_v2 = vshrl.u32 %v5644_v34, 30  ;;  %v5910_v51 = vsub.s32 32, %v5909_v57  ;;  %v5912_v30 = vshll.u32 %v11644_v31, %v5909_v57  ;;  %v5915_v50 = vshll.u32 %v11719_v19, %v5909_v57 }
 0x2f9   : > { %v5770_v18 = vmul.f32 %v5769_v24, %v5767_v26  ;;  %v5918_v63 = vshll.u32 %v11682_v29, %v5909_v57  ;;  %v5921_v27 = vshll.u32 %v11720_v45, %v5909_v57  ;;  %v5924_v15 = vshll.u32 %v11751_v42, %v5909_v57 }
 0x2fa   : > { %v5646_v60 = vshll.u32 %v10819_v2, 30  ;;  %v5913_v44 = vshrl.u32 %v11719_v19, %v5910_v51  ;;  %v5916_v22 = vshrl.u32 %v11682_v29, %v5910_v51  ;;  %v5919_v14 = vshrl.u32 %v11720_v45, %v5910_v51 }
 0x2fb   : > { %v5771_v3 = vxor.u32 2147483648, %v5770_v18  ;;  %v5922_v16 = vshrl.u32 %v11751_v42, %v5910_v51  ;;  %v10831_v37 = vand.u32 3, %v5780_v6  ;;  %v5925_v36 = vshrl.u32 %v11752_v0, %v5910_v51 }
 0x2fc   : > { %v10833_v39 = vsub.s32 %v5643_v9, %v5646_v60  ;;  %v5911_v24 = vshrl.u32 %v11644_v31, %v5910_v51  ;;  %v5914_v4 = vor.u32 %v5913_v44, %v5912_v30  ;;  %v5794_v56 = vand.u32 2139095040, %v10815_v62 }
 0x2fd   : > { %v5772_v35 = vsel %vm5689_vm11, %v5771_v3, %v5770_v18  ;;  %v5917_v21 = vor.u32 %v5916_v22, %v5915_v50  ;;  %v5920_v9 = vor.u32 %v5919_v14, %v5918_v63  ;;  %v5923_v26 = vor.u32 %v5922_v16, %v5921_v27 }
 0x2fe   : > { %v5775_v34 = vsel %vm10765_vm8, %v10502_v52, %v5772_v35  ;;  %v5649_v57 = vsub.s32 0, %v10833_v39  ;;  %v5926_v10 = vor.u32 %v5925_v36, %v5924_v15  ;;  %vm5927_vm13 = vcmp.lt.s32.totalorder %v5908_v13, 1 }
 0x2ff   : > { %7690 = vcosq.f32 %v5775_v34  ;;  %vm5585_vm9 = vcmp.lt.s32.totalorder %v10597_v48, 0  ;;  %vm5929_vm11 = vcmp.lt.s32.totalorder %v5908_v13, 3  ;;  %vm5930_vm2 = vcmp.lt.s32.totalorder %v5908_v13, 4 }
 0x300   : > { %7692 = vsinq.f32 %v5775_v34  ;;  %v7379_v6 = vmin.u32 %v5649_v57, %v10833_v39  ;;  %v5943_v51 = vshll.u32 %v5903_v43, 8  ;;  %v5795_v18 = vshrl.u32 %v5794_v56, 23 }
 0x301   : > { %vm5928_vm7 = vcmp.lt.s32.totalorder %v5908_v13, 2  ;;  %v5935_v47 = vsel %vm5927_vm13, %v5914_v4, %v5917_v21  ;;  %v5939_v60 = vsel %vm5927_vm13, %v5917_v21, %v5920_v9  ;;  %vm5782_vm5 = vcmp.lt.s32.totalorder %v10831_v37, 2 }
 0x302   : > { %v5651_v30 = vclz %v7379_v6  ;;  %v5931_v50 = vsel %vm5927_vm13, %v5911_v24, %v5914_v4  ;;  %v5932_v63 = vsel %vm5930_vm2, %v5920_v9, 2102212464  ;;  %v5936_v44 = vsel %vm5930_vm2, %v5923_v26, 920167782 }
 0x303   : > { %v5940_v27 = vsel %vm5930_vm2, %v5926_v10, 1326507024  ;;  %vm5779_vm15 = vweird.f32 %v10502_v52  ;;  %v5933_v3 = vsel %vm5929_vm11, %v5917_v21, %v5932_v63  ;;  %v5937_v22 = vsel %vm5929_vm11, %v5920_v9, %v5936_v44 }
 0x304   : > { %v7380_v15 = vadd.s32 4294967294, %v5651_v30  ;;  %v5941_v14 = vsel %vm5929_vm11, %v5923_v26, %v5940_v27  ;;  %v5669_v16 = vsub.s32 4, %v10819_v2  ;;  %v5938_v43 = vsel %vm5928_vm7, %v5935_v47, %v5937_v22 }
 0x305   : > { %v5942_v36 = vsel %vm5928_vm7, %v5939_v60, %v5941_v14  ;;  %v7386_v35 = vadd.s32 4294967169, %v5795_v18  ;;  %vm10856_vm14 = vcmp.le.f32.partialorder %v5583_v54, 0.7853982  ;;  %v5639_v4 = vadd.s32 %v10759_v53, %v10771_v49 }
 0x306   : > { %vm7381_vm8 = vcmp.lt.s32.totalorder %v7380_v15, 0  ;;  %v10862_v56 = vmul.u32.u64.low %v5943_v51, %v5942_v36  ;;  %v10863_v34 = vmul.u32.u64.high %v5943_v51, %v5942_v36, %v10862_v56  ;;  %v5934_v21 = vsel %vm5928_vm7, %v5931_v50, %v5933_v3 }
 0x307   : > { %v5654_v57 = vsel %vm7381_vm8, 0, %v7380_v15  ;;  %v10866_v9 = vmul.u32.u64.low %v5943_v51, %v5938_v43  ;;  %v10867_v26 = vmul.u32.u64.high %v5943_v51, %v5938_v43, %v10866_v9  ;;  %v5801_v18 = vadd.s32 1, %v7386_v35 }
 0x308   : > { %v5655_v10 = vsub.s32 32, %v5654_v57  ;;  %v5656_v54 = vshll.u32 %v10833_v39, %v5654_v57  ;;  %v5659_v6 = vsub.s32 4294967266, %v5654_v57  ;;  %vm5783_vm12 = vcmp.eq.s32.totalorder %v10831_v37, 0 }
 0x309   : > { %v10871_v30 = vpop.eup %7690  ;;  %vm5786_vm6 = vcmp.eq.s32.totalorder %v10831_v37, 2  ;;  %v5670_v53 = vsel %vm5585_vm9, %v5669_v16, %v10819_v2  ;;  %v11643_v49 = vand.u32 2147483647, %v10815_v62  ;;  %v5950_v50 = vmul.u32 %v5943_v51, %v5934_v21 }
 0x30a   : > { %11771 = vst [vmem:[#allocation12_spill] sm:$0xff] %v10871_v30  ;;  %v10879_v13 = vpop.eup %7692  ;;  %v11639_v47 = vxor.u32 2147483648, %v10871_v30  ;;  %v5657_v60 = vshrl.u32 %v5639_v4, %v5655_v10  ;;  %v5660_v39 = vadd.s32 127, %v5659_v6  ;;  %vm5952_vm10 = vc.u32 %v10863_v34, %v10866_v9 }
 0x30b   : > { %11772 = vst [vmem:[#allocation13_spill] sm:$0xff] %v10879_v13  ;;  %v11640_v63 = vxor.u32 2147483648, %v10879_v13  ;;  %v5953_v44 = vadd.s32 1, %v10867_v26  ;;  %vm5802_vm1 = vcmp.gt.s32.totalorder %v5801_v18, 0  ;;  %v5798_v14 = vand.u32 8388607, %v11643_v49 }
 0x30c   : > { %v5788_v2 = vsel %vm5786_vm6, %v11639_v47, %v10879_v13  ;;  %v5658_v27 = vor.u32 %v5657_v60, %v5656_v54  ;;  %v5661_v15 = vshll.u32 %v5660_v39, 23  ;;  %v5803_v3 = vsel %vm5802_vm1, %v5801_v18, 0  ;;  %v10909_v18 = vpop.permute.xlu1 %981  ;;  %v10911_v60 = vpop.permute.xlu0 %977 }
 0x30d   : > { %v5785_v51 = vsel %vm5783_vm12, %v10871_v30, %v11640_v63  ;;  %v5954_v22 = vsel %vm5952_vm10, %v5953_v44, %v10867_v26  ;;  %v5805_v16 = vand.u32 31, %v5803_v3  ;;  %v10903_v57 = vsel %vm10856_vm14, 0, %v5670_v53 }
 0x30e   : > { %v5789_v43 = vsel %vm5782_vm5, %v5785_v51, %v5788_v2  ;;  %v5662_v36 = vor.u32 4788187, %v5661_v15  ;;  %v5665_v35 = vcvt.s32.f32 %v5658_v27  ;;  %v5955_v4 = vadd.s32 %v5954_v22, %v5950_v50 }
 0x30f   : > { %v5790_v56 = vsel %vm5779_vm15, nan, %v5789_v43  ;;  %v5806_v21 = vsub.s32 32, %v5805_v16  ;;  %v5808_v26 = vshll.u32 %v11644_v31, %v5805_v16  ;;  %v5811_v37 = vshll.u32 %v11719_v19, %v5805_v16 }
 0x310   : > { %6221 = vrot.lane.b32.xlu1 %v5790_v56, %s7758_s19  ;;  %v5663_v10 = vand.u32 2147483647, %v5662_v36  ;;  %v5956_v54 = vadd.s32 536870912, %v5955_v4  ;;  %v5814_v6 = vshll.u32 %v11682_v29, %v5805_v16  ;;  %v5817_v44 = vshll.u32 %v11720_v45, %v5805_v16  ;;  %v10925_v63 = vpop.permute.xlu1 %983 }
 0x311   : > { %v5809_v39 = vshrl.u32 %v11719_v19, %v5806_v21  ;;  %v5812_v53 = vshrl.u32 %v11682_v29, %v5806_v21  ;;  %v5815_v50 = vshrl.u32 %v11720_v45, %v5806_v21  ;;  %v5804_v15 = vshrl.u32 %v5803_v3, 5 }
 0x312   : > { %v5666_v2 = vmul.f32 %v5665_v35, %v5663_v10  ;;  %v10917_v27 = vshrl.u32 %v5956_v54, 30  ;;  %v5818_v51 = vshrl.u32 %v11751_v42, %v5806_v21  ;;  %v5676_v22 = vadd.s32 3, %v10903_v57  ;;  %v10927_v35 = vpop.permute.xlu0 %979 }
 0x313   : > { %v5820_v43 = vshll.u32 %v11751_v42, %v5805_v16  ;;  %v5821_v36 = vshrl.u32 %v11752_v0, %v5806_v21  ;;  %v5799_v58 = vor.u32 8388608, %v5798_v14  ;;  %v5807_v47 = vshrl.u32 %v11644_v31, %v5806_v21 }
 0x314   : > { %v5667_v56 = vxor.u32 2147483648, %v5666_v2  ;;  %v5958_v11 = vshll.u32 %v10917_v27, 30  ;;  %v5810_v10 = vor.u32 %v5809_v39, %v5808_v26  ;;  %v5813_v3 = vor.u32 %v5812_v53, %v5811_v37 }
 0x315   : > { %v5816_v54 = vor.u32 %v5815_v50, %v5814_v6  ;;  %v5819_v1 = vor.u32 %v5818_v51, %v5817_v44  ;;  %vm5823_vm3 = vcmp.lt.s32.totalorder %v5804_v15, 1  ;;  %vm5826_vm13 = vcmp.lt.s32.totalorder %v5804_v15, 4  ;;  %v10940_v6 = vpop.permute.xlu1 %987  ;;  %v10950_v44 = vld [vmem:[%s7786_s12 + $0x38] sm:$0xff] }
 0x316   : > { %v5668_v41 = vsel %vm5585_vm9, %v5667_v56, %v5666_v2  ;;  %v10931_v16 = vsub.s32 %v5955_v4, %v5958_v11  ;;  %v10936_v21 = vand.u32 3, %v5676_v22  ;;  %v5822_v49 = vor.u32 %v5821_v36, %v5820_v43  ;;  %v10942_v11 = vpop.permute.xlu0 %985 }
 0x317   : > { %v5671_v14 = vsel %vm10856_vm14, %v10597_v48, %v5668_v41  ;;  %vm5825_vm11 = vcmp.lt.s32.totalorder %v5804_v15, 3  ;;  %vm5824_vm2 = vcmp.lt.s32.totalorder %v5804_v15, 2  ;;  %v5828_v37 = vsel %vm5826_vm13, %v5816_v54, 2102212464 }
 0x318   : > { %7694 = vcosq.f32 %v5671_v14  ;;  %v5961_v26 = vsub.s32 0, %v10931_v16  ;;  %v5831_v4 = vsel %vm5823_vm3, %v5810_v10, %v5813_v3  ;;  %v5832_v41 = vsel %vm5826_vm13, %v5819_v1, 920167782 }
 0x319   : > { %7696 = vsinq.f32 %v5671_v14  ;;  %v5839_v24 = vshll.u32 %v5799_v58, 8  ;;  %v5827_v53 = vsel %vm5823_vm3, %v5807_v47, %v5810_v10  ;;  %v5833_v50 = vsel %vm5825_vm11, %v5816_v54, %v5832_v41  ;;  %v10966_v10 = vpop.permute.xlu1 %991 }
 0x31a   : > { %v7391_v39 = vmin.u32 %v5961_v26, %v10931_v16  ;;  %v10953_v2 = vmul.f32 8.0, %v10950_v44  ;;  %v5829_v51 = vsel %vm5825_vm11, %v5813_v3, %v5828_v37  ;;  %v5834_v22 = vsel %vm5824_vm2, %v5831_v4, %v5833_v50  ;;  %v10968_v14 = vpop.permute.xlu0 %989 }
 0x31b   : > { %v5835_v43 = vsel %vm5823_vm3, %v5813_v3, %v5816_v54  ;;  %v5836_v36 = vsel %vm5826_vm13, %v5822_v49, 1326507024  ;;  %vm10961_vm9 = vcmp.le.f32.partialorder %v5895_v28, 0.7853982  ;;  %v5981_v56 = vsub.s32 4, %v10917_v27 }
 0x31c   : > { %v5963_v47 = vclz %v7391_v39  ;;  %vm5675_vm7 = vweird.f32 %v10597_v48  ;;  %vm5897_vm5 = vcmp.lt.s32.totalorder %v10704_v32, 0  ;;  %v5837_v3 = vsel %vm5825_vm11, %v5819_v1, %v5836_v36 }
 0x31d   : > { %v10973_v49 = vmul.u32.u64.low %v5839_v24, %v5834_v22  ;;  %v10974_v54 = vmul.u32.u64.high %v5839_v24, %v5834_v22, %v10973_v49  ;;  %v5830_v26 = vsel %vm5824_vm2, %v5827_v53, %v5829_v51  ;;  %v5838_v37 = vsel %vm5824_vm2, %v5835_v43, %v5837_v3  ;;  %v10990_v15 = vpop.permute.xlu1 %1844 }
 0x31e   : > { %v7392_v28 = vadd.s32 4294967294, %v5963_v47  ;;  %v6106_v4 = vand.u32 2139095040, %v10953_v2  ;;  %vm5678_vm14 = vcmp.lt.s32.totalorder %v10936_v21, 2  ;;  %vm5679_vm8 = vcmp.eq.s32.totalorder %v10936_v21, 0  ;;  %11775 = vst [vmem:[#allocation14_spill] sm:$0xff] %v10990_v15  ;;  %v10992_v51 = vpop.permute.xlu0 %1842 }
 0x31f   : > { %v10982_v41 = vmul.u32.u64.low %v5839_v24, %v5838_v37  ;;  %v10983_v39 = vmul.u32.u64.high %v5839_v24, %v5838_v37, %v10982_v41  ;;  %v5951_v1 = vadd.s32 %v10866_v9, %v10863_v34  ;;  %v5982_v50 = vsel %vm5897_vm5, %v5981_v56, %v10917_v27  ;;  %11776 = vst [vmem:[#allocation15_spill] sm:$0xff] %v10992_v51 }
 0x320   : > { %vm7393_vm12 = vcmp.lt.s32.totalorder %v7392_v28, 0  ;;  %v6107_v53 = vshrl.u32 %v6106_v4, 23  ;;  %vm5682_vm6 = vcmp.eq.s32.totalorder %v10936_v21, 2  ;;  %v5846_v43 = vmul.u32 %v5839_v24, %v5830_v26 }
 0x321   : > { %v5966_v22 = vsel %vm7393_vm12, 0, %v7392_v28  ;;  %v5849_v36 = vadd.s32 1, %v10974_v54  ;;  %v11004_v4 = vsel %vm10961_vm9, 0, %v5982_v50  ;;  %vm5848_vm10 = vc.u32 %v10983_v39, %v10973_v49 }
 0x322   : > { %v10996_v47 = vpop.eup %7694  ;;  %v5967_v3 = vsub.s32 32, %v5966_v22  ;;  %v5968_v34 = vshll.u32 %v10931_v16, %v5966_v22  ;;  %v5971_v9 = vsub.s32 4294967266, %v5966_v22  ;;  %v7398_v37 = vadd.s32 4294967169, %v6107_v53  ;;  %v11011_v53 = vpop.permute.xlu1 %1848 }
 0x323   : > { %v10999_v27 = vpop.eup %7696  ;;  %v11649_v56 = vxor.u32 2147483648, %v10996_v47  ;;  %v5850_v41 = vsel %vm5848_vm10, %v5849_v36, %v10974_v54  ;;  %11777 = vst [vmem:[#allocation16_spill] sm:$0xff] %v11011_v53  ;;  %v11013_v22 = vpop.permute.xlu0 %1846  ;;  %v11024_v24 = vmul.f32 8.0, %v11021_v38  ;;  %v11783_v30 = vmov 683565275  }
 0x324   : > { %v11655_v28 = vxor.u32 2147483648, %v10999_v27  ;;  %v5969_v26 = vshrl.u32 %v5951_v1, %v5967_v3  ;;  %v5972_v16 = vadd.s32 127, %v5971_v9  ;;  %11778 = vst [vmem:[#allocation17_spill] sm:$0xff] %v11013_v22  ;;  %v5851_v31 = vadd.s32 %v5850_v41, %v5846_v43 }
 0x325   : > { %v5684_v50 = vsel %vm5682_vm6, %v11649_v56, %v10999_v27  ;;  %v6113_v40 = vadd.s32 1, %v7398_v37  ;;  %11779 = vst [vmem:[#allocation18_spill] sm:$0xff] %v11024_v24  ;;  %v5988_v3 = vadd.s32 3, %v11004_v4  ;;  %v11780_v37 = vand.u32 2147483647, %v10953_v2 }
 0x326   : > { %v5681_v54 = vsel %vm5679_vm8, %v10996_v47, %v11655_v28  ;;  %v5970_v1 = vor.u32 %v5969_v26, %v5968_v34  ;;  %v5973_v36 = vshll.u32 %v5972_v16, 23  ;;  %v5852_v43 = vadd.s32 536870912, %v5851_v31  ;;  %v11038_v7 = vpop.permute.xlu1 %1852 }
 0x327   : > { %v5685_v9 = vsel %vm5678_vm14, %v5681_v54, %v5684_v50  ;;  %v6110_v41 = vand.u32 8388607, %v11780_v37  ;;  %vm6114_vm1 = vcmp.gt.s32.totalorder %v6113_v40, 0  ;;  %11781 = vst [vmem:[#allocation19_spill] sm:$0xff] %v11038_v7  ;;  %v11040_v34 = vpop.permute.xlu0 %1850  ;;  %v11045_v50 = vand.u32 3, %v5988_v3 }
 0x328   : > { %v5686_v56 = vsel %vm5675_vm7, nan, %v5685_v9  ;;  %v5974_v12 = vor.u32 4788187, %v5973_v36  ;;  %v5977_v8 = vcvt.s32.f32 %v5970_v1  ;;  %v6115_v52 = vsel %vm6114_vm1, %v6113_v40, 0  ;;  %11782 = vst [vmem:[#allocation20_spill] sm:$0xff] %v11040_v34 }
 0x329   : > { %6219 = vrot.lane.b32.xlu0 %v5686_v56, %s7758_s19  ;;  %v11043_v26 = vshrl.u32 %v5852_v43, 30  ;;  %v6117_v21 = vand.u32 31, %v6115_v52  ;;  %v6002_v1 = vand.u32 2139095040, %v11024_v24  ;;  %v6111_v36 = vor.u32 8388608, %v6110_v41 }
 0x32a   : > { %v5975_v16 = vand.u32 2147483647, %v5974_v12  ;;  %v6116_v28 = vshrl.u32 %v6115_v52, 5  ;;  %v11051_v55 = vpop.permute.xlu1 %1856  ;;  %v5847_v41 = vadd.s32 %v10973_v49, %v10983_v39  ;;  %vm5793_vm13 = vcmp.lt.s32.totalorder %v10815_v62, 0 }
 0x32b   : > { %v5854_v54 = vshll.u32 %v11043_v26, 30  ;;  %v6118_v37 = vsub.s32 32, %v6117_v21  ;;  %v6120_v13 = vshll.u32 %v11783_v30, %v6117_v21  ;;  %11784 = vst [vmem:[#allocation21_spill] sm:$0xff] %v11051_v55  ;;  %v11053_v56 = vpop.permute.xlu0 %1854  ;;  %v6123_v3 = vshll.u32 %v11719_v19, %v6117_v21 }
 0x32c   : > { %v5978_v40 = vmul.f32 %v5977_v8, %v5975_v16  ;;  %11785 = vst [vmem:[#allocation22_spill] sm:$0xff] %v11053_v56  ;;  %v6126_v61 = vshll.u32 %v11682_v29, %v6117_v21  ;;  %v6129_v52 = vshll.u32 %v11720_v45, %v6117_v21  ;;  %v6132_v7 = vshll.u32 %v11751_v42, %v6117_v21 }
 0x32d   : > { %v11055_v43 = vsub.s32 %v5851_v31, %v5854_v54  ;;  %v6121_v12 = vshrl.u32 %v11719_v19, %v6118_v37  ;;  %v6124_v17 = vshrl.u32 %v11682_v29, %v6118_v37  ;;  %v6127_v8 = vshrl.u32 %v11720_v45, %v6118_v37 }
 0x32e   : > { %v5979_v9 = vxor.u32 2147483648, %v5978_v40  ;;  %v6130_v31 = vshrl.u32 %v11751_v42, %v6118_v37  ;;  %v6003_v54 = vshrl.u32 %v6002_v1, 23  ;;  %v6119_v55 = vshrl.u32 %v11783_v30, %v6118_v37  ;;  %v11071_v22 = vpop.permute.xlu1 %2725 }
 0x32f   : > { %v5857_v16 = vsub.s32 0, %v11055_v43  ;;  %v6122_v34 = vor.u32 %v6121_v12, %v6120_v13  ;;  %v11073_v53 = vpop.permute.xlu0 %2723  ;;  %v6125_v51 = vor.u32 %v6124_v17, %v6123_v3  ;;  %v6128_v1 = vor.u32 %v6127_v8, %v6126_v61 }
 0x330   : > { %v5980_v56 = vsel %vm5897_vm5, %v5979_v9, %v5978_v40  ;;  %v6131_v15 = vor.u32 %v6130_v31, %v6129_v52  ;;  %v6133_v9 = vshrl.u32 %v11752_v0, %v6118_v37  ;;  %vm6135_vm3 = vcmp.lt.s32.totalorder %v6116_v28, 1 }
 0x331   : > { %v5983_v49 = vsel %vm10961_vm9, %v10704_v32, %v5980_v56  ;;  %v7387_v39 = vmin.u32 %v5857_v16, %v11055_v43  ;;  %v11081_v21 = vshll.u32 %v6111_v36, 8  ;;  %v7394_v40 = vadd.s32 4294967169, %v6003_v54 }
 0x332   : > { %7698 = vcosq.f32 %v5983_v49  ;;  %v6134_v12 = vor.u32 %v6133_v9, %v6132_v7  ;;  %vm6136_vm11 = vcmp.lt.s32.totalorder %v6116_v28, 2  ;;  %vm6137_vm2 = vcmp.lt.s32.totalorder %v6116_v28, 3  ;;  %v11083_v58 = vpop.permute.xlu1 %2729 }
 0x333   : > { %7700 = vsinq.f32 %v5983_v49  ;;  %v5859_v13 = vclz %v7387_v39  ;;  %vm6138_vm9 = vcmp.lt.s32.totalorder %v6116_v28, 4  ;;  %11786 = vst [vmem:[#allocation23_spill] sm:$0xff] %v11083_v58  ;;  %v11085_v17 = vpop.permute.xlu0 %2727  ;;  %v6139_v56 = vsel %vm6135_vm3, %v6119_v55, %v6122_v34 }
 0x334   : > { %11787 = vst [vmem:[#allocation24_spill] sm:$0xff] %v11085_v17  ;;  %v6140_v37 = vsel %vm6138_vm9, %v6128_v1, 2102212464  ;;  %v6143_v3 = vsel %vm6135_vm3, %v6122_v34, %v6125_v51  ;;  %v6144_v52 = vsel %vm6138_vm9, %v6131_v15, 920167782  ;;  %v6147_v36 = vsel %vm6135_vm3, %v6125_v51, %v6128_v1 }
 0x335   : > { %v7388_v61 = vadd.s32 4294967294, %v5859_v13  ;;  %v6141_v8 = vsel %vm6137_vm2, %v6125_v51, %v6140_v37  ;;  %v6148_v16 = vsel %vm6138_vm9, %v6134_v12, 1326507024  ;;  %vm5987_vm5 = vweird.f32 %v10704_v32 }
 0x336   : > { %v11788_v7 = vand.u32 2147483647, %v10815_v62  ;;  %v5877_v55 = vsub.s32 4, %v11043_v26  ;;  %v6145_v54 = vsel %vm6137_vm2, %v6128_v1, %v6144_v52  ;;  %v6149_v34 = vsel %vm6137_vm2, %v6131_v15, %v6148_v16  ;;  %v11104_v13 = vpop.permute.xlu1 %2733 }
 0x337   : > { %vm7389_vm8 = vcmp.lt.s32.totalorder %v7388_v61, 0  ;;  %v6142_v39 = vsel %vm6136_vm11, %v6139_v56, %v6141_v8  ;;  %v6146_v51 = vsel %vm6136_vm11, %v6143_v3, %v6145_v54  ;;  %v6150_v9 = vsel %vm6136_vm11, %v6147_v36, %v6149_v34  ;;  %v11106_v12 = vpop.permute.xlu0 %2731 }
 0x338   : > { %vm11094_vm14 = vcmp.le.f32.partialorder %v11788_v7, 0.7853982  ;;  %v5862_v49 = vsel %vm7389_vm8, 0, %v7388_v61  ;;  %11791 = vst [vmem:[#allocation25_spill] sm:$0xff] %v11106_v12  ;;  %v6009_v58 = vadd.s32 1, %v7394_v40  ;;  %vm5991_vm12 = vcmp.eq.s32.totalorder %v11045_v50, 0 }
 0x339   : > { %v5863_v37 = vsub.s32 32, %v5862_v49  ;;  %v5864_v7 = vshll.u32 %v11055_v43, %v5862_v49  ;;  %v5867_v17 = vsub.s32 4294967266, %v5862_v49  ;;  %vm5994_vm10 = vcmp.eq.s32.totalorder %v11045_v50, 2 }
 0x33a   : > { %v11110_v1 = vmul.u32.u64.low %v11081_v21, %v6150_v9  ;;  %v11111_v52 = vmul.u32.u64.high %v11081_v21, %v6150_v9, %v11110_v1  ;;  %v11114_v15 = vmul.u32.u64.low %v11081_v21, %v6146_v51  ;;  %v11115_v61 = vmul.u32.u64.high %v11081_v21, %v6146_v51, %v11114_v15  ;;  %v11129_v16 = vpop.permute.xlu1 %2737 }
 0x33b   : > { %v5865_v28 = vshrl.u32 %v5847_v41, %v5863_v37  ;;  %v5868_v56 = vadd.s32 127, %v5867_v17  ;;  %vm6010_vm6 = vcmp.gt.s32.totalorder %v6009_v58, 0  ;;  %v5878_v43 = vsel %vm5793_vm13, %v5877_v55, %v11043_v26  ;;  %11793 = vst [vmem:[#allocation26_spill] sm:$0xff] %v11129_v16  ;;  %v11131_v54 = vpop.permute.xlu0 %2735 }
 0x33c   : > { %v11119_v3 = vpop.eup %7698  ;;  %v11792_v40 = vand.u32 2147483647, %v11024_v24  ;;  %v6011_v36 = vsel %vm6010_vm6, %v6009_v58, 0  ;;  %11794 = vst [vmem:[#allocation27_spill] sm:$0xff] %v11131_v54  ;;  %v6158_v51 = vmul.u32 %v11081_v21, %v6142_v39  ;;  %vm5990_vm1 = vcmp.lt.s32.totalorder %v11045_v50, 2 }
 0x33d   : > { %v11133_v41 = vpop.eup %7700  ;;  %v11665_v17 = vxor.u32 2147483648, %v11119_v3  ;;  %v5866_v34 = vor.u32 %v5865_v28, %v5864_v7  ;;  %v5869_v49 = vshll.u32 %v5868_v56, 23  ;;  %vm6160_vm3 = vc.u32 %v11111_v52, %v11114_v15 }
 0x33e   : > { %v11127_v8 = vand.u32 8388607, %v11792_v40  ;;  %v11668_v26 = vxor.u32 2147483648, %v11133_v41  ;;  %v6161_v58 = vadd.s32 1, %v11115_v61  ;;  %v6013_v7 = vand.u32 31, %v6011_v36  ;;  %v11158_v56 = vpop.permute.xlu1 %3590 }
 0x33f   : > { %v5996_v55 = vsel %vm5994_vm10, %v11665_v17, %v11133_v41  ;;  %v5870_v9 = vor.u32 4788187, %v5869_v49  ;;  %v5873_v37 = vcvt.s32.f32 %v5866_v34  ;;  %v11154_v39 = vsel %vm11094_vm14, 0, %v5878_v43  ;;  %11795 = vst [vmem:[#allocation28_spill] sm:$0xff] %v11158_v56  ;;  %v11160_v40 = vpop.permute.xlu0 %3588 }
 0x340   : > { %v5993_v21 = vsel %vm5991_vm12, %v11119_v3, %v11668_v26  ;;  %v6162_v1 = vsel %vm6160_vm3, %v6161_v58, %v11115_v61  ;;  %v6007_v28 = vor.u32 8388608, %v11127_v8  ;;  %11796 = vst [vmem:[#allocation29_spill] sm:$0xff] %v11160_v40  ;;  %v6014_v24 = vsub.s32 32, %v6013_v7 }
 0x341   : > { %v5997_v34 = vsel %vm5990_vm1, %v5993_v21, %v5996_v55  ;;  %v5871_v49 = vand.u32 2147483647, %v5870_v9  ;;  %v6163_v17 = vadd.s32 %v6162_v1, %v6158_v51  ;;  %v6012_v26 = vshrl.u32 %v6011_v36, 5 }
 0x342   : > { %v5998_v50 = vsel %vm5987_vm5, nan, %v5997_v34  ;;  %v6016_v54 = vshll.u32 %v11783_v30, %v6013_v7  ;;  %v6019_v43 = vshll.u32 %v11719_v19, %v6013_v7  ;;  %v6017_v58 = vshrl.u32 %v11719_v19, %v6014_v24  ;;  %v11173_v21 = vpop.permute.xlu1 %3594 }
 0x343   : > { %6225 = vrot.lane.b32.xlu1 %v5998_v50, %s7758_s19  ;;  %v5874_v61 = vmul.f32 %v5873_v37, %v5871_v49  ;;  %v6164_v8 = vadd.s32 536870912, %v6163_v17  ;;  %v6022_v40 = vshll.u32 %v11682_v29, %v6013_v7  ;;  %v6020_v55 = vshrl.u32 %v11682_v29, %v6014_v24  ;;  %11797 = vst [vmem:[#allocation30_spill] sm:$0xff] %v11173_v21  ;;  %v11175_v1 = vpop.permute.xlu0 %3592 }
 0x344   : > { %v6023_v51 = vshrl.u32 %v11720_v45, %v6014_v24  ;;  %v6025_v9 = vshll.u32 %v11720_v45, %v6013_v7  ;;  %v6026_v36 = vshrl.u32 %v11751_v42, %v6014_v24  ;;  %11798 = vst [vmem:[#allocation31_spill] sm:$0xff] %v11175_v1  ;;  %v5884_v37 = vadd.s32 3, %v11154_v39 }
 0x345   : > { %v5875_v34 = vxor.u32 2147483648, %v5874_v61  ;;  %v11178_v49 = vshrl.u32 %v6164_v8, 30  ;;  %v6028_v19 = vshll.u32 %v11751_v42, %v6013_v7  ;;  %v6018_v50 = vor.u32 %v6017_v58, %v6016_v54 }
 0x346   : > { %v6021_v32 = vor.u32 %v6020_v55, %v6019_v43  ;;  %v6029_v29 = vshrl.u32 %v11752_v0, %v6014_v24  ;;  %vm6031_vm11 = vcmp.lt.s32.totalorder %v6012_v26, 1  ;;  %v6015_v21 = vshrl.u32 %v11783_v30, %v6014_v24  ;;  %v11189_v42 = vpop.permute.xlu1 %3598 }
 0x347   : > { %v5876_v45 = vsel %vm5793_vm13, %v5875_v34, %v5874_v61  ;;  %v6166_v56 = vshll.u32 %v11178_v49, 30  ;;  %v6027_v1 = vor.u32 %v6026_v36, %v6025_v9  ;;  %v6024_v16 = vor.u32 %v6023_v51, %v6022_v40  ;;  %v11191_v54 = vpop.permute.xlu0 %3596 }
 0x348   : > { %v5879_v8 = vsel %vm11094_vm14, %v10815_v62, %v5876_v45  ;;  %v6030_v12 = vor.u32 %v6029_v29, %v6028_v19  ;;  %vm6034_vm2 = vcmp.lt.s32.totalorder %v6012_v26, 4  ;;  %vm6033_vm13 = vcmp.lt.s32.totalorder %v6012_v26, 3 }
 0x349   : > { %7702 = vcosq.f32 %v5879_v8  ;;  %v11193_v0 = vsub.s32 %v6163_v17, %v6166_v56  ;;  %v11195_v7 = vshll.u32 %v6007_v28, 8  ;;  %vm6032_vm9 = vcmp.lt.s32.totalorder %v6012_v26, 2 }
 0x34a   : > { %7704 = vsinq.f32 %v5879_v8  ;;  %v6036_v30 = vsel %vm6034_vm2, %v6024_v16, 2102212464  ;;  %v6039_v24 = vsel %vm6031_vm11, %v6018_v50, %v6021_v32  ;;  %v6040_v40 = vsel %vm6034_vm2, %v6027_v1, 920167782  ;;  %v11205_v56 = vpop.permute.xlu1 %3602 }
 0x34b   : > { %v6169_v31 = vsub.s32 0, %v11193_v0  ;;  %v6035_v43 = vsel %vm6031_vm11, %v6015_v21, %v6018_v50  ;;  %v6041_v61 = vsel %vm6033_vm13, %v6024_v16, %v6040_v40  ;;  %v6043_v17 = vsel %vm6031_vm11, %v6021_v32, %v6024_v16  ;;  %v11207_v58 = vpop.permute.xlu0 %3600 }
 0x34c   : > { %v6044_v28 = vsel %vm6034_vm2, %v6030_v12, 1326507024  ;;  %v6037_v51 = vsel %vm6033_vm13, %v6021_v32, %v6036_v30  ;;  %v6042_v9 = vsel %vm6032_vm9, %v6039_v24, %v6041_v61  ;;  %v5885_v34 = vand.u32 3, %v5884_v37 }
 0x34d   : > { %v7399_v55 = vmin.u32 %v6169_v31, %v11193_v0  ;;  %v6045_v36 = vsel %vm6033_vm13, %v6027_v1, %v6044_v28  ;;  %v11215_v19 = vmul.u32.u64.low %v11195_v7, %v6042_v9  ;;  %v11216_v16 = vmul.u32.u64.high %v11195_v7, %v6042_v9, %v11215_v19 }
 0x34e   : > { %v6046_v21 = vsel %vm6032_vm9, %v6043_v17, %v6045_v36  ;;  %v6038_v12 = vsel %vm6032_vm9, %v6035_v43, %v6037_v51  ;;  %v11231_v50 = vpop.permute.xlu1 %4471  ;;  %vm128_vm14 = vcmask 23552   ;;  %vm1001_vm8 = vcmask 48152  }
 0x34f   : > { %v6171_v32 = vclz %v7399_v55  ;;  %v11228_v1 = vmul.u32.u64.low %v11195_v7, %v6046_v21  ;;  %v11229_v37 = vmul.u32.u64.high %v11195_v7, %v6046_v21, %v11228_v1  ;;  %v11233_v29 = vpop.permute.xlu0 %4469  ;;  %vm5886_vm12 = vcmp.lt.s32.totalorder %v5885_v34, 2  ;;  %131 = vst.msk [vmem:[%s11224_s22 + $0x10] sm:$0xff] %vm128_vm14, %v10594_v25  ;;  %129 = vst.msk [vmem:[%s11224_s22] sm:$0xff] %vm128_vm14, %v10401_v46 }
 0x350   : > { %v6057_v8 = vadd.s32 1, %v11216_v16  ;;  %130 = vst.msk [vmem:[%s11224_s22 + $0x8] sm:$0xff] %vm128_vm14, %v10294_v33  ;;  %132 = vst.msk [vmem:[%s11224_s22 + $0x18] sm:$0xff] %vm128_vm14, %v10499_v59  ;;  %vm5890_vm6 = vcmp.eq.s32.totalorder %v5885_v34, 2  ;;  %v6159_v46 = vadd.s32 %v11114_v15, %v11111_v52  ;;  %v6054_v33 = vmul.u32 %v11195_v7, %v6038_v12 }
 0x351   : > { %v7400_v45 = vadd.s32 4294967294, %v6171_v32  ;;  %133 = vst.msk [vmem:[%s11224_s22 + $0x20] sm:$0xff] %vm128_vm14, %v10812_v5  ;;  %134 = vst.msk [vmem:[%s11224_s22 + $0x28] sm:$0xff] %vm128_vm14, %v10701_v20  ;;  %vm5887_vm1 = vcmp.eq.s32.totalorder %v5885_v34, 0  ;;  %vm6056_vm3 = vc.u32 %v11229_v37, %v11215_v19  ;;  %vm5883_vm11 = vweird.f32 %v10815_v62 }
 0x352   : > { %135 = vst.msk [vmem:[%s11224_s22 + $0x30] sm:$0xff] %vm128_vm14, %v11021_v38  ;;  %136 = vst.msk [vmem:[%s11224_s22 + $0x38] sm:$0xff] %vm128_vm14, %v10950_v44  ;;  %v11286_v5 = vpop.permute.xlu1 %4475  ;;  %v6058_v44 = vsel %vm6056_vm3, %v6057_v8, %v11216_v16  ;;  %v6547_v43 = vand.u32 3, %v10903_v57  ;;  %v6189_v28 = vsub.s32 4, %v11178_v49  ;;  %v11799_v21 = vxor.u32 2147483648, %v10999_v27 }
 0x353   : > { %v11252_v25 = vpop.eup %7702  ;;  %vm7401_vm10 = vcmp.lt.s32.totalorder %v7400_v45, 0  ;;  %1004 = vst.msk [vmem:[%s11224_s22 + $0x10] sm:$0xff] %vm1001_vm8, %v10909_v18  ;;  %1002 = vst.msk [vmem:[%s11224_s22] sm:$0xff] %vm1001_vm8, %v10911_v60  ;;  %v6059_v15 = vadd.s32 %v6058_v44, %v6054_v33  ;;  %vm6105_vm14 = vcmp.lt.s32.totalorder %v10953_v2, 0  ;;  %v11800_v16 = vxor.u32 2147483648, %v10996_v47 }
 0x354   : > { %1005 = vst.msk [vmem:[%s11224_s22 + $0x18] sm:$0xff] %vm1001_vm8, %v10925_v63  ;;  %1003 = vst.msk [vmem:[%s11224_s22 + $0x8] sm:$0xff] %vm1001_vm8, %v10927_v35  ;;  %v11281_v59 = vpop.eup %7704  ;;  %v5891_v20 = vxor.u32 2147483648, %v11252_v25  ;;  %v6174_v38 = vsel %vm7401_vm10, 0, %v7400_v45  ;;  %v11288_v63 = vpop.permute.xlu0 %4473  ;;  %vm6548_vm2 = vcmp.lt.s32.totalorder %v6547_v43, 2  ;;  %vm6549_vm13 = vcmp.eq.s32.totalorder %v6547_v43, 0 }
 0x355   : > { %1007 = vst.msk [vmem:[%s11224_s22 + $0x28] sm:$0xff] %vm1001_vm8, %v10940_v6  ;;  %1006 = vst.msk [vmem:[%s11224_s22 + $0x20] sm:$0xff] %vm1001_vm8, %v10942_v11  ;;  %v5888_v18 = vxor.u32 2147483648, %v11281_v59  ;;  %v6175_v60 = vsub.s32 32, %v6174_v38  ;;  %v6176_v35 = vshll.u32 %v11193_v0, %v6174_v38  ;;  %v6179_v6 = vsub.s32 4294967266, %v6174_v38 }
 0x356   : > { %1009 = vst.msk [vmem:[%s11224_s22 + $0x38] sm:$0xff] %vm1001_vm8, %v10966_v10  ;;  %1008 = vst.msk [vmem:[%s11224_s22 + $0x30] sm:$0xff] %vm1001_vm8, %v10968_v14  ;;  %v5892_v11 = vsel %vm5890_vm6, %v5891_v20, %v11281_v59  ;;  %v11300_v7 = vpop.permute.xlu1 %4479  ;;  %v6060_v40 = vadd.s32 536870912, %v6059_v15  ;;  %vm6552_vm9 = vcmp.eq.s32.totalorder %v6547_v43, 2  ;;  %v6551_v57 = vsel %vm6549_vm13, %v10996_v47, %v11799_v21  ;;  %v11812_v21 = vld [vmem:[#allocation21_spill] sm:$0xff] }
 0x357   : > { %v5889_v10 = vsel %vm5887_vm1, %v11252_v25, %v5888_v18  ;;  %v6177_v14 = vshrl.u32 %v6159_v46, %v6175_v60  ;;  %v6180_v52 = vadd.s32 127, %v6179_v6  ;;  %v6554_v32 = vsel %vm6552_vm9, %v11800_v16, %v10999_v27  ;;  %v11815_v16 = vld [vmem:[#allocation24_spill] sm:$0xff]  ;;  %v11822_v60 = vld [vmem:[#allocation31_spill] sm:$0xff] }
 0x358   : > { %v5893_v26 = vsel %vm5886_vm12, %v5889_v10, %v5892_v11  ;;  %v11302_v0 = vpop.permute.xlu0 %4477  ;;  %v11309_v55 = vshrl.u32 %v6060_v40, 30  ;;  %v6856_v12 = vand.u32 3, %v11004_v4  ;;  %v6753_v1 = vand.u32 3, %v11154_v39 }
 0x359   : > { %v5894_v30 = vsel %vm5883_vm11, nan, %v5893_v26  ;;  %v6178_v24 = vor.u32 %v6177_v14, %v6176_v35  ;;  %v6181_v31 = vshll.u32 %v6180_v52, 23  ;;  %v6190_v8 = vsel %vm6105_vm14, %v6189_v28, %v11178_v49  ;;  %v11809_v28 = vld [vmem:[#allocation17_spill] sm:$0xff] }
 0x35a   : > { %6223 = vrot.lane.b32.xlu0 %v5894_v30, %s7758_s19  ;;  %v11311_v51 = vpop.permute.xlu1 %4483  ;;  %v6062_v34 = vshll.u32 %v11309_v55, 30  ;;  %v6555_v33 = vsel %vm6548_vm2, %v6551_v57, %v6554_v32  ;;  %v11801_v38 = vand.u32 2147483647, %v10953_v2  ;;  %vm6858_vm12 = vcmp.eq.s32.totalorder %v6856_v12, 0  ;;  %v11814_v57 = vld [vmem:[#allocation23_spill] sm:$0xff]  ;;  %v11816_v32 = vld [vmem:[#allocation25_spill] sm:$0xff] }
 0x35b   : > { %v6182_v61 = vor.u32 4788187, %v6181_v31  ;;  %v6185_v17 = vcvt.s32.f32 %v6178_v24  ;;  %v11338_v47 = vsel %vm5675_vm7, nan, %v6555_v33  ;;  %vm6857_vm6 = vcmp.lt.s32.totalorder %v6856_v12, 2  ;;  %v11820_v33 = vld [vmem:[#allocation29_spill] sm:$0xff] }
 0x35c   : > { %v11313_v9 = vpop.permute.xlu0 %4481  ;;  %v11328_v46 = vsub.s32 %v6059_v15, %v6062_v34  ;;  %vm11332_vm8 = vcmp.le.f32.partialorder %v11801_v38, 0.7853982  ;;  %v11804_v35 = vxor.u32 2147483648, %v11133_v41  ;;  %vm6861_vm10 = vcmp.eq.s32.totalorder %v6856_v12, 2  ;;  %v11811_v34 = vld [vmem:[#allocation20_spill] sm:$0xff]  ;;  %v11821_v38 = vld [vmem:[#allocation30_spill] sm:$0xff] }
 0x35d   : > { %v6183_v36 = vand.u32 2147483647, %v6182_v61  ;;  %v11350_v11 = vsel %vm11332_vm8, 0, %v6190_v8  ;;  %vm6755_vm7 = vcmp.eq.s32.totalorder %v6753_v1, 0  ;;  %vm6758_vm1 = vcmp.eq.s32.totalorder %v6753_v1, 2  ;;  %v11806_v61 = vld [vmem:[#allocation14_spill] sm:$0xff] }
 0x35e   : > { %v11340_v27 = vpop.permute.xlu1 %5336  ;;  %v6065_v49 = vsub.s32 0, %v11328_v46  ;;  %v6860_v6 = vsel %vm6858_vm12, %v11119_v3, %v11804_v35  ;;  %v11805_v10 = vxor.u32 2147483648, %v11119_v3  ;;  %vm6754_vm3 = vcmp.lt.s32.totalorder %v6753_v1, 2  ;;  %v11819_v8 = vld [vmem:[#allocation28_spill] sm:$0xff] }
 0x35f   : > { %v6186_v45 = vmul.f32 %v6185_v17, %v6183_v36  ;;  %v6757_v26 = vsel %vm6755_vm7, %v11252_v25, %v5888_v18  ;;  %v6760_v30 = vsel %vm6758_vm1, %v5891_v20, %v11281_v59  ;;  %v6196_v18 = vadd.s32 3, %v11350_v11  ;;  %v11807_v17 = vld [vmem:[#allocation15_spill] sm:$0xff] }
 0x360   : > { %v11342_v4 = vpop.permute.xlu0 %5334  ;;  %v7395_v44 = vmin.u32 %v6065_v49, %v11328_v46  ;;  %v6863_v14 = vsel %vm6861_vm10, %v11805_v10, %v11133_v41  ;;  %v11367_v41 = vsel %vm6754_vm3, %v6757_v26, %v6760_v30  ;;  %v11371_v25 = vand.u32 3, %v10584_v23  ;;  %v11808_v23 = vld [vmem:[#allocation16_spill] sm:$0xff]  ;;  %v11810_v36 = vld [vmem:[#allocation19_spill] sm:$0xff] }
 0x361   : > { %v6187_v39 = vxor.u32 2147483648, %v6186_v45  ;;  %v11361_v15 = vsel %vm6857_vm6, %v6860_v6, %v6863_v14  ;;  %vm1866_vm2 = vcmask 72752   ;;  %vm2747_vm13 = vcmask 97352  }
 0x362   : > { %v5341_v24 = vpop.permute.xlu1 %5340  ;;  %v6067_v3 = vclz %v7395_v44  ;;  %v6055_v43 = vadd.s32 %v11215_v19, %v11229_v37  ;;  %1868 = vst.msk [vmem:[%s11224_s22 + $0x8] sm:$0xff] %vm1866_vm2, %v11806_v61  ;;  %1867 = vst.msk [vmem:[%s11224_s22] sm:$0xff] %vm1866_vm2, %v11807_v17  ;;  %v11813_v19 = vld [vmem:[#allocation22_spill] sm:$0xff]  ;;  %vm5358_vm12 = vcmask 171152   ;;  %v11415_v12 = vand.u32 3, %v6196_v18 }
 0x363   : > { %v6188_v48 = vsel %vm6105_vm14, %v6187_v39, %v6186_v45  ;;  %1870 = vst.msk [vmem:[%s11224_s22 + $0x18] sm:$0xff] %vm1866_vm2, %v11808_v23  ;;  %1869 = vst.msk [vmem:[%s11224_s22 + $0x10] sm:$0xff] %vm1866_vm2, %v11809_v28  ;;  %vm3612_vm14 = vcmask 121952   ;;  %vm6446_vm6 = vcmp.eq.s32.totalorder %v11371_v25, 0  ;;  %vm6449_vm10 = vcmp.eq.s32.totalorder %v11371_v25, 2  ;;  %v11832_v23 = vld [vmem:[#allocation18_spill] sm:$0xff] }
 0x364   : > { %v6191_v52 = vsel %vm11332_vm8, %v10953_v2, %v6188_v48  ;;  %v5339_v31 = vpop.permute.xlu0 %5338  ;;  %v7396_v40 = vadd.s32 4294967294, %v6067_v3  ;;  %1872 = vst.msk [vmem:[%s11224_s22 + $0x28] sm:$0xff] %vm1866_vm2, %v11810_v36  ;;  %1871 = vst.msk [vmem:[%s11224_s22 + $0x20] sm:$0xff] %vm1866_vm2, %v11811_v34  ;;  %vm4493_vm8 = vcmask 146552   ;;  %vm6239_vm7 = vcmask 195752  }
 0x365   : > { %7706 = vcosq.f32 %v6191_v52  ;;  %1874 = vst.msk [vmem:[%s11224_s22 + $0x38] sm:$0xff] %vm1866_vm2, %v11812_v21  ;;  %1873 = vst.msk [vmem:[%s11224_s22 + $0x30] sm:$0xff] %vm1866_vm2, %v11813_v19  ;;  %vm6202_vm1 = vcmp.eq.s32.totalorder %v11415_v12, 2  ;;  %vm6445_vm3 = vcmp.lt.s32.totalorder %v11371_v25, 2  ;;  %vm6198_vm2 = vcmp.lt.s32.totalorder %v11415_v12, 2 }
 0x366   : > { %7708 = vsinq.f32 %v6191_v52  ;;  %v5345_v59 = vpop.permute.xlu1 %5344  ;;  %vm7397_vm9 = vcmp.lt.s32.totalorder %v7396_v40, 0  ;;  %2749 = vst.msk [vmem:[%s11224_s22 + $0x8] sm:$0xff] %vm2747_vm13, %v11071_v22  ;;  %2748 = vst.msk [vmem:[%s11224_s22] sm:$0xff] %vm2747_vm13, %v11073_v53  ;;  %v11817_v22 = vld [vmem:[#allocation26_spill] sm:$0xff]  ;;  %v11818_v53 = vld [vmem:[#allocation27_spill] sm:$0xff]  ;;  %v6085_v30 = vsub.s32 4, %v11309_v55 }
 0x367   : > { %v6070_v37 = vsel %vm7397_vm9, 0, %v7396_v40  ;;  %2751 = vst.msk [vmem:[%s11224_s22 + $0x18] sm:$0xff] %vm2747_vm13, %v11814_v57  ;;  %2750 = vst.msk [vmem:[%s11224_s22 + $0x10] sm:$0xff] %vm2747_vm13, %v11815_v16  ;;  %vm6195_vm9 = vweird.f32 %v10953_v2  ;;  %v11828_v40 = vld [vmem:[#allocation13_spill] sm:$0xff]  ;;  %v7062_v25 = vand.u32 3, %v11350_v11 }
 0x368   : > { %v5343_v20 = vpop.permute.xlu0 %5342  ;;  %2753 = vst.msk [vmem:[%s11224_s22 + $0x28] sm:$0xff] %vm2747_vm13, %v11104_v13  ;;  %2752 = vst.msk [vmem:[%s11224_s22 + $0x20] sm:$0xff] %vm2747_vm13, %v11816_v32  ;;  %v6071_v1 = vsub.s32 32, %v6070_v37  ;;  %v6072_v13 = vshll.u32 %v11328_v46, %v6070_v37  ;;  %v6075_v45 = vsub.s32 4294967266, %v6070_v37  ;;  %v11833_v28 = vand.u32 2147483647, %v11832_v23 }
 0x369   : > { %2755 = vst.msk [vmem:[%s11224_s22 + $0x38] sm:$0xff] %vm2747_vm13, %v11817_v22  ;;  %2754 = vst.msk [vmem:[%s11224_s22 + $0x30] sm:$0xff] %vm2747_vm13, %v11818_v53  ;;  %vm6199_vm13 = vcmp.eq.s32.totalorder %v11415_v12, 0 }
 0x36a   : > { %3614 = vst.msk [vmem:[%s11224_s22 + $0x8] sm:$0xff] %vm3612_vm14, %v11819_v8  ;;  %3613 = vst.msk [vmem:[%s11224_s22] sm:$0xff] %vm3612_vm14, %v11820_v33 }
 0x36b   : > { %3616 = vst.msk [vmem:[%s11224_s22 + $0x18] sm:$0xff] %vm3612_vm14, %v11821_v38  ;;  %3615 = vst.msk [vmem:[%s11224_s22 + $0x10] sm:$0xff] %vm3612_vm14, %v11822_v60 }
 0x36c   : > { %3618 = vst.msk [vmem:[%s11224_s22 + $0x28] sm:$0xff] %vm3612_vm14, %v11189_v42  ;;  %3617 = vst.msk [vmem:[%s11224_s22 + $0x20] sm:$0xff] %vm3612_vm14, %v11191_v54  ;;  %v5349_v42 = vpop.permute.xlu1 %5348  ;;  %v5347_v54 = vpop.permute.xlu0 %5346 }
 0x36d   : > { %3620 = vst.msk [vmem:[%s11224_s22 + $0x38] sm:$0xff] %vm3612_vm14, %v11205_v56  ;;  %3619 = vst.msk [vmem:[%s11224_s22 + $0x30] sm:$0xff] %vm3612_vm14, %v11207_v58  ;;  %v6073_v56 = vshrl.u32 %v6055_v43, %v6071_v1  ;;  %v6076_v58 = vadd.s32 127, %v6075_v45  ;;  %v11837_v45 = vld [vmem:[#allocation5_spill] sm:$0xff] }
 0x36e   : > { %4495 = vst.msk [vmem:[%s11224_s22 + $0x8] sm:$0xff] %vm4493_vm8, %v11231_v50  ;;  %4494 = vst.msk [vmem:[%s11224_s22] sm:$0xff] %vm4493_vm8, %v11233_v29  ;;  %v11823_v50 = vld [vmem:[#allocation11_spill] sm:$0xff]  ;;  %v6341_v8 = vand.u32 3, %v11837_v45 }
 0x36f   : > { %4497 = vst.msk [vmem:[%s11224_s22 + $0x18] sm:$0xff] %vm4493_vm8, %v11286_v5  ;;  %4496 = vst.msk [vmem:[%s11224_s22 + $0x10] sm:$0xff] %vm4493_vm8, %v11288_v63  ;;  %v6650_v29 = vand.u32 3, %v11823_v50  ;;  %v7707_v5 = vpop.eup %7706  ;;  %v6074_v63 = vor.u32 %v6073_v56, %v6072_v13  ;;  %v6865_v13 = vsel %vm5987_vm5, nan, %v11361_v15  ;;  %v11838_v50 = vld [vmem:[#allocation10_spill] sm:$0xff] }
 0x370   : > { %4499 = vst.msk [vmem:[%s11224_s22 + $0x28] sm:$0xff] %vm4493_vm8, %v11300_v7  ;;  %4498 = vst.msk [vmem:[%s11224_s22 + $0x20] sm:$0xff] %vm4493_vm8, %v11302_v0  ;;  %v6077_v7 = vshll.u32 %v6076_v58, 23  ;;  %v7709_v0 = vpop.eup %7708  ;;  %v6218_v39 = vpop.permute.xlu1 %6217  ;;  %vm6342_vm5 = vcmp.lt.s32.totalorder %v6341_v8, 2 }
 0x371   : > { %4501 = vst.msk [vmem:[%s11224_s22 + $0x38] sm:$0xff] %vm4493_vm8, %v11311_v51  ;;  %4500 = vst.msk [vmem:[%s11224_s22 + $0x30] sm:$0xff] %vm4493_vm8, %v11313_v9  ;;  %v6203_v51 = vxor.u32 2147483648, %v7707_v5  ;;  %v11824_v9 = vld [vmem:[#allocation8_spill] sm:$0xff]  ;;  %v6216_v49 = vpop.permute.xlu0 %6215  ;;  %v6200_v35 = vxor.u32 2147483648, %v7709_v0  ;;  %v6081_v48 = vcvt.s32.f32 %v6074_v63  ;;  %vm6652_vm14 = vcmp.eq.s32.totalorder %v6650_v29, 0 }
 0x372   : > { %5360 = vst.msk [vmem:[%s11224_s22 + $0x8] sm:$0xff] %vm5358_vm12, %v11340_v27  ;;  %5359 = vst.msk [vmem:[%s11224_s22] sm:$0xff] %vm5358_vm12, %v11342_v4  ;;  %v11825_v46 = vxor.u32 2147483648, %v11824_v9  ;;  %v11826_v27 = vld [vmem:[#allocation6_spill] sm:$0xff]  ;;  %v6078_v6 = vor.u32 4788187, %v6077_v7 }
 0x373   : > { %5362 = vst.msk [vmem:[%s11224_s22 + $0x18] sm:$0xff] %vm5358_vm12, %v5341_v24  ;;  %5361 = vst.msk [vmem:[%s11224_s22 + $0x10] sm:$0xff] %vm5358_vm12, %v5339_v31  ;;  %v11827_v44 = vxor.u32 2147483648, %v11826_v27  ;;  %v6204_v14 = vsel %vm6202_vm1, %v6203_v51, %v7709_v0  ;;  %vm6655_vm8 = vcmp.eq.s32.totalorder %v6650_v29, 2  ;;  %v6201_v52 = vsel %vm6199_vm13, %v7707_v5, %v6200_v35 }
 0x374   : > { %5364 = vst.msk [vmem:[%s11224_s22 + $0x28] sm:$0xff] %vm5358_vm12, %v5345_v59  ;;  %5363 = vst.msk [vmem:[%s11224_s22 + $0x20] sm:$0xff] %vm5358_vm12, %v5343_v20  ;;  %v6448_v4 = vsel %vm6446_vm6, %v11826_v27, %v11825_v46  ;;  %v6079_v26 = vand.u32 2147483647, %v6078_v6  ;;  %v6205_v24 = vsel %vm6198_vm2, %v6201_v52, %v6204_v14  ;;  %v11829_v59 = vxor.u32 2147483648, %v11828_v40  ;;  %v11830_v20 = vld [vmem:[#allocation12_spill] sm:$0xff] }
 0x375   : > { %5366 = vst.msk [vmem:[%s11224_s22 + $0x38] sm:$0xff] %vm5358_vm12, %v5349_v42  ;;  %5365 = vst.msk [vmem:[%s11224_s22 + $0x30] sm:$0xff] %vm5358_vm12, %v5347_v54  ;;  %v6451_v10 = vsel %vm6449_vm10, %v11827_v44, %v11824_v9  ;;  %vm6651_vm12 = vcmp.lt.s32.totalorder %v6650_v29, 2  ;;  %v6206_v3 = vsel %vm6195_vm9, nan, %v6205_v24  ;;  %v11831_v61 = vxor.u32 2147483648, %v11830_v20 }
 0x376   : > { %6241 = vst.msk [vmem:[%s11224_s22 + $0x8] sm:$0xff] %vm6239_vm7, %v6218_v39  ;;  %6240 = vst.msk [vmem:[%s11224_s22] sm:$0xff] %vm6239_vm7, %v6216_v49  ;;  %v6452_v31 = vsel %vm6445_vm3, %v6448_v4, %v6451_v10  ;;  %v6082_v18 = vmul.f32 %v6081_v48, %v6079_v26  ;;  %v6654_v43 = vsel %vm6652_vm14, %v11830_v20, %v11829_v59  ;;  %6229 = vrot.lane.b32.xlu1 %v6206_v3, %s7758_s19 }
 0x377   : > { %v6657_v17 = vsel %vm6655_vm8, %v11831_v61, %v11828_v40  ;;  %vm6001_vm6 = vcmp.lt.s32.totalorder %v11832_v23, 0  ;;  %vm6000_vm10 = vcmp.le.f32.partialorder %v11833_v28, 0.7853982  ;;  %v6453_v19 = vsel %vm5571_vm0, nan, %v6452_v31 }
 0x378   : > { %v6083_v36 = vxor.u32 2147483648, %v6082_v18  ;;  %v6086_v34 = vsel %vm6001_vm6, %v6085_v30, %v11309_v55  ;;  %v6658_v37 = vsel %vm6651_vm12, %v6654_v43, %v6657_v17  ;;  %vm7064_vm1 = vcmp.eq.s32.totalorder %v7062_v25, 0 }
 0x379   : > { %v6088_v32 = vsel %vm6000_vm10, 0, %v6086_v34  ;;  %vm7067_vm3 = vcmp.eq.s32.totalorder %v7062_v25, 2  ;;  %v6659_v22 = vsel %vm5779_vm15, nan, %v6658_v37  ;;  %vm7063_vm2 = vcmp.lt.s32.totalorder %v7062_v25, 2 }
 0x37a   : > { %v6084_v57 = vsel %vm6001_vm6, %v6083_v36, %v6082_v18  ;;  %7082 = vrot.lane.b32.xlu1 %v6453_v19, %s7759_s23  ;;  %v6092_v55 = vadd.s32 3, %v6088_v32  ;;  %v7066_v53 = vsel %vm7064_vm1, %v7707_v5, %v6200_v35  ;;  %v7069_v12 = vsel %vm7067_vm3, %v6203_v51, %v7709_v0  ;;  %v11840_v5 = vld [vmem:[#allocation9_spill] sm:$0xff] }
 0x37b   : > { %v6087_v16 = vsel %vm6000_vm10, %v11832_v23, %v6084_v57  ;;  %v7070_v33 = vsel %vm7063_vm2, %v7066_v53, %v7069_v12  ;;  %vm6343_vm0 = vcmp.eq.s32.totalorder %v6341_v8, 0  ;;  %vm6346_vm15 = vcmp.eq.s32.totalorder %v6341_v8, 2 }
 0x37c   : > { %7710 = vcosq.f32 %v6087_v16  ;;  %v6093_v38 = vand.u32 3, %v6092_v55  ;;  %v7071_v42 = vsel %vm6195_vm9, nan, %v7070_v33  ;;  %v11839_v29 = vxor.u32 2147483648, %v11838_v50 }
 0x37d   : > { %7712 = vsinq.f32 %v6087_v16  ;;  %v11841_v2 = vxor.u32 2147483648, %v11840_v5  ;;  %vm6091_vm9 = vweird.f32 %v11832_v23  ;;  %v6959_v4 = vand.u32 3, %v6088_v32 }
 0x37e   : > { %7086 = vrot.lane.b32.xlu1 %v6659_v22, %s7759_s23  ;;  %vm6098_vm13 = vcmp.eq.s32.totalorder %v6093_v38, 2  ;;  %vm6095_vm14 = vcmp.eq.s32.totalorder %v6093_v38, 0  ;;  %vm6094_vm8 = vcmp.lt.s32.totalorder %v6093_v38, 2  ;;  %v6345_v63 = vsel %vm6343_vm0, %v11840_v5, %v11839_v29 }
 0x37f   : > { %v6348_v7 = vsel %vm6346_vm15, %v11841_v2, %v11838_v50  ;;  %vm6961_vm12 = vcmp.eq.s32.totalorder %v6959_v4, 0  ;;  %vm6964_vm6 = vcmp.eq.s32.totalorder %v6959_v4, 2  ;;  %vm6960_vm10 = vcmp.lt.s32.totalorder %v6959_v4, 2 }
 0x380   : > { %v6349_v46 = vsel %vm6342_vm5, %v6345_v63, %v6348_v7  ;;  %v6762_v48 = vsel %vm5883_vm11, nan, %v11367_v41 }
 0x381   : > { %v6350_v49 = vsel %vm5467_vm4, nan, %v6349_v46  ;;  %vm7104_vm4 = vcmask 220352  }
 0x382   : > { %7090 = vrot.lane.b32.xlu1 %v6865_v13, %s7759_s23  ;;  %v6222_v60 = vpop.permute.xlu1 %6221 }
 0x383   : > { %6243 = vst.msk [vmem:[%s11224_s22 + $0x18] sm:$0xff] %vm6239_vm7, %v6222_v60 }
 0x386   : > { %v7711_v54 = vpop.eup %7710  ;;  %7094 = vrot.lane.b32.xlu1 %v7071_v42, %s7759_s23 }
 0x387   : > { %v7713_v56 = vpop.eup %7712  ;;  %v6099_v58 = vxor.u32 2147483648, %v7711_v54 }
 0x388   : > { %v6096_v15 = vxor.u32 2147483648, %v7713_v56 }
 0x389   : > { %v6100_v0 = vsel %vm6098_vm13, %v6099_v58, %v7713_v56  ;;  %v6966_v6 = vsel %vm6964_vm6, %v6099_v58, %v7713_v56 }
 0x38a   : > { %v6097_v51 = vsel %vm6095_vm14, %v7711_v54, %v6096_v15  ;;  %v6963_v35 = vsel %vm6961_vm12, %v7711_v54, %v6096_v15 }
 0x38b   : > { %v6101_v9 = vsel %vm6094_vm8, %v6097_v51, %v6100_v0  ;;  %v6967_v44 = vsel %vm6960_vm10, %v6963_v35, %v6966_v6 }
 0x38c   : > { %v6102_v27 = vsel %vm6091_vm9, nan, %v6101_v9  ;;  %v6968_v10 = vsel %vm6091_vm9, nan, %v6967_v44 }
 0x38d   : > { %6227 = vrot.lane.b32.xlu0 %v6102_v27, %s7758_s19 }
 0x391   : > { %7080 = vrot.lane.b32.xlu0 %v6350_v49, %s7759_s23 }
 0x395   : > { %7084 = vrot.lane.b32.xlu0 %v11338_v47, %s7759_s23 }
 0x399   : > { %7088 = vrot.lane.b32.xlu0 %v6762_v48, %s7759_s23 }
 0x39b   : > { %v6220_v14 = vpop.permute.xlu0 %6219 }
 0x39c   : > { %6242 = vst.msk [vmem:[%s11224_s22 + $0x10] sm:$0xff] %vm6239_vm7, %v6220_v14 }
 0x39d   : > { %7092 = vrot.lane.b32.xlu0 %v6968_v10, %s7759_s23 }
 0x3b5   : > { %v6226_v47 = vpop.permute.xlu1 %6225 }
 0x3b6   : > { %6245 = vst.msk [vmem:[%s11224_s22 + $0x28] sm:$0xff] %vm6239_vm7, %v6226_v47 }
 0x3cc   : > { %v6224_v62 = vpop.permute.xlu0 %6223 }
 0x3cd   : > { %6244 = vst.msk [vmem:[%s11224_s22 + $0x20] sm:$0xff] %vm6239_vm7, %v6224_v62 }
 0x3e8   : > { %v6230_v41 = vpop.permute.xlu1 %6229 }
 0x3e9   : > { %6247 = vst.msk [vmem:[%s11224_s22 + $0x38] sm:$0xff] %vm6239_vm7, %v6230_v41 }
 0x3ec   : > { %v7083_v52 = vpop.permute.xlu1 %7082 }
 0x3ed   : > { %7106 = vst.msk [vmem:[%s11224_s22 + $0x8] sm:$0xff] %vm7104_vm4, %v7083_v52 }
 0x3f0   : > { %v7087_v26 = vpop.permute.xlu1 %7086 }
 0x3f1   : > { %7108 = vst.msk [vmem:[%s11224_s22 + $0x18] sm:$0xff] %vm7104_vm4, %v7087_v26 }
 0x3f4   : > { %v7091_v30 = vpop.permute.xlu1 %7090 }
 0x3f5   : > { %7110 = vst.msk [vmem:[%s11224_s22 + $0x28] sm:$0xff] %vm7104_vm4, %v7091_v30 }
 0x3f8   : > { %v7095_v24 = vpop.permute.xlu1 %7094 }
 0x3f9   : > { %7112 = vst.msk [vmem:[%s11224_s22 + $0x38] sm:$0xff] %vm7104_vm4, %v7095_v24 }
 0x3ff   : > { %v6228_v31 = vpop.permute.xlu0 %6227 }
 0x400   : > { %6246 = vst.msk [vmem:[%s11224_s22 + $0x30] sm:$0xff] %vm6239_vm7, %v6228_v31 }
 0x403   : > { %v7081_v3 = vpop.permute.xlu0 %7080 }
 0x404   : > { %7105 = vst.msk [vmem:[%s11224_s22] sm:$0xff] %vm7104_vm4, %v7081_v3 }
 0x407   : > { %v7085_v18 = vpop.permute.xlu0 %7084 }
 0x408   : > { %7107 = vst.msk [vmem:[%s11224_s22 + $0x10] sm:$0xff] %vm7104_vm4, %v7085_v18 }
 0x40b   : > { %v7089_v40 = vpop.permute.xlu0 %7088 }
 0x40c   : > { %7109 = vst.msk [vmem:[%s11224_s22 + $0x20] sm:$0xff] %vm7104_vm4, %v7089_v40 }
 0x40f   : > { %v7093_v59 = vpop.permute.xlu0 %7092 }
 0x410   : > { %7111 = vst.msk [vmem:[%s11224_s22 + $0x30] sm:$0xff] %vm7104_vm4, %v7093_v59 }
 0x411 PF: > { %s11_s6 = sadd.s32 1, %s7744_s6  }
 0x412   : > { %p8_p4 = scmp.ge.s32.totalorder %s11_s6, 7  }
 0x414   :  { %10 = sbr.rel (!%p8_p4) target bundleno = 1 (0x1), region = 54 }

</bundles_post_ra>
